<compile_context>
chip_gen: v7x
topology: tpu7x:2x2x1
jax: 0.10.0
libtpu: 0.0.40
codegen_flags: <defaults>
</compile_context>

<pallas_src>
import functools

import numpy as np
import jax
import jax.numpy as jnp
from jax.experimental import pallas as pl
from jax.experimental.pallas import tpu as pltpu

LN_EPS = 1e-5                       # nn.LayerNorm default eps
VMEM_LIMIT = 48 * 1024 * 1024       # fits v7x's 64 MiB, above v5e/v6e defaults


def _layernorm_f32(x, gamma, beta):
    mu = jnp.mean(x, axis=-1, keepdims=True)
    var = jnp.mean(jnp.square(x - mu), axis=-1, keepdims=True)
    return (x - mu) * jax.lax.rsqrt(var + LN_EPS) * gamma + beta


# ----------------------------- Pallas kernels ------------------------------

def ln_qkv_kernel(x_ref, g_ref, b_ref, w_ref, wb_ref, o_ref):
    """Fused LayerNorm1 + QKV projection for one tile of token rows."""
    x = x_ref[...].astype(jnp.float32)
    xn = _layernorm_f32(x, g_ref[...], b_ref[...])
    y = jnp.dot(xn.astype(jnp.bfloat16), w_ref[...],
                preferred_element_type=jnp.float32) + wb_ref[...]
    o_ref[...] = y.astype(o_ref.dtype)


def window_attn_kernel(qkv_ref, cos_ref, sin_ref, o_ref, *, num_heads, head_dim, scale):
    """Attention for one window.

    qkv_ref: (wh, ww, 3C) bf16 block taken straight out of the token stream.
    o_ref:   (wh, ww, C)  bf16 block written straight back in token order
             (heads folded into the lane dim, matching proj's input layout).
    """
    c = num_heads * head_dim
    wh, ww, _ = qkv_ref.shape
    ws = wh * ww
    half = head_dim // 2

    blk = qkv_ref[...].reshape(ws, 3 * c)
    cos = cos_ref[...]          # (ws, c) f32, tiled over heads
    sin = sin_ref[...]          # (ws, c) f32, tiled over heads, rotate-half sign folded in
    lane = jax.lax.broadcasted_iota(jnp.int32, (1, c), 1)
    first = (lane % head_dim) < half

    def rope(t):
        # TODO(synk): the real `rope` is an external callable in the PyTorch
        # forward; this is a deterministic rotate-half RoPE stand-in (mode='key'
        # applied to both q and k, as in the reference branch), applied once to
        # the full (ws, c) slab.
        left = jnp.concatenate([t[:, half:], t[:, :half]], axis=1)            # t[:, m + half]
        right = jnp.concatenate([t[:, c - half:], t[:, :c - half]], axis=1)   # t[:, m - half]
        return t * cos + jnp.where(first, left, right) * sin

    q = (rope(blk[:, :c].astype(jnp.float32)) * scale).astype(jnp.bfloat16)   # scale folded into q
    k = rope(blk[:, c:2 * c].astype(jnp.float32)).astype(jnp.bfloat16)
    v = blk[:, 2 * c:]

    # TODO(synk): with larger head_dim a head-batched dot_general would fill the
    # MXU better; the per-head loop is kept for robust lowering at d=16.
    outs = []
    for h in range(num_heads):
        lo = h * head_dim
        s = jnp.einsum('qd,kd->qk', q[:, lo:lo + head_dim], k[:, lo:lo + head_dim],
                       preferred_element_type=jnp.float32)
        s = s - jnp.max(s, axis=-1, keepdims=True)
        p = jnp.exp(s)
        p = p * pl.reciprocal(jnp.sum(p, axis=-1, keepdims=True), approx=True)
        outs.append(jnp.dot(p.astype(jnp.bfloat16), v[:, lo:lo + head_dim],
                            preferred_element_type=jnp.float32))
    o = jnp.concatenate(outs, axis=-1)                 # (ws, c) lane-dense, head-major
    o_ref[...] = o.astype(o_ref.dtype).reshape(o_ref.shape)


def proj_mlp_kernel(x_ref, a_ref, pw_ref, pb_ref, g_ref, b_ref,
                    w1_ref, b1_ref, w2_ref, b2_ref, o_ref):
    """Fused: x + proj(attn) ; then + fc2(gelu(fc1(LN2(.)))) for one row tile."""
    x = x_ref[...].astype(jnp.float32)
    h1 = x + jnp.dot(a_ref[...], pw_ref[...],
                     preferred_element_type=jnp.float32) + pb_ref[...]
    xn = _layernorm_f32(h1, g_ref[...], b_ref[...])
    h = jnp.dot(xn.astype(jnp.bfloat16), w1_ref[...],
                preferred_element_type=jnp.float32) + b1_ref[...]
    h = jax.nn.gelu(h, approximate=True)   # tanh GELU -> EUP (exact erf if bit-exactness needed)
    y = jnp.dot(h.astype(jnp.bfloat16), w2_ref[...],
                preferred_element_type=jnp.float32) + b2_ref[...]
    o_ref[...] = (h1 + y).astype(o_ref.dtype)


# ------------------------------ pallas_call wrappers ------------------------

def _pick_tile(n, target, mult=1):
    """Largest divisor of n that is <= target, preferring multiples of `mult`."""
    target = max(1, min(target, n))
    for req in (mult, 1):
        t = target
        while t >= 1:
            if n % t == 0 and t % req == 0:
                return t
            t -= 1
    return n


def _rowwise_call(kernel, row_args, const_args, out_dim, out_dtype, *,
                  max_tile=1024, min_grid=4, cost_estimate=None):
    """1-D row grid (>= min_grid steps); constant-index-map weights stay VMEM resident."""
    n_rows = row_args[0].shape[0]
    target = min(max_tile, max(16, n_rows // min_grid))
    tile = _pick_tile(n_rows, target, mult=16)          # bf16 packs (16,128)
    in_specs = [pl.BlockSpec((tile, a.shape[-1]), lambda i: (i, 0)) for a in row_args]
    in_specs += [pl.BlockSpec(a.shape, lambda i, nd=a.ndim: (0,) * nd) for a in const_args]
    return pl.pallas_call(
        kernel,
        out_shape=jax.ShapeDtypeStruct((n_rows, out_dim), out_dtype),
        grid=(n_rows // tile,),
        in_specs=in_specs,
        out_specs=pl.BlockSpec((tile, out_dim), lambda i: (i, 0)),
        compiler_params=pltpu.CompilerParams(
            dimension_semantics=("parallel",), vmem_limit_bytes=VMEM_LIMIT),
        cost_estimate=cost_estimate,
    )(*row_args, *const_args)


def ln_qkv(x, g, b, w, wb):
    n, c = x.shape
    c3 = w.shape[1]
    cost = pl.CostEstimate(flops=2 * n * c * c3, transcendentals=n,
                           bytes_accessed=n * c * 4 + n * c3 * 2 + c * c3 * 2)
    return _rowwise_call(ln_qkv_kernel, [x], [g, b, w, wb], c3, jnp.bfloat16,
                         max_tile=1024, cost_estimate=cost)


def proj_mlp_residual(x, attn_tokens, pw, pb, g2, b2, w1, b1, w2, b2b):
    n, c = x.shape
    hidden = w1.shape[1]
    cost = pl.CostEstimate(flops=2 * n * c * c + 4 * n * c * hidden,
                           transcendentals=n * hidden,
                           bytes_accessed=n * c * (4 + 2 + 4)
                           + (c * c + 2 * c * hidden) * 2)
    return _rowwise_call(proj_mlp_kernel, [x, attn_tokens],
                         [pw, pb, g2, b2, w1, b1, w2, b2b], c, jnp.float32,
                         max_tile=512, cost_estimate=cost)


def window_attention(qkv, cos_t, sin_t, *, batch, grid_hw, window_size, num_heads, scale):
    H, W = grid_hw
    wh, ww = window_size
    nwh, nww = H // wh, W // ww
    n, c3 = qkv.shape
    c = c3 // 3
    d = c // num_heads
    ws = wh * ww
    # Free (no-copy) view: row-major (N, 3C) == (B*nWh, wh, nWw, ww, 3C).  The
    # in_spec index_map below does the window "gather" via DMA and the out_spec
    # scatters results straight back into original token order.
    qkv_v = qkv.reshape(batch * nwh, wh, nww, ww, c3)
    kern = functools.partial(window_attn_kernel, num_heads=num_heads,
                             head_dim=d, scale=scale)
    nwin = batch * nwh * nww
    cost = pl.CostEstimate(flops=4 * nwin * num_heads * ws * ws * d,
                           transcendentals=nwin * num_heads * ws * ws,
                           bytes_accessed=n * (c3 + c) * 2)
    out = pl.pallas_call(
        kern,
        out_shape=jax.ShapeDtypeStruct((batch * nwh, wh, nww, ww, c), jnp.bfloat16),
        grid=(batch * nwh, nww),
        in_specs=[pl.BlockSpec((None, wh, None, ww, c3), lambda i, j: (i, 0, j, 0, 0)),
                  pl.BlockSpec((ws, c), lambda i, j: (0, 0)),
                  pl.BlockSpec((ws, c), lambda i, j: (0, 0))],
        out_specs=pl.BlockSpec((None, wh, None, ww, c), lambda i, j: (i, 0, j, 0, 0)),
        compiler_params=pltpu.CompilerParams(
            dimension_semantics=("parallel", "parallel"), vmem_limit_bytes=VMEM_LIMIT),
        cost_estimate=cost,
    )(qkv_v, cos_t, sin_t)
    return out.reshape(n, c)        # free view back to original token order


# ------------------------------ block forward -------------------------------

def block_forward(x, params, *, grid_hw, window_size, num_heads):
    B, H, W = grid_hw
    wh, ww = window_size
    assert H % wh == 0 and W % ww == 0
    n, c = x.shape
    d = c // num_heads
    scale = d ** (-0.5)

    # Regular (divisible) windowing: kv_indices is the plain window permutation and
    # the learned padding row is never referenced, so no gather/select is needed.
    # TODO(synk): irregular / padded kv_indices would need a PrefetchScalarGridSpec
    # per-window row-offset (pl.Element) gather path; not implemented here.
    qkv = ln_qkv(x, params['ln1_g'], params['ln1_b'],
                 params['qkv_w'], params['qkv_b'])                       # (N, 3C) bf16

    attn = window_attention(qkv, params['rope_cos_t'], params['rope_sin_t'],
                            batch=B, grid_hw=(H, W), window_size=window_size,
                            num_heads=num_heads, scale=scale)            # (N, C) bf16, token order

    # x + proj(attn)  fused with  x' + fc2(gelu(fc1(LN2(x'))))
    return proj_mlp_residual(x, attn, params['proj_w'], params['proj_b'],
                             params['ln2_g'], params['ln2_b'],
                             params['fc1_w'], params['fc1_b'],
                             params['fc2_w'], params['fc2_b'])


# ------------------------------ setup helpers -------------------------------

def make_window_indices(B, H, W, win):
    wh, ww = win
    idx = []
    for b in range(B):
        for wi in range(H // wh):
            for wj in range(W // ww):
                for i in range(wh):
                    for j in range(ww):
                        idx.append(b * H * W + (wi * wh + i) * W + (wj * ww + j))
    return np.asarray(idx, dtype=np.int32)


def make_rope_tables(ws, head_dim, num_heads):
    half = head_dim // 2
    pos = np.arange(ws, dtype=np.float32)[:, None]
    inv_freq = 1.0 / (10000.0 ** (np.arange(half, dtype=np.float32) / half))
    ang = pos * inv_freq[None, :]
    cos_d = np.concatenate([np.cos(ang), np.cos(ang)], axis=-1).astype(np.float32)
    sin_d = np.concatenate([np.sin(ang), np.sin(ang)], axis=-1).astype(np.float32)
    # head-tiled tables for the slab-level kernel RoPE, rotate-half sign folded into sin
    cos_t = np.tile(cos_d, (1, num_heads))
    sin_signed = np.concatenate([-np.sin(ang), np.sin(ang)], axis=-1).astype(np.float32)
    sin_t = np.tile(sin_signed, (1, num_heads))
    return jnp.asarray(cos_d), jnp.asarray(sin_d), jnp.asarray(cos_t), jnp.asarray(sin_t)


def init_params(key, c, mlp_ratio):
    hidden = int(c * mlp_ratio)
    ks = jax.random.split(key, 4)
    std = 0.02
    wdt = jnp.bfloat16   # bf16 weights -> bf16 x bf16 MXU matmuls with f32 accumulation
    return {
        'ln1_g': jnp.ones((1, c), jnp.float32),
        'ln1_b': jnp.zeros((1, c), jnp.float32),
        'qkv_w': (std * jax.random.normal(ks[0], (c, 3 * c), jnp.float32)).astype(wdt),
        'qkv_b': jnp.zeros((1, 3 * c), jnp.float32),
        'proj_w': (std * jax.random.normal(ks[1], (c, c), jnp.float32)).astype(wdt),
        'proj_b': jnp.zeros((1, c), jnp.float32),
        'attn_padding': jnp.zeros((1, c), jnp.float32),   # unused in the regular (divisible) case
        'ln2_g': jnp.ones((1, c), jnp.float32),
        'ln2_b': jnp.zeros((1, c), jnp.float32),
        'fc1_w': (std * jax.random.normal(ks[2], (c, hidden), jnp.float32)).astype(wdt),
        'fc1_b': jnp.zeros((1, hidden), jnp.float32),
        'fc2_w': (std * jax.random.normal(ks[3], (hidden, c), jnp.float32)).astype(wdt),
        'fc2_b': jnp.zeros((1, c), jnp.float32),
    }


# -------- pure-JAX reference with the original gather/scatter semantics ------

def reference_forward(x, params, kv_np, win, num_heads, cos_d, sin_d):
    n, c = x.shape
    d = c // num_heads
    ws = win[0] * win[1]
    scale = d ** (-0.5)

    def ln(t, g, b):
        mu = t.mean(-1, keepdims=True)
        var = ((t - mu) ** 2).mean(-1, keepdims=True)
        return (t - mu) / jnp.sqrt(var + LN_EPS) * g + b

    xn = ln(x, params['ln1_g'], params['ln1_b'])
    qkv = xn @ params['qkv_w'].astype(jnp.float32) + params['qkv_b']
    q, k, v = qkv[:, :c], qkv[:, c:2 * c], qkv[:, 2 * c:]
    kv = jnp.asarray(kv_np)

    def heads(t):
        return t[kv].reshape(-1, ws, num_heads, d)

    def rope(t):
        t1, t2 = t[..., :d // 2], t[..., d // 2:]
        rot = jnp.concatenate([-t2, t1], axis=-1)
        return t * cos_d[None, :, None, :] + rot * sin_d[None, :, None, :]

    qh = rope(heads(q)) * scale
    kh = rope(heads(k))
    vh = heads(v)
    s = jnp.einsum('wqnd,wknd->wnqk', qh, kh)
    p = jax.nn.softmax(s, axis=-1)
    o = jnp.einsum('wnqk,wknd->wqnd', p, vh).reshape(-1, c)
    ori = jnp.zeros((n, c), jnp.float32).at[kv].set(o)
    h1 = x + ori @ params['proj_w'].astype(jnp.float32) + params['proj_b']
    xn2 = ln(h1, params['ln2_g'], params['ln2_b'])
    hid = jax.nn.gelu(xn2 @ params['fc1_w'].astype(jnp.float32) + params['fc1_b'],
                      approximate=True)
    return h1 + hid @ params['fc2_w'].astype(jnp.float32) + params['fc2_b']


if __name__ == "__main__":
    B, H, W, C = 2, 16, 16, 64
    num_heads = 4
    head_dim = C // num_heads
    win = (8, 8)
    Ws = win[0] * win[1]
    N = B * H * W                       # tokens

    key = jax.random.PRNGKey(0)
    kx, kp = jax.random.split(key)
    x = jax.random.normal(kx, (N, C), jnp.float32)

    params = init_params(kp, C, mlp_ratio=4.0)
    cos_d, sin_d, cos_t, sin_t = make_rope_tables(Ws, head_dim, num_heads)
    params['rope_cos_t'] = cos_t
    params['rope_sin_t'] = sin_t

    # Host-side static check: the regular window permutation (kv_indices) is exactly
    # the ordering the view-based BlockSpecs use -> no runtime gather needed.
    kv_np = make_window_indices(B, H, W, win)
    view_order = (np.arange(N, dtype=np.int32)
                  .reshape(B * (H // win[0]), win[0], W // win[1], win[1])
                  .transpose(0, 2, 1, 3).reshape(-1))
    assert np.array_equal(kv_np, view_order)

    fwd = jax.jit(functools.partial(block_forward, grid_hw=(B, H, W),
                                    window_size=win, num_heads=num_heads))
    out = jax.block_until_ready(fwd(x, params))
    assert out.shape == (N, C) and out.dtype == jnp.float32
    assert bool(jnp.all(jnp.isfinite(out)))

    ref = reference_forward(x, params, kv_np, win, num_heads, cos_d, sin_d)
    err = float(jnp.max(jnp.abs(out - ref)))
    assert err < 5e-2, f"max abs err {err}"
    print("KERNEL_OK")
</pallas_src>

<mosaic_0001>
module attributes {stable_mosaic.version = 11 : i64} {
  func.func @ln_qkv_kernel(%arg0: i32, %arg1: memref<128x64xf32, #tpu.memory_space<vmem>>, %arg2: memref<1x64xf32, #tpu.memory_space<vmem>>, %arg3: memref<1x64xf32, #tpu.memory_space<vmem>>, %arg4: memref<64x192xbf16, #tpu.memory_space<vmem>>, %arg5: memref<1x192xf32, #tpu.memory_space<vmem>>, %arg6: memref<128x192xbf16, #tpu.memory_space<vmem>>) attributes {dimension_semantics = [#tpu.dimension_semantics<parallel>], iteration_bounds = array<i64: 4>, scalar_prefetch = 0 : i64, scratch_operands = 0 : i64, tpu.core_type = #tpu.core_type<tc>, window_params = [{transform_indices = @transform_0, window_bounds = array<i64: 128, 64>}, {pipeline_mode = #tpu.pipeline_mode<synchronous>, transform_indices = @transform_1, window_bounds = array<i64: 1, 64>}, {pipeline_mode = #tpu.pipeline_mode<synchronous>, transform_indices = @transform_2, window_bounds = array<i64: 1, 64>}, {pipeline_mode = #tpu.pipeline_mode<synchronous>, transform_indices = @transform_3, window_bounds = array<i64: 64, 192>}, {pipeline_mode = #tpu.pipeline_mode<synchronous>, transform_indices = @transform_4, window_bounds = array<i64: 1, 192>}, {transform_indices = @transform_5, window_bounds = array<i64: 128, 192>}]} {
    %c0 = arith.constant 0 : index
    %c0_0 = arith.constant 0 : index
    %0 = vector.load %arg1[%c0, %c0_0] : memref<128x64xf32, #tpu.memory_space<vmem>>, vector<128x64xf32>
    %c0_1 = arith.constant 0 : index
    %c0_2 = arith.constant 0 : index
    %1 = vector.load %arg2[%c0_1, %c0_2] : memref<1x64xf32, #tpu.memory_space<vmem>>, vector<1x64xf32>
    %c0_3 = arith.constant 0 : index
    %c0_4 = arith.constant 0 : index
    %2 = vector.load %arg3[%c0_3, %c0_4] : memref<1x64xf32, #tpu.memory_space<vmem>>, vector<1x64xf32>
    %cst = arith.constant dense<0.000000e+00> : vector<128xf32>
    %3 = vector.multi_reduction <add>, %0, %cst [1] : vector<128x64xf32> to vector<128xf32>
    %4 = vector.shape_cast %3 : vector<128xf32> to vector<128x1xf32>
    %cst_5 = arith.constant 6.400000e+01 : f32
    %5 = vector.broadcast %cst_5 : f32 to vector<128x1xf32>
    %6 = arith.divf %4, %5 : vector<128x1xf32>
    %7 = vector.broadcast %6 : vector<128x1xf32> to vector<128x64xf32>
    %8 = arith.subf %0, %7 : vector<128x64xf32>
    %9 = arith.mulf %8, %8 : vector<128x64xf32>
    %cst_6 = arith.constant dense<0.000000e+00> : vector<128xf32>
    %10 = vector.multi_reduction <add>, %9, %cst_6 [1] : vector<128x64xf32> to vector<128xf32>
    %11 = vector.shape_cast %10 : vector<128xf32> to vector<128x1xf32>
    %cst_7 = arith.constant 6.400000e+01 : f32
    %12 = vector.broadcast %cst_7 : f32 to vector<128x1xf32>
    %13 = arith.divf %11, %12 : vector<128x1xf32>
    %14 = vector.broadcast %6 : vector<128x1xf32> to vector<128x64xf32>
    %15 = arith.subf %0, %14 : vector<128x64xf32>
    %cst_8 = arith.constant 9.99999974E-6 : f32
    %16 = vector.broadcast %cst_8 : f32 to vector<128x1xf32>
    %17 = arith.addf %13, %16 : vector<128x1xf32>
    %18 = math.rsqrt %17 : vector<128x1xf32>
    %19 = vector.broadcast %18 : vector<128x1xf32> to vector<128x64xf32>
    %20 = arith.mulf %15, %19 : vector<128x64xf32>
    %21 = vector.broadcast %1 : vector<1x64xf32> to vector<128x64xf32>
    %22 = arith.mulf %20, %21 : vector<128x64xf32>
    %23 = vector.broadcast %2 : vector<1x64xf32> to vector<128x64xf32>
    %24 = arith.addf %22, %23 : vector<128x64xf32>
    %25 = arith.truncf %24 : vector<128x64xf32> to vector<128x64xbf16>
    %c0_9 = arith.constant 0 : index
    %c0_10 = arith.constant 0 : index
    %26 = vector.load %arg4[%c0_9, %c0_10] : memref<64x192xbf16, #tpu.memory_space<vmem>>, vector<64x192xbf16>
    %cst_11 = arith.constant dense<0.000000e+00> : vector<128x192xf32>
    %27 = tpu.matmul %25, %26, %cst_11 {dimension_numbers = #tpu.dot_dimension_numbers<[1], [0], [0], [1], [0, 0, 1, 1], [], []>} : vector<128x64xbf16>, vector<64x192xbf16>, vector<128x192xf32> -> vector<128x192xf32>
    %c0_12 = arith.constant 0 : index
    %c0_13 = arith.constant 0 : index
    %28 = vector.load %arg5[%c0_12, %c0_13] : memref<1x192xf32, #tpu.memory_space<vmem>>, vector<1x192xf32>
    %29 = vector.broadcast %28 : vector<1x192xf32> to vector<128x192xf32>
    %30 = arith.addf %27, %29 : vector<128x192xf32>
    %31 = arith.truncf %30 : vector<128x192xf32> to vector<128x192xbf16>
    %c0_14 = arith.constant 0 : index
    %c0_15 = arith.constant 0 : index
    %32 = vector.load %arg6[%c0_14, %c0_15] : memref<128x192xbf16, #tpu.memory_space<vmem>>, vector<128x192xbf16>
    tpu.vector_store %arg6[%c0_14, %c0_15], %31 {strides = array<i32>} : memref<128x192xbf16, #tpu.memory_space<vmem>>, vector<128x192xbf16>,
    return
  }
  func.func @transform_0(%arg0: i32) -> (i32, i32) {
    %c0_i32 = arith.constant 0 : i32
    %c0_i32_0 = arith.constant 0 : i32
    return %arg0, %c0_i32 : i32, i32
  }
  func.func @transform_1(%arg0: i32) -> (i32, i32) {
    %c0_i32 = arith.constant 0 : i32
    %c0_i32_0 = arith.constant 0 : i32
    %c0_i32_1 = arith.constant 0 : i32
    return %c0_i32, %c0_i32_0 : i32, i32
  }
  func.func @transform_2(%arg0: i32) -> (i32, i32) {
    %c0_i32 = arith.constant 0 : i32
    %c0_i32_0 = arith.constant 0 : i32
    %c0_i32_1 = arith.constant 0 : i32
    return %c0_i32, %c0_i32_0 : i32, i32
  }
  func.func @transform_3(%arg0: i32) -> (i32, i32) {
    %c0_i32 = arith.constant 0 : i32
    %c0_i32_0 = arith.constant 0 : i32
    %c0_i32_1 = arith.constant 0 : i32
    return %c0_i32, %c0_i32_0 : i32, i32
  }
  func.func @transform_4(%arg0: i32) -> (i32, i32) {
    %c0_i32 = arith.constant 0 : i32
    %c0_i32_0 = arith.constant 0 : i32
    %c0_i32_1 = arith.constant 0 : i32
    return %c0_i32, %c0_i32_0 : i32, i32
  }
  func.func @transform_5(%arg0: i32) -> (i32, i32) {
    %c0_i32 = arith.constant 0 : i32
    %c0_i32_0 = arith.constant 0 : i32
    return %arg0, %c0_i32 : i32, i32
  }
}

module attributes {stable_mosaic.version = 11 : i64} {
  func.func @window_attn_kernel(%arg0: i32, %arg1: i32, %arg2: memref<1x8x1x8x192xbf16, #tpu.memory_space<vmem>>, %arg3: memref<64x64xf32, #tpu.memory_space<vmem>>, %arg4: memref<64x64xf32, #tpu.memory_space<vmem>>, %arg5: memref<1x8x1x8x64xbf16, #tpu.memory_space<vmem>>) attributes {dimension_semantics = [#tpu.dimension_semantics<parallel>, #tpu.dimension_semantics<parallel>], iteration_bounds = array<i64: 4, 2>, scalar_prefetch = 0 : i64, scratch_operands = 0 : i64, tpu.core_type = #tpu.core_type<tc>, window_params = [{transform_indices = @transform_0, window_bounds = array<i64: 1, 8, 1, 8, 192>}, {pipeline_mode = #tpu.pipeline_mode<synchronous>, transform_indices = @transform_1, window_bounds = array<i64: 64, 64>}, {pipeline_mode = #tpu.pipeline_mode<synchronous>, transform_indices = @transform_2, window_bounds = array<i64: 64, 64>}, {transform_indices = @transform_3, window_bounds = array<i64: 1, 8, 1, 8, 64>}]} {
    %c0 = arith.constant 0 : index
    %c0_0 = arith.constant 0 : index
    %c0_1 = arith.constant 0 : index
    %c0_2 = arith.constant 0 : index
    %c0_3 = arith.constant 0 : index
    %0 = vector.load %arg2[%c0, %c0_0, %c0_1, %c0_2, %c0_3] : memref<1x8x1x8x192xbf16, #tpu.memory_space<vmem>>, vector<1x8x1x8x192xbf16>
    %1 = vector.shape_cast %0 : vector<1x8x1x8x192xbf16> to vector<8x8x192xbf16>
    %2 = vector.shape_cast %1 : vector<8x8x192xbf16> to vector<64x192xbf16>
    %c0_4 = arith.constant 0 : index
    %c0_5 = arith.constant 0 : index
    %3 = vector.load %arg3[%c0_4, %c0_5] : memref<64x64xf32, #tpu.memory_space<vmem>>, vector<64x64xf32>
    %c0_6 = arith.constant 0 : index
    %c0_7 = arith.constant 0 : index
    %4 = vector.load %arg4[%c0_6, %c0_7] : memref<64x64xf32, #tpu.memory_space<vmem>>, vector<64x64xf32>
    %5 = tpu.iota {dimensions = array<i32: 1>} : vector<1x64xi32>
    %c16_i32 = arith.constant 16 : i32
    %c0_i32 = arith.constant 0 : i32
    %6 = arith.cmpi eq, %c16_i32, %c0_i32 : i32
    %c1_i32 = arith.constant 1 : i32
    %7 = arith.select %6, %c1_i32, %c16_i32 : i32
    %8 = vector.broadcast %7 : i32 to vector<1x64xi32>
    %9 = arith.remsi %5, %8 : vector<1x64xi32>
    %c0_i32_8 = arith.constant 0 : i32
    %10 = vector.broadcast %c0_i32_8 : i32 to vector<1x64xi32>
    %11 = arith.cmpi ne, %9, %10 : vector<1x64xi32>
    %c0_i32_9 = arith.constant 0 : i32
    %12 = vector.broadcast %c0_i32_9 : i32 to vector<1x64xi32>
    %13 = arith.cmpi slt, %9, %12 : vector<1x64xi32>
    %c0_i32_10 = arith.constant 0 : i32
    %14 = arith.cmpi slt, %7, %c0_i32_10 : i32
    %15 = vector.broadcast %14 : i1 to vector<1x64xi1>
    %16 = vector.broadcast %15 : vector<1x64xi1> to vector<1x64xi1>
    %17 = arith.xori %13, %16 : vector<1x64xi1>
    %18 = arith.andi %17, %11 : vector<1x64xi1>
    %19 = vector.broadcast %7 : i32 to vector<1x64xi32>
    %20 = arith.addi %9, %19 : vector<1x64xi32>
    %21 = arith.select %18, %20, %9 : vector<1x64xi1>, vector<1x64xi32>
    %c8_i32 = arith.constant 8 : i32
    %22 = vector.broadcast %c8_i32 : i32 to vector<1x64xi32>
    %23 = arith.cmpi slt, %21, %22 : vector<1x64xi32>
    %24 = vector.extract_strided_slice %2 {offsets = [0, 0], sizes = [64, 64], strides = [1, 1]} : vector<64x192xbf16> to vector<64x64xbf16>
    %25 = arith.extf %24 : vector<64x64xbf16> to vector<64x64xf32>
    %26 = vector.extract_strided_slice %25 {offsets = [0, 8], sizes = [64, 56], strides = [1, 1]} : vector<64x64xf32> to vector<64x56xf32>
    %27 = vector.extract_strided_slice %25 {offsets = [0, 0], sizes = [64, 8], strides = [1, 1]} : vector<64x64xf32> to vector<64x8xf32>
    %28 = tpu.concatenate %26, %27 in 1 : vector<64x56xf32>, vector<64x8xf32> -> vector<64x64xf32>
    %29 = vector.extract_strided_slice %25 {offsets = [0, 56], sizes = [64, 8], strides = [1, 1]} : vector<64x64xf32> to vector<64x8xf32>
    %30 = vector.extract_strided_slice %25 {offsets = [0, 0], sizes = [64, 56], strides = [1, 1]} : vector<64x64xf32> to vector<64x56xf32>
    %31 = tpu.concatenate %29, %30 in 1 : vector<64x8xf32>, vector<64x56xf32> -> vector<64x64xf32>
    %32 = arith.mulf %25, %3 : vector<64x64xf32>
    %33 = vector.shape_cast %23 : vector<1x64xi1> to vector<1x64xi1>
    %34 = vector.broadcast %33 : vector<1x64xi1> to vector<64x64xi1>
    %35 = arith.select %34, %28, %31 : vector<64x64xi1>, vector<64x64xf32>
    %36 = arith.mulf %35, %4 : vector<64x64xf32>
    %37 = arith.addf %32, %36 : vector<64x64xf32>
    %cst = arith.constant 2.500000e-01 : f32
    %38 = vector.broadcast %cst : f32 to vector<64x64xf32>
    %39 = arith.mulf %37, %38 : vector<64x64xf32>
    %40 = arith.truncf %39 : vector<64x64xf32> to vector<64x64xbf16>
    %41 = vector.extract_strided_slice %2 {offsets = [0, 64], sizes = [64, 64], strides = [1, 1]} : vector<64x192xbf16> to vector<64x64xbf16>
    %42 = arith.extf %41 : vector<64x64xbf16> to vector<64x64xf32>
    %43 = vector.extract_strided_slice %42 {offsets = [0, 8], sizes = [64, 56], strides = [1, 1]} : vector<64x64xf32> to vector<64x56xf32>
    %44 = vector.extract_strided_slice %42 {offsets = [0, 0], sizes = [64, 8], strides = [1, 1]} : vector<64x64xf32> to vector<64x8xf32>
    %45 = tpu.concatenate %43, %44 in 1 : vector<64x56xf32>, vector<64x8xf32> -> vector<64x64xf32>
    %46 = vector.extract_strided_slice %42 {offsets = [0, 56], sizes = [64, 8], strides = [1, 1]} : vector<64x64xf32> to vector<64x8xf32>
    %47 = vector.extract_strided_slice %42 {offsets = [0, 0], sizes = [64, 56], strides = [1, 1]} : vector<64x64xf32> to vector<64x56xf32>
    %48 = tpu.concatenate %46, %47 in 1 : vector<64x8xf32>, vector<64x56xf32> -> vector<64x64xf32>
    %49 = arith.mulf %42, %3 : vector<64x64xf32>
    %50 = vector.shape_cast %23 : vector<1x64xi1> to vector<1x64xi1>
    %51 = vector.broadcast %50 : vector<1x64xi1> to vector<64x64xi1>
    %52 = arith.select %51, %45, %48 : vector<64x64xi1>, vector<64x64xf32>
    %53 = arith.mulf %52, %4 : vector<64x64xf32>
    %54 = arith.addf %49, %53 : vector<64x64xf32>
    %55 = arith.truncf %54 : vector<64x64xf32> to vector<64x64xbf16>
    %56 = vector.extract_strided_slice %2 {offsets = [0, 128], sizes = [64, 64], strides = [1, 1]} : vector<64x192xbf16> to vector<64x64xbf16>
    %57 = vector.extract_strided_slice %40 {offsets = [0, 0], sizes = [64, 16], strides = [1, 1]} : vector<64x64xbf16> to vector<64x16xbf16>
    %58 = vector.extract_strided_slice %55 {offsets = [0, 0], sizes = [64, 16], strides = [1, 1]} : vector<64x64xbf16> to vector<64x16xbf16>
    "tpu.trace_start"() <{level = 10 : i32, message = "qd,kd->qk"}> : () -> ()
    %cst_11 = arith.constant dense<0.000000e+00> : vector<64x64xf32>
    %59 = tpu.matmul %57, %58, %cst_11 {dimension_numbers = #tpu.dot_dimension_numbers<[1], [1], [0], [0], [0, 0, 1, 0], [], []>} : vector<64x16xbf16>, vector<64x16xbf16>, vector<64x64xf32> -> vector<64x64xf32>
    "tpu.trace_stop"() : () -> ()
    %cst_12 = arith.constant dense<0xFF800000> : vector<64xf32>
    %60 = vector.multi_reduction <maximumf>, %59, %cst_12 [1] : vector<64x64xf32> to vector<64xf32>
    %61 = vector.shape_cast %60 : vector<64xf32> to vector<64x1xf32>
    %62 = vector.broadcast %61 : vector<64x1xf32> to vector<64x64xf32>
    %63 = arith.subf %59, %62 : vector<64x64xf32>
    %64 = math.exp %63 : vector<64x64xf32>
    %cst_13 = arith.constant dense<0.000000e+00> : vector<64xf32>
    %65 = vector.multi_reduction <add>, %64, %cst_13 [1] : vector<64x64xf32> to vector<64xf32>
    %66 = vector.shape_cast %65 : vector<64xf32> to vector<64x1xf32>
    %67 = tpu.reciprocal %66 {approx = true} : vector<64x1xf32> -> vector<64x1xf32>
    %68 = vector.broadcast %67 : vector<64x1xf32> to vector<64x64xf32>
    %69 = arith.mulf %64, %68 : vector<64x64xf32>
    %70 = arith.truncf %69 : vector<64x64xf32> to vector<64x64xbf16>
    %71 = vector.extract_strided_slice %56 {offsets = [0, 0], sizes = [64, 16], strides = [1, 1]} : vector<64x64xbf16> to vector<64x16xbf16>
    %cst_14 = arith.constant dense<0.000000e+00> : vector<64x16xf32>
    %72 = tpu.matmul %70, %71, %cst_14 {dimension_numbers = #tpu.dot_dimension_numbers<[1], [0], [0], [1], [0, 0, 1, 1], [], []>} : vector<64x64xbf16>, vector<64x16xbf16>, vector<64x16xf32> -> vector<64x16xf32>
    %73 = vector.extract_strided_slice %40 {offsets = [0, 16], sizes = [64, 16], strides = [1, 1]} : vector<64x64xbf16> to vector<64x16xbf16>
    %74 = vector.extract_strided_slice %55 {offsets = [0, 16], sizes = [64, 16], strides = [1, 1]} : vector<64x64xbf16> to vector<64x16xbf16>
    "tpu.trace_start"() <{level = 10 : i32, message = "qd,kd->qk"}> : () -> ()
    %cst_15 = arith.constant dense<0.000000e+00> : vector<64x64xf32>
    %75 = tpu.matmul %73, %74, %cst_15 {dimension_numbers = #tpu.dot_dimension_numbers<[1], [1], [0], [0], [0, 0, 1, 0], [], []>} : vector<64x16xbf16>, vector<64x16xbf16>, vector<64x64xf32> -> vector<64x64xf32>
    "tpu.trace_stop"() : () -> ()
    %cst_16 = arith.constant dense<0xFF800000> : vector<64xf32>
    %76 = vector.multi_reduction <maximumf>, %75, %cst_16 [1] : vector<64x64xf32> to vector<64xf32>
    %77 = vector.shape_cast %76 : vector<64xf32> to vector<64x1xf32>
    %78 = vector.broadcast %77 : vector<64x1xf32> to vector<64x64xf32>
    %79 = arith.subf %75, %78 : vector<64x64xf32>
    %80 = math.exp %79 : vector<64x64xf32>
    %cst_17 = arith.constant dense<0.000000e+00> : vector<64xf32>
    %81 = vector.multi_reduction <add>, %80, %cst_17 [1] : vector<64x64xf32> to vector<64xf32>
    %82 = vector.shape_cast %81 : vector<64xf32> to vector<64x1xf32>
    %83 = tpu.reciprocal %82 {approx = true} : vector<64x1xf32> -> vector<64x1xf32>
    %84 = vector.broadcast %83 : vector<64x1xf32> to vector<64x64xf32>
    %85 = arith.mulf %80, %84 : vector<64x64xf32>
    %86 = arith.truncf %85 : vector<64x64xf32> to vector<64x64xbf16>
    %87 = vector.extract_strided_slice %56 {offsets = [0, 16], sizes = [64, 16], strides = [1, 1]} : vector<64x64xbf16> to vector<64x16xbf16>
    %cst_18 = arith.constant dense<0.000000e+00> : vector<64x16xf32>
    %88 = tpu.matmul %86, %87, %cst_18 {dimension_numbers = #tpu.dot_dimension_numbers<[1], [0], [0], [1], [0, 0, 1, 1], [], []>} : vector<64x64xbf16>, vector<64x16xbf16>, vector<64x16xf32> -> vector<64x16xf32>
    %89 = vector.extract_strided_slice %40 {offsets = [0, 32], sizes = [64, 16], strides = [1, 1]} : vector<64x64xbf16> to vector<64x16xbf16>
    %90 = vector.extract_strided_slice %55 {offsets = [0, 32], sizes = [64, 16], strides = [1, 1]} : vector<64x64xbf16> to vector<64x16xbf16>
    "tpu.trace_start"() <{level = 10 : i32, message = "qd,kd->qk"}> : () -> ()
    %cst_19 = arith.constant dense<0.000000e+00> : vector<64x64xf32>
    %91 = tpu.matmul %89, %90, %cst_19 {dimension_numbers = #tpu.dot_dimension_numbers<[1], [1], [0], [0], [0, 0, 1, 0], [], []>} : vector<64x16xbf16>, vector<64x16xbf16>, vector<64x64xf32> -> vector<64x64xf32>
    "tpu.trace_stop"() : () -> ()
    %cst_20 = arith.constant dense<0xFF800000> : vector<64xf32>
    %92 = vector.multi_reduction <maximumf>, %91, %cst_20 [1] : vector<64x64xf32> to vector<64xf32>
    %93 = vector.shape_cast %92 : vector<64xf32> to vector<64x1xf32>
    %94 = vector.broadcast %93 : vector<64x1xf32> to vector<64x64xf32>
    %95 = arith.subf %91, %94 : vector<64x64xf32>
    %96 = math.exp %95 : vector<64x64xf32>
    %cst_21 = arith.constant dense<0.000000e+00> : vector<64xf32>
    %97 = vector.multi_reduction <add>, %96, %cst_21 [1] : vector<64x64xf32> to vector<64xf32>
    %98 = vector.shape_cast %97 : vector<64xf32> to vector<64x1xf32>
    %99 = tpu.reciprocal %98 {approx = true} : vector<64x1xf32> -> vector<64x1xf32>
    %100 = vector.broadcast %99 : vector<64x1xf32> to vector<64x64xf32>
    %101 = arith.mulf %96, %100 : vector<64x64xf32>
    %102 = arith.truncf %101 : vector<64x64xf32> to vector<64x64xbf16>
    %103 = vector.extract_strided_slice %56 {offsets = [0, 32], sizes = [64, 16], strides = [1, 1]} : vector<64x64xbf16> to vector<64x16xbf16>
    %cst_22 = arith.constant dense<0.000000e+00> : vector<64x16xf32>
    %104 = tpu.matmul %102, %103, %cst_22 {dimension_numbers = #tpu.dot_dimension_numbers<[1], [0], [0], [1], [0, 0, 1, 1], [], []>} : vector<64x64xbf16>, vector<64x16xbf16>, vector<64x16xf32> -> vector<64x16xf32>
    %105 = vector.extract_strided_slice %40 {offsets = [0, 48], sizes = [64, 16], strides = [1, 1]} : vector<64x64xbf16> to vector<64x16xbf16>
    %106 = vector.extract_strided_slice %55 {offsets = [0, 48], sizes = [64, 16], strides = [1, 1]} : vector<64x64xbf16> to vector<64x16xbf16>
    "tpu.trace_start"() <{level = 10 : i32, message = "qd,kd->qk"}> : () -> ()
    %cst_23 = arith.constant dense<0.000000e+00> : vector<64x64xf32>
    %107 = tpu.matmul %105, %106, %cst_23 {dimension_numbers = #tpu.dot_dimension_numbers<[1], [1], [0], [0], [0, 0, 1, 0], [], []>} : vector<64x16xbf16>, vector<64x16xbf16>, vector<64x64xf32> -> vector<64x64xf32>
    "tpu.trace_stop"() : () -> ()
    %cst_24 = arith.constant dense<0xFF800000> : vector<64xf32>
    %108 = vector.multi_reduction <maximumf>, %107, %cst_24 [1] : vector<64x64xf32> to vector<64xf32>
    %109 = vector.shape_cast %108 : vector<64xf32> to vector<64x1xf32>
    %110 = vector.broadcast %109 : vector<64x1xf32> to vector<64x64xf32>
    %111 = arith.subf %107, %110 : vector<64x64xf32>
    %112 = math.exp %111 : vector<64x64xf32>
    %cst_25 = arith.constant dense<0.000000e+00> : vector<64xf32>
    %113 = vector.multi_reduction <add>, %112, %cst_25 [1] : vector<64x64xf32> to vector<64xf32>
    %114 = vector.shape_cast %113 : vector<64xf32> to vector<64x1xf32>
    %115 = tpu.reciprocal %114 {approx = true} : vector<64x1xf32> -> vector<64x1xf32>
    %116 = vector.broadcast %115 : vector<64x1xf32> to vector<64x64xf32>
    %117 = arith.mulf %112, %116 : vector<64x64xf32>
    %118 = arith.truncf %117 : vector<64x64xf32> to vector<64x64xbf16>
    %119 = vector.extract_strided_slice %56 {offsets = [0, 48], sizes = [64, 16], strides = [1, 1]} : vector<64x64xbf16> to vector<64x16xbf16>
    %cst_26 = arith.constant dense<0.000000e+00> : vector<64x16xf32>
    %120 = tpu.matmul %118, %119, %cst_26 {dimension_numbers = #tpu.dot_dimension_numbers<[1], [0], [0], [1], [0, 0, 1, 1], [], []>} : vector<64x64xbf16>, vector<64x16xbf16>, vector<64x16xf32> -> vector<64x16xf32>
    %121 = tpu.concatenate %72, %88, %104, %120 in 1 : vector<64x16xf32>, vector<64x16xf32>, vector<64x16xf32>, vector<64x16xf32> -> vector<64x64xf32>
    %122 = arith.truncf %121 : vector<64x64xf32> to vector<64x64xbf16>
    %123 = vector.shape_cast %122 : vector<64x64xbf16> to vector<8x8x64xbf16>
    %c0_27 = arith.constant 0 : index
    %c0_28 = arith.constant 0 : index
    %c0_29 = arith.constant 0 : index
    %c0_30 = arith.constant 0 : index
    %c0_31 = arith.constant 0 : index
    %124 = vector.load %arg5[%c0_27, %c0_28, %c0_29, %c0_30, %c0_31] : memref<1x8x1x8x64xbf16, #tpu.memory_space<vmem>>, vector<1x8x1x8x64xbf16>
    %125 = vector.shape_cast %124 : vector<1x8x1x8x64xbf16> to vector<8x8x64xbf16>
    %126 = vector.shape_cast %123 : vector<8x8x64xbf16> to vector<1x8x1x8x64xbf16>
    tpu.vector_store %arg5[%c0_27, %c0_28, %c0_29, %c0_30, %c0_31], %126 {strides = array<i32>} : memref<1x8x1x8x64xbf16, #tpu.memory_space<vmem>>, vector<1x8x1x8x64xbf16>,
    return
  }
  func.func @transform_0(%arg0: i32, %arg1: i32) -> (i32, i32, i32, i32, i32) {
    %c0_i32 = arith.constant 0 : i32
    %c0_i32_0 = arith.constant 0 : i32
    %c0_i32_1 = arith.constant 0 : i32
    %c0_i32_2 = arith.constant 0 : i32
    return %arg0, %c0_i32, %arg1, %c0_i32_0, %c0_i32_1 : i32, i32, i32, i32, i32
  }
  func.func @transform_1(%arg0: i32, %arg1: i32) -> (i32, i32) {
    %c0_i32 = arith.constant 0 : i32
    %c0_i32_0 = arith.constant 0 : i32
    %c0_i32_1 = arith.constant 0 : i32
    return %c0_i32, %c0_i32_0 : i32, i32
  }
  func.func @transform_2(%arg0: i32, %arg1: i32) -> (i32, i32) {
    %c0_i32 = arith.constant 0 : i32
    %c0_i32_0 = arith.constant 0 : i32
    %c0_i32_1 = arith.constant 0 : i32
    return %c0_i32, %c0_i32_0 : i32, i32
  }
  func.func @transform_3(%arg0: i32, %arg1: i32) -> (i32, i32, i32, i32, i32) {
    %c0_i32 = arith.constant 0 : i32
    %c0_i32_0 = arith.constant 0 : i32
    %c0_i32_1 = arith.constant 0 : i32
    %c0_i32_2 = arith.constant 0 : i32
    return %arg0, %c0_i32, %arg1, %c0_i32_0, %c0_i32_1 : i32, i32, i32, i32, i32
  }
}

module attributes {stable_mosaic.version = 11 : i64} {
  func.func @proj_mlp_kernel(%arg0: i32, %arg1: memref<128x64xf32, #tpu.memory_space<vmem>>, %arg2: memref<128x64xbf16, #tpu.memory_space<vmem>>, %arg3: memref<64x64xbf16, #tpu.memory_space<vmem>>, %arg4: memref<1x64xf32, #tpu.memory_space<vmem>>, %arg5: memref<1x64xf32, #tpu.memory_space<vmem>>, %arg6: memref<1x64xf32, #tpu.memory_space<vmem>>, %arg7: memref<64x256xbf16, #tpu.memory_space<vmem>>, %arg8: memref<1x256xf32, #tpu.memory_space<vmem>>, %arg9: memref<256x64xbf16, #tpu.memory_space<vmem>>, %arg10: memref<1x64xf32, #tpu.memory_space<vmem>>, %arg11: memref<128x64xf32, #tpu.memory_space<vmem>>) attributes {dimension_semantics = [#tpu.dimension_semantics<parallel>], iteration_bounds = array<i64: 4>, scalar_prefetch = 0 : i64, scratch_operands = 0 : i64, tpu.core_type = #tpu.core_type<tc>, window_params = [{transform_indices = @transform_0, window_bounds = array<i64: 128, 64>}, {transform_indices = @transform_1, window_bounds = array<i64: 128, 64>}, {pipeline_mode = #tpu.pipeline_mode<synchronous>, transform_indices = @transform_2, window_bounds = array<i64: 64, 64>}, {pipeline_mode = #tpu.pipeline_mode<synchronous>, transform_indices = @transform_3, window_bounds = array<i64: 1, 64>}, {pipeline_mode = #tpu.pipeline_mode<synchronous>, transform_indices = @transform_4, window_bounds = array<i64: 1, 64>}, {pipeline_mode = #tpu.pipeline_mode<synchronous>, transform_indices = @transform_5, window_bounds = array<i64: 1, 64>}, {pipeline_mode = #tpu.pipeline_mode<synchronous>, transform_indices = @transform_6, window_bounds = array<i64: 64, 256>}, {pipeline_mode = #tpu.pipeline_mode<synchronous>, transform_indices = @transform_7, window_bounds = array<i64: 1, 256>}, {pipeline_mode = #tpu.pipeline_mode<synchronous>, transform_indices = @transform_8, window_bounds = array<i64: 256, 64>}, {pipeline_mode = #tpu.pipeline_mode<synchronous>, transform_indices = @transform_9, window_bounds = array<i64: 1, 64>}, {transform_indices = @transform_10, window_bounds = array<i64: 128, 64>}]} {
    %c0 = arith.constant 0 : index
    %c0_0 = arith.constant 0 : index
    %0 = vector.load %arg1[%c0, %c0_0] : memref<128x64xf32, #tpu.memory_space<vmem>>, vector<128x64xf32>
    %c0_1 = arith.constant 0 : index
    %c0_2 = arith.constant 0 : index
    %1 = vector.load %arg2[%c0_1, %c0_2] : memref<128x64xbf16, #tpu.memory_space<vmem>>, vector<128x64xbf16>
    %c0_3 = arith.constant 0 : index
    %c0_4 = arith.constant 0 : index
    %2 = vector.load %arg3[%c0_3, %c0_4] : memref<64x64xbf16, #tpu.memory_space<vmem>>, vector<64x64xbf16>
    %cst = arith.constant dense<0.000000e+00> : vector<128x64xf32>
    %3 = tpu.matmul %1, %2, %cst {dimension_numbers = #tpu.dot_dimension_numbers<[1], [0], [0], [1], [0, 0, 1, 1], [], []>} : vector<128x64xbf16>, vector<64x64xbf16>, vector<128x64xf32> -> vector<128x64xf32>
    %4 = arith.addf %0, %3 : vector<128x64xf32>
    %c0_5 = arith.constant 0 : index
    %c0_6 = arith.constant 0 : index
    %5 = vector.load %arg4[%c0_5, %c0_6] : memref<1x64xf32, #tpu.memory_space<vmem>>, vector<1x64xf32>
    %6 = vector.broadcast %5 : vector<1x64xf32> to vector<128x64xf32>
    %7 = arith.addf %4, %6 : vector<128x64xf32>
    %c0_7 = arith.constant 0 : index
    %c0_8 = arith.constant 0 : index
    %8 = vector.load %arg5[%c0_7, %c0_8] : memref<1x64xf32, #tpu.memory_space<vmem>>, vector<1x64xf32>
    %c0_9 = arith.constant 0 : index
    %c0_10 = arith.constant 0 : index
    %9 = vector.load %arg6[%c0_9, %c0_10] : memref<1x64xf32, #tpu.memory_space<vmem>>, vector<1x64xf32>
    %cst_11 = arith.constant dense<0.000000e+00> : vector<128xf32>
    %10 = vector.multi_reduction <add>, %7, %cst_11 [1] : vector<128x64xf32> to vector<128xf32>
    %11 = vector.shape_cast %10 : vector<128xf32> to vector<128x1xf32>
    %cst_12 = arith.constant 6.400000e+01 : f32
    %12 = vector.broadcast %cst_12 : f32 to vector<128x1xf32>
    %13 = arith.divf %11, %12 : vector<128x1xf32>
    %14 = vector.broadcast %13 : vector<128x1xf32> to vector<128x64xf32>
    %15 = arith.subf %7, %14 : vector<128x64xf32>
    %16 = arith.mulf %15, %15 : vector<128x64xf32>
    %cst_13 = arith.constant dense<0.000000e+00> : vector<128xf32>
    %17 = vector.multi_reduction <add>, %16, %cst_13 [1] : vector<128x64xf32> to vector<128xf32>
    %18 = vector.shape_cast %17 : vector<128xf32> to vector<128x1xf32>
    %cst_14 = arith.constant 6.400000e+01 : f32
    %19 = vector.broadcast %cst_14 : f32 to vector<128x1xf32>
    %20 = arith.divf %18, %19 : vector<128x1xf32>
    %21 = vector.broadcast %13 : vector<128x1xf32> to vector<128x64xf32>
    %22 = arith.subf %7, %21 : vector<128x64xf32>
    %cst_15 = arith.constant 9.99999974E-6 : f32
    %23 = vector.broadcast %cst_15 : f32 to vector<128x1xf32>
    %24 = arith.addf %20, %23 : vector<128x1xf32>
    %25 = math.rsqrt %24 : vector<128x1xf32>
    %26 = vector.broadcast %25 : vector<128x1xf32> to vector<128x64xf32>
    %27 = arith.mulf %22, %26 : vector<128x64xf32>
    %28 = vector.broadcast %8 : vector<1x64xf32> to vector<128x64xf32>
    %29 = arith.mulf %27, %28 : vector<128x64xf32>
    %30 = vector.broadcast %9 : vector<1x64xf32> to vector<128x64xf32>
    %31 = arith.addf %29, %30 : vector<128x64xf32>
    %32 = arith.truncf %31 : vector<128x64xf32> to vector<128x64xbf16>
    %c0_16 = arith.constant 0 : index
    %c0_17 = arith.constant 0 : index
    %33 = vector.load %arg7[%c0_16, %c0_17] : memref<64x256xbf16, #tpu.memory_space<vmem>>, vector<64x256xbf16>
    %cst_18 = arith.constant dense<0.000000e+00> : vector<128x256xf32>
    %34 = tpu.matmul %32, %33, %cst_18 {dimension_numbers = #tpu.dot_dimension_numbers<[1], [0], [0], [1], [0, 0, 1, 1], [], []>} : vector<128x64xbf16>, vector<64x256xbf16>, vector<128x256xf32> -> vector<128x256xf32>
    %c0_19 = arith.constant 0 : index
    %c0_20 = arith.constant 0 : index
    %35 = vector.load %arg8[%c0_19, %c0_20] : memref<1x256xf32, #tpu.memory_space<vmem>>, vector<1x256xf32>
    %36 = vector.broadcast %35 : vector<1x256xf32> to vector<128x256xf32>
    %37 = arith.addf %34, %36 : vector<128x256xf32>
    %38 = arith.mulf %37, %37 : vector<128x256xf32>
    %39 = arith.mulf %37, %38 : vector<128x256xf32>
    %cst_21 = arith.constant 4.471500e-02 : f32
    %40 = vector.broadcast %cst_21 : f32 to vector<128x256xf32>
    %41 = arith.mulf %40, %39 : vector<128x256xf32>
    %42 = arith.addf %37, %41 : vector<128x256xf32>
    %cst_22 = arith.constant 0.797884583 : f32
    %43 = vector.broadcast %cst_22 : f32 to vector<128x256xf32>
    %44 = arith.mulf %43, %42 : vector<128x256xf32>
    %45 = math.tanh %44 : vector<128x256xf32>
    %cst_23 = arith.constant 1.000000e+00 : f32
    %46 = vector.broadcast %cst_23 : f32 to vector<128x256xf32>
    %47 = arith.addf %46, %45 : vector<128x256xf32>
    %cst_24 = arith.constant 5.000000e-01 : f32
    %48 = vector.broadcast %cst_24 : f32 to vector<128x256xf32>
    %49 = arith.mulf %48, %47 : vector<128x256xf32>
    %50 = arith.mulf %37, %49 : vector<128x256xf32>
    %51 = arith.truncf %50 : vector<128x256xf32> to vector<128x256xbf16>
    %c0_25 = arith.constant 0 : index
    %c0_26 = arith.constant 0 : index
    %52 = vector.load %arg9[%c0_25, %c0_26] : memref<256x64xbf16, #tpu.memory_space<vmem>>, vector<256x64xbf16>
    %cst_27 = arith.constant dense<0.000000e+00> : vector<128x64xf32>
    %53 = tpu.matmul %51, %52, %cst_27 {dimension_numbers = #tpu.dot_dimension_numbers<[1], [0], [0], [1], [0, 0, 1, 1], [], []>} : vector<128x256xbf16>, vector<256x64xbf16>, vector<128x64xf32> -> vector<128x64xf32>
    %c0_28 = arith.constant 0 : index
    %c0_29 = arith.constant 0 : index
    %54 = vector.load %arg10[%c0_28, %c0_29] : memref<1x64xf32, #tpu.memory_space<vmem>>, vector<1x64xf32>
    %55 = vector.broadcast %54 : vector<1x64xf32> to vector<128x64xf32>
    %56 = arith.addf %53, %55 : vector<128x64xf32>
    %57 = arith.addf %7, %56 : vector<128x64xf32>
    %c0_30 = arith.constant 0 : index
    %c0_31 = arith.constant 0 : index
    %58 = vector.load %arg11[%c0_30, %c0_31] : memref<128x64xf32, #tpu.memory_space<vmem>>, vector<128x64xf32>
    tpu.vector_store %arg11[%c0_30, %c0_31], %57 {strides = array<i32>} : memref<128x64xf32, #tpu.memory_space<vmem>>, vector<128x64xf32>,
    return
  }
  func.func @transform_0(%arg0: i32) -> (i32, i32) {
    %c0_i32 = arith.constant 0 : i32
    %c0_i32_0 = arith.constant 0 : i32
    return %arg0, %c0_i32 : i32, i32
  }
  func.func @transform_1(%arg0: i32) -> (i32, i32) {
    %c0_i32 = arith.constant 0 : i32
    %c0_i32_0 = arith.constant 0 : i32
    return %arg0, %c0_i32 : i32, i32
  }
  func.func @transform_2(%arg0: i32) -> (i32, i32) {
    %c0_i32 = arith.constant 0 : i32
    %c0_i32_0 = arith.constant 0 : i32
    %c0_i32_1 = arith.constant 0 : i32
    return %c0_i32, %c0_i32_0 : i32, i32
  }
  func.func @transform_3(%arg0: i32) -> (i32, i32) {
    %c0_i32 = arith.constant 0 : i32
    %c0_i32_0 = arith.constant 0 : i32
    %c0_i32_1 = arith.constant 0 : i32
    return %c0_i32, %c0_i32_0 : i32, i32
  }
  func.func @transform_4(%arg0: i32) -> (i32, i32) {
    %c0_i32 = arith.constant 0 : i32
    %c0_i32_0 = arith.constant 0 : i32
    %c0_i32_1 = arith.constant 0 : i32
    return %c0_i32, %c0_i32_0 : i32, i32
  }
  func.func @transform_5(%arg0: i32) -> (i32, i32) {
    %c0_i32 = arith.constant 0 : i32
    %c0_i32_0 = arith.constant 0 : i32
    %c0_i32_1 = arith.constant 0 : i32
    return %c0_i32, %c0_i32_0 : i32, i32
  }
  func.func @transform_6(%arg0: i32) -> (i32, i32) {
    %c0_i32 = arith.constant 0 : i32
    %c0_i32_0 = arith.constant 0 : i32
    %c0_i32_1 = arith.constant 0 : i32
    return %c0_i32, %c0_i32_0 : i32, i32
  }
  func.func @transform_7(%arg0: i32) -> (i32, i32) {
    %c0_i32 = arith.constant 0 : i32
    %c0_i32_0 = arith.constant 0 : i32
    %c0_i32_1 = arith.constant 0 : i32
    return %c0_i32, %c0_i32_0 : i32, i32
  }
  func.func @transform_8(%arg0: i32) -> (i32, i32) {
    %c0_i32 = arith.constant 0 : i32
    %c0_i32_0 = arith.constant 0 : i32
    %c0_i32_1 = arith.constant 0 : i32
    return %c0_i32, %c0_i32_0 : i32, i32
  }
  func.func @transform_9(%arg0: i32) -> (i32, i32) {
    %c0_i32 = arith.constant 0 : i32
    %c0_i32_0 = arith.constant 0 : i32
    %c0_i32_1 = arith.constant 0 : i32
    return %c0_i32, %c0_i32_0 : i32, i32
  }
  func.func @transform_10(%arg0: i32) -> (i32, i32) {
    %c0_i32 = arith.constant 0 : i32
    %c0_i32_0 = arith.constant 0 : i32
    return %arg0, %c0_i32 : i32, i32
  }
}

</mosaic_0001>

<bundles_post_ra>
// kernel: block_forward.3
= control target key start
LH: loop header
LB: loop body
LE: loop exit
PB: predicated region body
PF: predicated region fallthrough
CT: control target
= control target key end

     0   :  { %s1044_s18 = smov 0   ;;  %s1413_s0 = inlined_call_operand.vmem [shape: f32[512,64], index: 0, kind: input, shape index: {}]   ;;  %s1414_s1 = inlined_call_operand.vmem [shape: f32[1,64], index: 1, kind: input, shape index: {}]   ;;  %s1415_s2 = inlined_call_operand.vmem [shape: f32[1,64], index: 2, kind: input, shape index: {}]   ;;  %s1416_s3 = inlined_call_operand.vmem [shape: bf16[64,192], index: 3, kind: input, shape index: {}]   ;;  %s1417_s4 = inlined_call_operand.vmem [shape: f32[1,192], index: 4, kind: input, shape index: {}]   ;;  %s1418_s5 = inlined_call_operand.vmem [shape: bf16[512,192], index: 5, kind: output, shape index: {}]  }
   0x1 LB: > { %s881_s19 = sadd.s32 4294967295, %s1011_s18   ;;  %p885_p0 = scmp.ge.s32.totalorder %s1011_s18, 1  ;;  %s1011_s18 = sphi %s1044_s18, %s15_s18  }
   0x2   : > { %p188_p1 = scmp.lt.s32.totalorder %s1011_s18, 5 }
   0x4   : > { %p189_p2 = pnand %p885_p0, %p188_p1 }
   0x5   : > { %s886_s20 = sshll.u32 (!%p189_p2), %s881_s19, 4  ;;  %vm249_vm0 = vcmask (!%p189_p2), 523264   ;;  %vm804_vm1 = vcmask (!%p189_p2), 1043456   ;;  %vm805_vm2 = vcmask (!%p189_p2), 523268  }
   0x6   : > { %192 = sbr.rel (%p189_p2) target bundleno = 584 (0x248), region = 40  ;;  %p218_p3 = scmp.lt.s32.totalorder (!%p189_p2), %s886_s20, 63  ;;  %vm1328_vm3 = vmor (!%p189_p2), %vm805_vm2, %vm804_vm1 }
   0xd   : > { %s1422_s20 = smov (!%p218_p3, %s886_s20), 63 }
   0xe   : > { %s887_s21 = sshll.u32 %s1422_s20, 3 }
   0xf   : > { %s1060_s24 = scalar_lea.vmem %s1413_s0, %s887_s21  ;;  %s1326_s27 = scalar_lea.vmem %s1418_s5, %s887_s21 }
  0x10   : > { %v231_v0 = vld [vmem:[%s1060_s24] sm:$0xff]  ;;  %v232_v2 = vld [vmem:[%s1060_s24 + $0x8] sm:$0xff]  ;;  %v233_v8 = vld [vmem:[%s1060_s24 + $0x10] sm:$0xff] }
  0x11   : > { %v239_v1 = vld [vmem:[%s1060_s24 + $0x40] sm:$0xff]  ;;  %v250_v3 = vsel %vm249_vm0, %v231_v0, 0.0  ;;  %v240_v5 = vld [vmem:[%s1060_s24 + $0x48] sm:$0xff]  ;;  %v253_v6 = vsel %vm249_vm0, %v232_v2, 0.0  ;;  %v234_v9 = vld [vmem:[%s1060_s24 + $0x18] sm:$0xff]  ;;  %v256_v10 = vsel %vm249_vm0, %v233_v8, 0.0 }
  0x12   : > { %v274_v4 = vsel %vm249_vm0, %v239_v1, 0.0  ;;  %251 = vadd.xlane.f32.xlu0 %v250_v3  ;;  %v277_v7 = vsel %vm249_vm0, %v240_v5, 0.0  ;;  %v259_v11 = vsel %vm249_vm0, %v234_v9, 0.0  ;;  %v1075_v12 = vld [vmem:[%s1060_s24 + $0x50] sm:$0xff]  ;;  %v1078_v13 = vld [vmem:[%s1060_s24 + $0x58] sm:$0xff]  ;;  %v1085_v16 = vld [vmem:[%s1060_s24 + $0x20] sm:$0xff] }
  0x13   : > { %275 = vadd.xlane.f32.xlu1 %v274_v4  ;;  %v280_v14 = vsel %vm249_vm0, %v1075_v12, 0.0  ;;  %v283_v15 = vsel %vm249_vm0, %v1078_v13, 0.0  ;;  %v1088_v17 = vld [vmem:[%s1060_s24 + $0x28] sm:$0xff]  ;;  %v262_v18 = vsel %vm249_vm0, %v1085_v16, 0.0  ;;  %v1095_v20 = vld [vmem:[%s1060_s24 + $0x60] sm:$0xff]  ;;  %v1105_v24 = vld [vmem:[%s1060_s24 + $0x30] sm:$0xff] }
  0x14   : > { %v265_v19 = vsel %vm249_vm0, %v1088_v17, 0.0  ;;  %v1098_v21 = vld [vmem:[%s1060_s24 + $0x68] sm:$0xff]  ;;  %v286_v22 = vsel %vm249_vm0, %v1095_v20, 0.0  ;;  %v1108_v25 = vld [vmem:[%s1060_s24 + $0x38] sm:$0xff]  ;;  %v268_v26 = vsel %vm249_vm0, %v1105_v24, 0.0  ;;  %v1115_v28 = vld [vmem:[%s1060_s24 + $0x70] sm:$0xff] }
  0x15   : > { %v289_v23 = vsel %vm249_vm0, %v1098_v21, 0.0  ;;  %v271_v27 = vsel %vm249_vm0, %v1108_v25, 0.0  ;;  %v1118_v29 = vld [vmem:[%s1060_s24 + $0x78] sm:$0xff]  ;;  %v292_v30 = vsel %vm249_vm0, %v1115_v28, 0.0 }
  0x16   : > { %254 = vadd.xlane.f32.xlu0 %v253_v6  ;;  %v295_v31 = vsel %vm249_vm0, %v1118_v29, 0.0 }
  0x17   : > { %278 = vadd.xlane.f32.xlu1 %v277_v7 }
  0x1a   : > { %257 = vadd.xlane.f32.xlu0 %v256_v10 }
  0x1b   : > { %260 = vadd.xlane.f32.xlu1 %v259_v11 }
  0x1e   : > { %281 = vadd.xlane.f32.xlu0 %v280_v14 }
  0x1f   : > { %284 = vadd.xlane.f32.xlu1 %v283_v15 }
  0x22   : > { %263 = vadd.xlane.f32.xlu0 %v262_v18 }
  0x23   : > { %266 = vadd.xlane.f32.xlu1 %v265_v19 }
  0x26   : > { %287 = vadd.xlane.f32.xlu0 %v286_v22 }
  0x27   : > { %290 = vadd.xlane.f32.xlu1 %v289_v23 }
  0x2a   : > { %269 = vadd.xlane.f32.xlu0 %v268_v26 }
  0x2b   : > { %272 = vadd.xlane.f32.xlu1 %v271_v27 }
  0x2e   : > { %293 = vadd.xlane.f32.xlu0 %v292_v30 }
  0x2f   : > { %296 = vadd.xlane.f32.xlu1 %v295_v31 }
  0x9f   : > { %v252_v32 = vpop.xlane.xlu0 %251 }
  0xa0   : > { %v276_v33 = vpop.xlane.xlu1 %275  ;;  %v299_v34 = vmul.f32 0.015625, %v252_v32 }
  0xa1   : > { %v307_v35 = vmul.f32 0.015625, %v276_v33 }
  0xa2   : > { %v1124_v36 = vsub.f32 %v231_v0, %v299_v34 }
  0xa3   : > { %v1126_v37 = vsub.f32 %v239_v1, %v307_v35  ;;  %v255_v38 = vpop.xlane.xlu0 %254 }
  0xa4   : > { %v279_v39 = vpop.xlane.xlu1 %278  ;;  %v300_v40 = vmul.f32 0.015625, %v255_v38  ;;  %v331_v42 = vmul.f32 %v1124_v36, %v1124_v36 }
  0xa5   : > { %v308_v41 = vmul.f32 0.015625, %v279_v39  ;;  %v339_v43 = vmul.f32 %v1126_v37, %v1126_v37 }
  0xa6   : > { %v1132_v44 = vsub.f32 %v232_v2, %v300_v40  ;;  %v347_v46 = vsel %vm249_vm0, %v331_v42, 0.0 }
  0xa7   : > { %v1134_v45 = vsub.f32 %v240_v5, %v308_v41  ;;  %348 = vadd.xlane.f32.xlu0 %v347_v46  ;;  %v258_v47 = vpop.xlane.xlu0 %257  ;;  %v371_v49 = vsel %vm249_vm0, %v339_v43, 0.0 }
  0xa8   : > { %v261_v48 = vpop.xlane.xlu1 %260  ;;  %v301_v50 = vmul.f32 0.015625, %v258_v47  ;;  %v332_v52 = vmul.f32 %v1132_v44, %v1132_v44 }
  0xa9   : > { %v302_v51 = vmul.f32 0.015625, %v261_v48  ;;  %v340_v53 = vmul.f32 %v1134_v45, %v1134_v45 }
  0xaa   : > { %v1142_v54 = vsub.f32 %v233_v8, %v301_v50  ;;  %v350_v56 = vsel %vm249_vm0, %v332_v52, 0.0 }
  0xab   : > { %v1144_v55 = vsub.f32 %v234_v9, %v302_v51  ;;  %372 = vadd.xlane.f32.xlu0 %v371_v49  ;;  %351 = vadd.xlane.f32.xlu1 %v350_v56  ;;  %v282_v57 = vpop.xlane.xlu0 %281  ;;  %v374_v59 = vsel %vm249_vm0, %v340_v53, 0.0  ;;  %v961_v49 = vld [vmem:[%s1416_s3 + $0x4] ss:$8 sps:$4 sm:$0xff]   ;;  %v964_v53 = vld [vmem:[%s1416_s3 + $0x14] ss:$8 sps:$4 sm:$0xff]  }
  0xac   : > { %v285_v58 = vpop.xlane.xlu1 %284  ;;  %v309_v60 = vmul.f32 0.015625, %v282_v57  ;;  %v333_v62 = vmul.f32 %v1142_v54, %v1142_v54  ;;  %595 = vmatprep.subr.bf16.mxu0 %v961_v49  ;;  %944 = vmatprep.subr.bf16.mxu1 %v961_v49  ;;  %v966_v57 = vld [vmem:[%s1416_s3 + $0x10] ss:$8 sps:$4 sm:$0xff]  }
  0xad   : > { %v310_v61 = vmul.f32 0.015625, %v285_v58  ;;  %v334_v63 = vmul.f32 %v1144_v55, %v1144_v55  ;;  %v967_v58 = vld [vmem:[%s1416_s3 + $0x24] ss:$8 sps:$4 sm:$0xff]  }
  0xae   : > { %v1153_v0 = vsub.f32 %v1075_v12, %v309_v60  ;;  %v353_v2 = vsel %vm249_vm0, %v333_v62, 0.0  ;;  %v970_v60 = vld [vmem:[%s1416_s3 + $0x34] ss:$8 sps:$4 sm:$0xff]   ;;  %v1013_v62 = vmov 0  }
  0xaf   : > { %v1156_v1 = vsub.f32 %v1078_v13, %v310_v61  ;;  %375 = vadd.xlane.f32.xlu1 %v374_v59  ;;  %354 = vadd.xlane.f32.xlu0 %v353_v2  ;;  %v264_v3 = vpop.xlane.xlu0 %263  ;;  %v356_v5 = vsel %vm249_vm0, %v334_v63, 0.0  ;;  %v969_v59 = vld [vmem:[%s1416_s3 + $0x20] ss:$8 sps:$4 sm:$0xff]   ;;  %v972_v61 = vld [vmem:[%s1416_s3 + $0x30] ss:$8 sps:$4 sm:$0xff]  }
  0xb0   : > { %v267_v4 = vpop.xlane.xlu1 %266  ;;  %v303_v6 = vmul.f32 0.015625, %v264_v3  ;;  %v341_v8 = vmul.f32 %v1153_v0, %v1153_v0  ;;  %627 = vmatprep.mubr.bf16.mxu0 %v1013_v62  ;;  %667 = vmatprep.mubr.bf16.mxu1 %v1013_v62 }
  0xb1   : > { %v304_v7 = vmul.f32 0.015625, %v267_v4  ;;  %v342_v9 = vmul.f32 %v1156_v1, %v1156_v1 }
  0xb2   : > { %v1165_v10 = vsub.f32 %v1085_v16, %v303_v6  ;;  %v377_v12 = vsel %vm249_vm0, %v341_v8, 0.0 }
  0xb3   : > { %v1168_v11 = vsub.f32 %v1088_v17, %v304_v7  ;;  %357 = vadd.xlane.f32.xlu1 %v356_v5  ;;  %378 = vadd.xlane.f32.xlu0 %v377_v12  ;;  %v288_v13 = vpop.xlane.xlu0 %287  ;;  %v380_v15 = vsel %vm249_vm0, %v342_v9, 0.0 }
  0xb4   : > { %v291_v14 = vpop.xlane.xlu1 %290  ;;  %v311_v18 = vmul.f32 0.015625, %v288_v13  ;;  %v335_v22 = vmul.f32 %v1165_v10, %v1165_v10 }
  0xb5   : > { %v312_v19 = vmul.f32 0.015625, %v291_v14  ;;  %v336_v16 = vmul.f32 %v1168_v11, %v1168_v11 }
  0xb6   : > { %v1177_v23 = vsub.f32 %v1095_v20, %v311_v18  ;;  %v359_v26 = vsel %vm249_vm0, %v335_v22, 0.0 }
  0xb7   : > { %v1180_v17 = vsub.f32 %v1098_v21, %v312_v19  ;;  %381 = vadd.xlane.f32.xlu1 %v380_v15  ;;  %360 = vadd.xlane.f32.xlu0 %v359_v26  ;;  %v270_v27 = vpop.xlane.xlu0 %269  ;;  %v362_v31 = vsel %vm249_vm0, %v336_v16, 0.0 }
  0xb8   : > { %v273_v30 = vpop.xlane.xlu1 %272  ;;  %v305_v32 = vmul.f32 0.015625, %v270_v27  ;;  %v343_v34 = vmul.f32 %v1177_v23, %v1177_v23 }
  0xb9   : > { %v306_v33 = vmul.f32 0.015625, %v273_v30  ;;  %v344_v20 = vmul.f32 %v1180_v17, %v1180_v17 }
  0xba   : > { %v1189_v35 = vsub.f32 %v1105_v24, %v305_v32  ;;  %v383_v38 = vsel %vm249_vm0, %v343_v34, 0.0 }
  0xbb   : > { %v1192_v21 = vsub.f32 %v1108_v25, %v306_v33  ;;  %363 = vadd.xlane.f32.xlu1 %v362_v31  ;;  %384 = vadd.xlane.f32.xlu0 %v383_v38  ;;  %v294_v39 = vpop.xlane.xlu0 %293  ;;  %v386_v41 = vsel %vm249_vm0, %v344_v20, 0.0 }
  0xbc   : > { %v297_v40 = vpop.xlane.xlu1 %296  ;;  %v313_v42 = vmul.f32 0.015625, %v294_v39  ;;  %v337_v46 = vmul.f32 %v1189_v35, %v1189_v35 }
  0xbd   : > { %v314_v43 = vmul.f32 0.015625, %v297_v40  ;;  %v338_v24 = vmul.f32 %v1192_v21, %v1192_v21  ;;  %v1244_v40 = vld [vmem:[%s1414_s1] ss:$0 sm:$0xff] }
  0xbe   : > { %v1201_v47 = vsub.f32 %v1115_v28, %v313_v42  ;;  %v365_v48 = vsel %vm249_vm0, %v337_v46, 0.0 }
  0xbf   : > { %v1204_v25 = vsub.f32 %v1118_v29, %v314_v43  ;;  %387 = vadd.xlane.f32.xlu1 %v386_v41  ;;  %366 = vadd.xlane.f32.xlu0 %v365_v48  ;;  %v368_v50 = vsel %vm249_vm0, %v338_v24, 0.0  ;;  %v963_v29 = vld [vmem:[%s1416_s3] ss:$8 sps:$4 sm:$0xff]  }
  0xc0   : > { %v345_v51 = vmul.f32 %v1201_v47, %v1201_v47  ;;  %596 = vmatpush1.bf16.msra.mxu0 %v963_v29  ;;  %948 = vmatpush1.bf16.msra.mxu1 %v963_v29  ;;  %v1252_v29 = vld [vmem:[%s1415_s2] ss:$0 sm:$0xff] }
  0xc1   : > { %v346_v28 = vmul.f32 %v1204_v25, %v1204_v25  ;;  %597 = vmatprep.subr.bf16.mxu0 %v964_v53  ;;  %945 = vmatprep.subr.bf16.mxu1 %v964_v53 }
  0xc2   : > { %v389_v52 = vsel %vm249_vm0, %v345_v51, 0.0 }
  0xc3   : > { %369 = vadd.xlane.f32.xlu1 %v368_v50  ;;  %390 = vadd.xlane.f32.xlu0 %v389_v52  ;;  %v392_v56 = vsel %vm249_vm0, %v346_v28, 0.0 }
  0xc4   : > { %598 = vmatpush1.bf16.msra.mxu0 %v966_v57  ;;  %949 = vmatpush1.bf16.msra.mxu1 %v966_v57 }
  0xc5   : > { %599 = vmatprep.subr.bf16.mxu0 %v967_v58  ;;  %946 = vmatprep.subr.bf16.mxu1 %v967_v58 }
  0xc7   : > { %393 = vadd.xlane.f32.xlu1 %v392_v56 }
  0xc8   : > { %600 = vmatpush1.bf16.msra.mxu0 %v969_v59  ;;  %950 = vmatpush1.bf16.msra.mxu1 %v969_v59 }
  0xc9   : > { %601 = vmatprep.subr.bf16.mxu0 %v970_v60  ;;  %947 = vmatprep.subr.bf16.mxu1 %v970_v60 }
  0xcc   : > { %602 = vmatpush1.bf16.msra.mxu0 %v972_v61  ;;  %951 = vmatpush1.bf16.msra.mxu1 %v972_v61 }
 0x134   : > { %v349_v63 = vpop.xlane.xlu0 %348 }
 0x135   : > { %v395_v2 = vmul.f32 0.015625, %v349_v63 }
 0x137   : > { %v411_v3 = vadd.f32 1e-05, %v395_v2 }
 0x138   : > { %v352_v4 = vpop.xlane.xlu1 %351  ;;  %v373_v5 = vpop.xlane.xlu0 %372 }
 0x139   : > { %973 = vrsqrt.f32 %v411_v3  ;;  %v396_v6 = vmul.f32 0.015625, %v352_v4  ;;  %v403_v7 = vmul.f32 0.015625, %v373_v5 }
 0x13b   : > { %v412_v8 = vadd.f32 1e-05, %v396_v6  ;;  %v419_v9 = vadd.f32 1e-05, %v403_v7 }
 0x13c   : > { %v376_v12 = vpop.xlane.xlu1 %375  ;;  %v355_v13 = vpop.xlane.xlu0 %354 }
 0x13d   : > { %975 = vrsqrt.f32 %v412_v8  ;;  %v404_v14 = vmul.f32 0.015625, %v376_v12  ;;  %v397_v15 = vmul.f32 0.015625, %v355_v13 }
 0x13e   : > { %977 = vrsqrt.f32 %v419_v9 }
 0x13f   : > { %v420_v18 = vadd.f32 1e-05, %v404_v14  ;;  %v413_v19 = vadd.f32 1e-05, %v397_v15 }
 0x140   : > { %v358_v22 = vpop.xlane.xlu1 %357  ;;  %v379_v16 = vpop.xlane.xlu0 %378 }
 0x141   : > { %979 = vrsqrt.f32 %v420_v18  ;;  %v398_v26 = vmul.f32 0.015625, %v358_v22  ;;  %v405_v27 = vmul.f32 0.015625, %v379_v16 }
 0x142   : > { %981 = vrsqrt.f32 %v413_v19 }
 0x143   : > { %v974_v30 = vpop.eup %973  ;;  %v414_v31 = vadd.f32 1e-05, %v398_v26  ;;  %v421_v32 = vadd.f32 1e-05, %v405_v27 }
 0x144   : > { %v443_v33 = vmul.f32 %v974_v30, %v1124_v36  ;;  %v382_v34 = vpop.xlane.xlu1 %381  ;;  %v361_v20 = vpop.xlane.xlu0 %360 }
 0x145   : > { %983 = vrsqrt.f32 %v414_v31  ;;  %v406_v38 = vmul.f32 0.015625, %v382_v34  ;;  %v399_v39 = vmul.f32 0.015625, %v361_v20 }
 0x146   : > { %985 = vrsqrt.f32 %v421_v32  ;;  %v465_v36 = vmul.f32 %v1244_v40, %v443_v33 }
 0x147   : > { %v976_v41 = vpop.eup %975  ;;  %v422_v42 = vadd.f32 1e-05, %v406_v38  ;;  %v415_v43 = vadd.f32 1e-05, %v399_v39 }
 0x148   : > { %v978_v46 = vpop.eup %977  ;;  %v444_v24 = vmul.f32 %v976_v41, %v1132_v44  ;;  %v364_v48 = vpop.xlane.xlu1 %363 }
 0x149   : > { %v385_v49 = vpop.xlane.xlu0 %384  ;;  %v451_v50 = vmul.f32 %v978_v46, %v1126_v37  ;;  %987 = vrsqrt.f32 %v422_v42  ;;  %v400_v51 = vmul.f32 0.015625, %v364_v48  ;;  %v487_v37 = vadd.f32 %v1252_v29, %v465_v36 }
 0x14a   : > { %v407_v28 = vmul.f32 0.015625, %v385_v49  ;;  %989 = vrsqrt.f32 %v415_v43  ;;  %v466_v52 = vmul.f32 %v1244_v40, %v444_v24 }
 0x14b   : > { %v980_v53 = vpop.eup %979  ;;  %v416_v56 = vadd.f32 1e-05, %v400_v51  ;;  %v473_v63 = vmul.f32 %v1244_v40, %v451_v50 }
 0x14c   : > { %v423_v44 = vadd.f32 1e-05, %v407_v28  ;;  %v982_v57 = vpop.eup %981  ;;  %v452_v58 = vmul.f32 %v980_v53, %v1134_v45  ;;  %v388_v59 = vpop.xlane.xlu1 %387  ;;  %v488_v61 = vadd.f32 %v1252_v29, %v466_v52 }
 0x14d   : > { %v367_v60 = vpop.xlane.xlu0 %366  ;;  %v445_v2 = vmul.f32 %v982_v57, %v1142_v54  ;;  %991 = vrsqrt.f32 %v416_v56  ;;  %v408_v3 = vmul.f32 0.015625, %v388_v59  ;;  %v495_v15 = vadd.f32 %v1252_v29, %v473_v63 }
 0x14e   : > { %v401_v4 = vmul.f32 0.015625, %v367_v60  ;;  %993 = vrsqrt.f32 %v423_v44  ;;  %v503_v5 = vpack.c.bf16 %v488_v61, %v487_v37  ;;  %v474_v6 = vmul.f32 %v1244_v40, %v452_v58 }
 0x14f   : > { %v984_v7 = vpop.eup %983  ;;  %v424_v8 = vadd.f32 1e-05, %v408_v3  ;;  %v467_v18 = vmul.f32 %v1244_v40, %v445_v2 }
 0x150   : > { %v417_v45 = vadd.f32 1e-05, %v401_v4  ;;  %v986_v9 = vpop.eup %985  ;;  %v446_v12 = vmul.f32 %v984_v7, %v1144_v55  ;;  %v370_v13 = vpop.xlane.xlu1 %369  ;;  %901 = vmatmul.mubr.msk.bf16.vlgmr.msra.gmra.mrb[0].mxu0 %vm249_vm0, %v503_v5  ;;  %v496_v54 = vadd.f32 %v1252_v29, %v474_v6 }
 0x151   : > { %v391_v14 = vpop.xlane.xlu0 %390  ;;  %v453_v19 = vmul.f32 %v986_v9, %v1153_v0  ;;  %995 = vrsqrt.f32 %v424_v8  ;;  %v402_v22 = vmul.f32 0.015625, %v370_v13  ;;  %637 = vmatprep.mubr.bf16.mxu0 %v1013_v62  ;;  %v489_v0 = vadd.f32 %v1252_v29, %v467_v18 }
 0x152   : > { %v409_v16 = vmul.f32 0.015625, %v391_v14  ;;  %997 = vrsqrt.f32 %v417_v45  ;;  %v507_v26 = vpack.c.bf16 %v496_v54, %v495_v15  ;;  %v468_v55 = vmul.f32 %v1244_v40, %v446_v12 }
 0x153   : > { %v988_v27 = vpop.eup %987  ;;  %v418_v30 = vadd.f32 1e-05, %v402_v22  ;;  %v475_v38 = vmul.f32 %v1244_v40, %v453_v19  ;;  %v521_v13 = vlaneseq }
 0x154   : > { %v425_v31 = vadd.f32 1e-05, %v409_v16  ;;  %v990_v32 = vpop.eup %989  ;;  %v454_v33 = vmul.f32 %v988_v27, %v1156_v1  ;;  %v394_v34 = vpop.xlane.xlu1 %393  ;;  %905 = vmatmul.mubr.msk.bf16.vlgmr.msra.gmra.mrb[0].mxu1 %vm249_vm0, %v507_v26  ;;  %v490_v20 = vadd.f32 %v1252_v29, %v468_v55 }
 0x155   : > { %v447_v39 = vmul.f32 %v990_v32, %v1165_v10  ;;  %999 = vrsqrt.f32 %v418_v30  ;;  %v410_v41 = vmul.f32 0.015625, %v394_v34  ;;  %677 = vmatprep.mubr.bf16.mxu1 %v1013_v62  ;;  %v497_v49 = vadd.f32 %v1252_v29, %v475_v38 }
 0x156   : > { %1001 = vrsqrt.f32 %v425_v31  ;;  %v504_v42 = vpack.c.bf16 %v490_v20, %v489_v0  ;;  %v476_v43 = vmul.f32 %v1244_v40, %v454_v33  ;;  %v522_v14 = vshrl.u32 %v521_v13, 7 }
 0x157   : > { %v992_v1 = vpop.eup %991  ;;  %v426_v46 = vadd.f32 1e-05, %v410_v41  ;;  %v469_v10 = vmul.f32 %v1244_v40, %v447_v39 }
 0x158   : > { %v994_v24 = vpop.eup %993  ;;  %v448_v48 = vmul.f32 %v992_v1, %v1168_v11  ;;  %902 = vmatmul.mubr.msk.bf16.gmra.mrb[4].mxu0 %vm249_vm0, %v504_v42  ;;  %v498_v36 = vadd.f32 %v1252_v29, %v476_v43  ;;  %v523_v15 = vsub.s32 0, %v522_v14  ;;  %v527_v54 = vsub.s32 1, %v522_v14 }
 0x159   : > { %v455_v50 = vmul.f32 %v994_v24, %v1177_v23  ;;  %1003 = vrsqrt.f32 %v426_v46  ;;  %647 = vmatprep.mubr.bf16.mxu0 %v1013_v62  ;;  %v491_v56 = vadd.f32 %v1252_v29, %v469_v10 }
 0x15a   : > { %v508_v51 = vpack.c.bf16 %v498_v36, %v497_v49  ;;  %v470_v28 = vmul.f32 %v1244_v40, %v448_v48 }
 0x15b   : > { %v996_v52 = vpop.eup %995  ;;  %v477_v57 = vmul.f32 %v1244_v40, %v455_v50 }
 0x15c   : > { %v998_v53 = vpop.eup %997  ;;  %v456_v11 = vmul.f32 %v996_v52, %v1180_v17  ;;  %906 = vmatmul.mubr.msk.bf16.gmra.mrb[4].mxu1 %vm249_vm0, %v508_v51  ;;  %v492_v44 = vadd.f32 %v1252_v29, %v470_v28 }
 0x15d   : > { %v449_v23 = vmul.f32 %v998_v53, %v1189_v35  ;;  %687 = vmatprep.mubr.bf16.mxu1 %v1013_v62  ;;  %v499_v17 = vadd.f32 %v1252_v29, %v477_v57 }
 0x15e   : > { %v505_v58 = vpack.c.bf16 %v492_v44, %v491_v56  ;;  %v478_v59 = vmul.f32 %v1244_v40, %v456_v11 }
 0x15f   : > { %v1000_v60 = vpop.eup %999  ;;  %v471_v2 = vmul.f32 %v1244_v40, %v449_v23 }
 0x160   : > { %v1002_v37 = vpop.eup %1001  ;;  %v450_v61 = vmul.f32 %v1000_v60, %v1192_v21  ;;  %903 = vmatmul.mubr.msk.bf16.gmra.mrb[8].mxu0 %vm249_vm0, %v505_v58  ;;  %v500_v63 = vadd.f32 %v1252_v29, %v478_v59 }
 0x161   : > { %v457_v3 = vmul.f32 %v1002_v37, %v1201_v47  ;;  %657 = vmatprep.mubr.bf16.mxu0 %v1013_v62  ;;  %v493_v21 = vadd.f32 %v1252_v29, %v471_v2 }
 0x162   : > { %v509_v35 = vpack.c.bf16 %v500_v63, %v499_v17  ;;  %v472_v4 = vmul.f32 %v1244_v40, %v450_v61 }
 0x163   : > { %v1004_v5 = vpop.eup %1003  ;;  %v479_v8 = vmul.f32 %v1244_v40, %v457_v3 }
 0x164   : > { %v458_v6 = vmul.f32 %v1004_v5, %v1204_v25  ;;  %907 = vmatmul.mubr.msk.bf16.gmra.mrb[8].mxu1 %vm249_vm0, %v509_v35  ;;  %v494_v7 = vadd.f32 %v1252_v29, %v472_v4 }
 0x165   : > { %697 = vmatprep.mubr.bf16.mxu1 %v1013_v62  ;;  %v501_v9 = vadd.f32 %v1252_v29, %v479_v8  ;;  %v519_v62 = vld [vmem:[%s1417_s4] sm:$0x3] }
 0x166   : > { %v506_v45 = vpack.c.bf16 %v494_v7, %v493_v21  ;;  %v480_v47 = vmul.f32 %v1244_v40, %v458_v6  ;;  %v1315_v18 = vrot.slane %v519_v62, %v523_v15  ;;  %v1317_v40 = vrot.slane %v519_v62, %v527_v54 }
 0x168   : > { %904 = vmatmul.mubr.msk.bf16.gmra.mrb[12].mxu0 %vm249_vm0, %v506_v45  ;;  %v502_v12 = vadd.f32 %v1252_v29, %v480_v47 }
 0x16a   : > { %v510_v25 = vpack.c.bf16 %v502_v12, %v501_v9 }
 0x16c   : > { %908 = vmatmul.mubr.msk.bf16.gmra.mrb[12].mxu1 %vm249_vm0, %v510_v25 }
 0x223   : > { %v629_v19 = vpop.f32.mrb[0].mxu0 }
 0x224   : > { %v630_v29 = vadd.f32 %v629_v19, %v1315_v18  ;;  %v631_v22 = vpop.f32.mrb[1].mxu0 }
 0x225   : > { %v632_v16 = vadd.f32 %v631_v22, %v1317_v40  ;;  %v633_v26 = vpop.f32.mrb[2].mxu0 }
 0x226   : > { %v634_v27 = vadd.f32 %v633_v26, %v1315_v18  ;;  %v635_v30 = vpop.f32.mrb[3].mxu0 }
 0x227   : > { %v928_v31 = vpack.c.bf16 %v632_v16, %v630_v29  ;;  %v636_v32 = vadd.f32 %v635_v30, %v1317_v40  ;;  %v669_v33 = vpop.f32.mrb[0].mxu1 }
 0x228   : > { %v670_v34 = vadd.f32 %v669_v33, %v1315_v18  ;;  %v671_v0 = vpop.f32.mrb[1].mxu1 }
 0x229   : > { %807 = vst.msk [vmem:[%s1326_s27] sm:$0xff] %vm1328_vm3, %v928_v31  ;;  %v929_v20 = vpack.c.bf16 %v636_v32, %v634_v27  ;;  %v672_v38 = vadd.f32 %v671_v0, %v1317_v40  ;;  %v673_v39 = vpop.f32.mrb[2].mxu1 }
 0x22a   : > { %v674_v41 = vadd.f32 %v673_v39, %v1315_v18  ;;  %v675_v42 = vpop.f32.mrb[3].mxu1 }
 0x22b   : > { %808 = vst.msk [vmem:[%s1326_s27 + $0x8] sm:$0xff] %vm1328_vm3, %v929_v20  ;;  %v936_v43 = vpack.c.bf16 %v672_v38, %v670_v34  ;;  %v676_v1 = vadd.f32 %v675_v42, %v1317_v40  ;;  %v639_v46 = vpop.f32.mrb[4].mxu0 }
 0x22c   : > { %v640_v24 = vadd.f32 %v639_v46, %v1315_v18  ;;  %v641_v48 = vpop.f32.mrb[5].mxu0 }
 0x22d   : > { %815 = vst.msk [vmem:[%s1326_s27 + $0x40] sm:$0xff] %vm1328_vm3, %v936_v43  ;;  %v937_v49 = vpack.c.bf16 %v676_v1, %v674_v41  ;;  %v642_v36 = vadd.f32 %v641_v48, %v1317_v40  ;;  %v643_v10 = vpop.f32.mrb[6].mxu0 }
 0x22e   : > { %v644_v50 = vadd.f32 %v643_v10, %v1315_v18  ;;  %v645_v51 = vpop.f32.mrb[7].mxu0 }
 0x22f   : > { %816 = vst.msk [vmem:[%s1326_s27 + $0x48] sm:$0xff] %vm1328_vm3, %v937_v49  ;;  %v930_v28 = vpack.c.bf16 %v642_v36, %v640_v24  ;;  %v646_v52 = vadd.f32 %v645_v51, %v1317_v40  ;;  %v679_v53 = vpop.f32.mrb[4].mxu1 }
 0x230   : > { %v680_v11 = vadd.f32 %v679_v53, %v1315_v18  ;;  %v681_v56 = vpop.f32.mrb[5].mxu1 }
 0x231   : > { %809 = vst.msk [vmem:[%s1326_s27 + $0x10] sm:$0xff] %vm1328_vm3, %v930_v28  ;;  %v931_v44 = vpack.c.bf16 %v646_v52, %v644_v50  ;;  %v682_v57 = vadd.f32 %v681_v56, %v1317_v40  ;;  %v683_v23 = vpop.f32.mrb[6].mxu1 }
 0x232   : > { %v684_v58 = vadd.f32 %v683_v23, %v1315_v18  ;;  %v685_v59 = vpop.f32.mrb[7].mxu1 }
 0x233   : > { %810 = vst.msk [vmem:[%s1326_s27 + $0x18] sm:$0xff] %vm1328_vm3, %v931_v44  ;;  %v938_v60 = vpack.c.bf16 %v682_v57, %v680_v11  ;;  %v686_v37 = vadd.f32 %v685_v59, %v1317_v40  ;;  %v649_v61 = vpop.f32.mrb[8].mxu0 }
 0x234   : > { %v650_v17 = vadd.f32 %v649_v61, %v1315_v18  ;;  %v651_v63 = vpop.f32.mrb[9].mxu0 }
 0x235   : > { %817 = vst.msk [vmem:[%s1326_s27 + $0x50] sm:$0xff] %vm1328_vm3, %v938_v60  ;;  %v939_v2 = vpack.c.bf16 %v686_v37, %v684_v58  ;;  %v652_v3 = vadd.f32 %v651_v63, %v1317_v40  ;;  %v653_v35 = vpop.f32.mrb[10].mxu0 }
 0x236   : > { %v654_v4 = vadd.f32 %v653_v35, %v1315_v18  ;;  %v655_v5 = vpop.f32.mrb[11].mxu0 }
 0x237   : > { %818 = vst.msk [vmem:[%s1326_s27 + $0x58] sm:$0xff] %vm1328_vm3, %v939_v2  ;;  %v932_v6 = vpack.c.bf16 %v652_v3, %v650_v17  ;;  %v656_v21 = vadd.f32 %v655_v5, %v1317_v40  ;;  %v689_v7 = vpop.f32.mrb[8].mxu1 }
 0x238   : > { %v690_v8 = vadd.f32 %v689_v7, %v1315_v18  ;;  %v691_v45 = vpop.f32.mrb[9].mxu1 }
 0x239   : > { %811 = vst.msk [vmem:[%s1326_s27 + $0x20] sm:$0xff] %vm1328_vm3, %v932_v6  ;;  %v933_v47 = vpack.c.bf16 %v656_v21, %v654_v4  ;;  %v692_v9 = vadd.f32 %v691_v45, %v1317_v40  ;;  %v693_v12 = vpop.f32.mrb[10].mxu1 }
 0x23a   : > { %v694_v25 = vadd.f32 %v693_v12, %v1315_v18  ;;  %v695_v13 = vpop.f32.mrb[11].mxu1 }
 0x23b   : > { %812 = vst.msk [vmem:[%s1326_s27 + $0x28] sm:$0xff] %vm1328_vm3, %v933_v47  ;;  %v940_v14 = vpack.c.bf16 %v692_v9, %v690_v8  ;;  %v696_v15 = vadd.f32 %v695_v13, %v1317_v40  ;;  %v659_v62 = vpop.f32.mrb[12].mxu0 }
 0x23c   : > { %v660_v54 = vadd.f32 %v659_v62, %v1315_v18  ;;  %v661_v19 = vpop.f32.mrb[13].mxu0 }
 0x23d   : > { %819 = vst.msk [vmem:[%s1326_s27 + $0x60] sm:$0xff] %vm1328_vm3, %v940_v14  ;;  %v941_v29 = vpack.c.bf16 %v696_v15, %v694_v25  ;;  %v662_v22 = vadd.f32 %v661_v19, %v1317_v40  ;;  %v663_v16 = vpop.f32.mrb[14].mxu0 }
 0x23e   : > { %v664_v26 = vadd.f32 %v663_v16, %v1315_v18  ;;  %v665_v27 = vpop.f32.mrb[15].mxu0 }
 0x23f   : > { %820 = vst.msk [vmem:[%s1326_s27 + $0x68] sm:$0xff] %vm1328_vm3, %v941_v29  ;;  %v934_v30 = vpack.c.bf16 %v662_v22, %v660_v54  ;;  %v666_v31 = vadd.f32 %v665_v27, %v1317_v40  ;;  %v699_v32 = vpop.f32.mrb[12].mxu1 }
 0x240   : > { %v700_v33 = vadd.f32 %v699_v32, %v1315_v18  ;;  %v701_v34 = vpop.f32.mrb[13].mxu1 }
 0x241   : > { %813 = vst.msk [vmem:[%s1326_s27 + $0x30] sm:$0xff] %vm1328_vm3, %v934_v30  ;;  %v935_v0 = vpack.c.bf16 %v666_v31, %v664_v26  ;;  %v702_v20 = vadd.f32 %v701_v34, %v1317_v40  ;;  %v703_v38 = vpop.f32.mrb[14].mxu1 }
 0x242   : > { %v704_v39 = vadd.f32 %v703_v38, %v1315_v18  ;;  %v705_v41 = vpop.f32.mrb[15].mxu1 }
 0x243   : > { %814 = vst.msk [vmem:[%s1326_s27 + $0x38] sm:$0xff] %vm1328_vm3, %v935_v0  ;;  %v942_v42 = vpack.c.bf16 %v702_v20, %v700_v33  ;;  %v706_v43 = vadd.f32 %v705_v41, %v1317_v40 }
 0x245   : > { %821 = vst.msk [vmem:[%s1326_s27 + $0x70] sm:$0xff] %vm1328_vm3, %v942_v42  ;;  %v943_v1 = vpack.c.bf16 %v706_v43, %v704_v39 }
 0x247   : > { %822 = vst.msk [vmem:[%s1326_s27 + $0x78] sm:$0xff] %vm1328_vm3, %v943_v1 }
 0x248 PF: > { %s15_s18 = sadd.s32 1, %s1011_s18  }
 0x249   : > { %p12_p4 = scmp.ge.s32.totalorder %s15_s18, 6  }
 0x24b   :  { %14 = sbr.rel (!%p12_p4) target bundleno = 1 (0x1), region = 70 }

// kernel: block_forward.4
= control target key start
LH: loop header
LB: loop body
LE: loop exit
PB: predicated region body
PF: predicated region fallthrough
CT: control target
= control target key end

     0   :  { %s2752_s12 = smov 0   ;;  %s2754_s13 = smov 0   ;;  %s3550_s0 = inlined_call_operand.vmem [shape: bf16[4,8,2,8,192], index: 0, kind: input, shape index: {}]   ;;  %s3551_s1 = inlined_call_operand.vmem [shape: f32[64,64], index: 1, kind: input, shape index: {}]   ;;  %s3552_s2 = inlined_call_operand.vmem [shape: f32[64,64], index: 2, kind: input, shape index: {}]   ;;  %s3553_s3 = inlined_call_operand.vmem [shape: bf16[4,8,2,8,64], index: 3, kind: output, shape index: {}]  }
   0x1   :  { %s2756_s14 = smov 0   ;;  %s2758_s15 = smov 0  }
   0x2   :  { %s2760_s16 = smov 0   ;;  %s2762_s17 = smov 0  }
   0x3   :  { %s2764_s18 = smov 0  }
   0x4 LB: > { %s22_s19 = sadd.s32 1, %s2711_s16  ;;  %s25_s20 = sadd.s32 1, %s2715_s17  ;;  %s2719_s18 = sphi %s2764_s18, %s13_s18   ;;  %s2715_s17 = sphi %s2762_s17, %s3562_s17   ;;  %s2711_s16 = sphi %s2760_s16, %s3561_s16   ;;  %s2707_s15 = sphi %s2758_s15, %s3560_s15   ;;  %s2703_s14 = sphi %s2756_s14, %s3559_s14   ;;  %s2699_s13 = sphi %s2754_s13, %s3558_s13   ;;  %s2695_s12 = sphi %s2752_s12, %s3557_s12  }
   0x5   : > { %p23_p0 = scmp.ge.s32.totalorder %s22_s19, 2  ;;  %s2050_s21 = sadd.s32 4294967295, %s2719_s18  }
   0x6   : > { %p41_p1 = scmp.ne.s32.totalorder %s2699_s13, %s2695_s12  ;;  %p42_p2 = scmp.eq.s32.totalorder %s2719_s18, 0 }
   0x7   : > { %s3564_s19 = smov (%p23_p0, %s22_s19), 0  ;;  %s3566_s20 = smov (!%p23_p0, %s25_s20), %s2715_s17 }
   0x8   : > { %p27_p3 = scmp.ge.s32.totalorder %s3566_s20, 4  ;;  %p115_p4 = scmp.eq.s32.totalorder %s2050_s21, 7 }
   0x9   : > { %s30_s22 = ssub.s32 %s2711_s16, %s3564_s19  ;;  %p43_p5 = por %p42_p2, %p41_p1 }
   0xa   : > { %s3568_s20 = smov (%p27_p3, %s3566_s20), 0  ;;  %p2800_p6 = por %p115_p4, %p41_p1 }
   0xb   : > { %s29_s24 = ssub.s32 %s2715_s17, %s3568_s20  ;;  %s34_s26 = sadd.s32 1, %s2699_s13 }
   0xc   : > { %s31_s25 = sor.u32 %s30_s22, %s29_s24  ;;  %p2053_p8 = scmp.ge.s32.totalorder %s2719_s18, 8 }
   0xd   : > { %p32_p7 = scmp.eq.s32.totalorder %s31_s25, 0 }
   0xe   : > { %143 = sbr.rel (%p2053_p8) target bundleno = 32 (0x20), region = 24 }
   0xf   : > { %s2808_s27 = scalar_select %p32_p7, %s2699_s13, %s34_s26  }
  0x15   : > { %146 = sbr.rel (!%p43_p5) target bundleno = 32 (0x20), region = 28  ;;  %s148_s28 = sand.u32 (%p43_p5), 1, %s2699_s13  }
  0x16   : > { %s2055_s29 = sshll.u32 (%p43_p5), %s2711_s16, 1  ;;  %s2054_s30 = sshll.u32 (%p43_p5), %s148_s28, 6 }
  0x17   : > { %s2056_s4 = sshll.u32 (%p43_p5), %s2715_s17, 5  ;;  %s150_s10 = scalar_lea.vmem (%p43_p5), [#allocation2], %s2054_s30 }
  0x18   : > { %s153_s5 = sadd.s32 (%p43_p5), %s2056_s4, %s2055_s29 }
  0x19   : > { %s2057_s6 = sshll.u32 (%p43_p5), %s153_s5, 2 }
  0x1a   : > { %s155_s9 = scalar_lea.vmem (%p43_p5), %s3550_s0, %s2057_s6 }
  0x1b   : > { %v197_v0 = vld [vmem:[%s155_s9] sm:$0xff] (%p43_p5)  ;;  %v199_v1 = vld [vmem:[%s155_s9 + $0x10] sm:$0xff] (%p43_p5) }
  0x1c   : > { %v201_v2 = vld [vmem:[%s155_s9 + $0x20] sm:$0xff]  ;;  %198 = vst [vmem:[%s150_s10] sm:$0xff] %v197_v0  ;;  %200 = vst [vmem:[%s150_s10 + $0x8] sm:$0xff] %v199_v1  ;;  %v203_v3 = vld [vmem:[%s155_s9 + $0x30] sm:$0xff] }
  0x1d   : > { %202 = vst [vmem:[%s150_s10 + $0x10] sm:$0xff] %v201_v2  ;;  %v205_v4 = vld [vmem:[%s155_s9 + $0x40] sm:$0xff]  ;;  %v207_v5 = vld [vmem:[%s155_s9 + $0x50] sm:$0xff]  ;;  %204 = vst [vmem:[%s150_s10 + $0x18] sm:$0xff] %v203_v3 }
  0x1e   : > { %206 = vst [vmem:[%s150_s10 + $0x20] sm:$0xff] %v205_v4  ;;  %208 = vst [vmem:[%s150_s10 + $0x28] sm:$0xff] %v207_v5  ;;  %v209_v6 = vld [vmem:[%s155_s9 + $0x60] sm:$0xff]  ;;  %v211_v7 = vld [vmem:[%s155_s9 + $0x70] sm:$0xff] }
  0x1f   : > { %210 = vst [vmem:[%s150_s10 + $0x30] sm:$0xff] %v209_v6  ;;  %212 = vst [vmem:[%s150_s10 + $0x38] sm:$0xff] %v211_v7 }
  0x20 PF: > { %p2058_p9 = scmp.ge.s32.totalorder %s2719_s18, 1  ;;  %p217_p10 = scmp.lt.s32.totalorder %s2719_s18, 9 }
  0x22   : > { %p218_p11 = pnand %p2058_p9, %p217_p10 }
  0x23   : > { %s224_s11 = sand.u32 (!%p218_p11), 1, %s2695_s12   ;;  %s2721_s24 = smov (!%p218_p11), 72   ;;  %v256_v28 = vld [vmem:[%s3551_s1 + $0x8] sm:$0xff] (!%p218_p11)  ;;  %v255_v29 = vld [vmem:[%s3551_s1] sm:$0xff] (!%p218_p11)  ;;  %v271_v30 = vlaneseq (!%p218_p11)  ;;  %vm407_vm0 = vcmask (!%p218_p11), 64512   ;;  %vm350_vm1 = vcmask (!%p218_p11), 457728  }
  0x24   : > { %221 = sbr.rel (%p218_p11) target bundleno = 3135 (0xc3f), region = 66  ;;  %s2059_s21 = sshll.u32 (!%p218_p11), %s224_s11, 6  ;;  %v264_v46 = vld [vmem:[%s3552_s2 + $0x8] sm:$0xff] (!%p218_p11)  ;;  %v263_v48 = vld [vmem:[%s3552_s2] sm:$0xff] (!%p218_p11)  ;;  %vm590_vm3 = vcmask (!%p218_p11), 130048   ;;  %vm680_vm4 = vcmask (!%p218_p11), 523264  }
  0x25   : > { %s226_s22 = scalar_lea.vmem (!%p218_p11), [#allocation2], %s2059_s21  ;;  %s2722_s25 = smov (!%p218_p11), 120   ;;  %v272_v31 = vand.u32 (!%p218_p11), 127, %v271_v30  ;;  %vm1840_vm5 = vcmask (!%p218_p11), 261120   ;;  %vm1849_vm6 = vcmask (!%p218_p11), 392192   ;;  %vm1890_vm7 = vcmask (!%p218_p11), 519168  }
  0x26   : > { %v2822_v8 = vld [vmem:[%s226_s22] sm:$0xff] (!%p218_p11)  ;;  %v2824_v9 = vld [vmem:[%s226_s22 + $0x8] sm:$0xff] (!%p218_p11)  ;;  %v2832_v12 = vld [vmem:[%s226_s22 + $0x10] sm:$0xff] (!%p218_p11)  ;;  %s2723_s26 = smov (!%p218_p11), 8   ;;  %s2724_s28 = smov (!%p218_p11), 56  }
  0x27   : > { %v2827_v10 = vunpack.c.l.bf16 (!%p218_p11), %v2822_v8  ;;  %v2830_v11 = vunpack.c.l.bf16 (!%p218_p11), %v2824_v9  ;;  %v2834_v13 = vld [vmem:[%s226_s22 + $0x18] sm:$0xff] (!%p218_p11)  ;;  %v2840_v15 = vunpack.c.l.bf16 (!%p218_p11), %v2832_v12  ;;  %v2847_v18 = vld [vmem:[%s226_s22 + $0x20] sm:$0xff] (!%p218_p11)  ;;  %v2849_v19 = vld [vmem:[%s226_s22 + $0x28] sm:$0xff] (!%p218_p11)  ;;  %s2725_s6 = smov (!%p218_p11), 64   ;;  %v277_v32 = vand.u32 (!%p218_p11), 15, %v272_v31  ;;  %s2727_s7 = smov (!%p218_p11), 112  }
  0x28   : > { %v2843_v16 = vunpack.c.l.bf16 (!%p218_p11), %v2834_v13  ;;  %v2852_v20 = vunpack.c.l.bf16 (!%p218_p11), %v2847_v18  ;;  %v2855_v21 = vunpack.c.l.bf16 (!%p218_p11), %v2849_v19  ;;  %v2860_v23 = vld [vmem:[%s226_s22 + $0x30] sm:$0xff] (!%p218_p11)  ;;  %v2862_v24 = vld [vmem:[%s226_s22 + $0x38] sm:$0xff] (!%p218_p11)  ;;  %s2728_s8 = smov (!%p218_p11), 32   ;;  %s2729_s9 = smov (!%p218_p11), 96  }
  0x29   : > { %v2403_v14 = vpack.i.bf16 (!%p218_p11), %v2830_v11, %v2827_v10  ;;  %v2865_v25 = vunpack.c.l.bf16 (!%p218_p11), %v2860_v23  ;;  %v2868_v26 = vunpack.c.l.bf16 (!%p218_p11), %v2862_v24  ;;  %vm2882_vm2 = vcmp.lt.s32.totalorder (!%p218_p11), %v277_v32, 8  ;;  %s2730_s10 = smov (!%p218_p11), 16   ;;  %s2731_s21 = smov (!%p218_p11), 80  }
  0x2a   : > { %v2418_v17 = vpack.i.bf16 (!%p218_p11), %v2843_v16, %v2840_v15  ;;  %v2438_v22 = vpack.i.bf16 (!%p218_p11), %v2855_v21, %v2852_v20  ;;  %v417_v47 = vmul.f32 (!%p218_p11), %v2830_v11, %v256_v28  ;;  %v416_v49 = vmul.f32 (!%p218_p11), %v2827_v10, %v255_v29  ;;  %s2060_s22 = sshll.u32 (!%p218_p11), %s224_s11, 5 }
  0x2b   : > { %2404 = vrot.lane.b32.xlu1 %v2403_v14, %s2721_s24  ;;  %2394 = vrot.lane.b32.xlu0 %v2403_v14, %s2722_s25  ;;  %v2458_v27 = vpack.i.bf16 %v2868_v26, %v2865_v25  ;;  %s3480_s12 = scalar_lea.vmem [#allocation3], %s2060_s22  ;;  %s2106_s11 = sshll.u32 (%p2800_p6), %s2707_s15, 4 }
  0x2f   : > { %2409 = vrot.lane.b32.xlu1 %v2403_v14, %s2723_s26  ;;  %2399 = vrot.lane.b32.xlu0 %v2403_v14, %s2724_s28  ;;  %v258_v14 = vld [vmem:[%s3551_s1 + $0x18] sm:$0xff] }
  0x30   : > { %v419_v30 = vmul.f32 %v2843_v16, %v258_v14 }
  0x33   : > { %2419 = vrot.lane.b32.xlu1 %v2418_v17, %s2724_s28  ;;  %2414 = vrot.lane.b32.xlu0 %v2418_v17, %s2722_s25 }
  0x37   : > { %2429 = vrot.lane.b32.xlu1 %v2418_v17, %s2723_s26  ;;  %2424 = vrot.lane.b32.xlu0 %v2418_v17, %s2721_s24 }
  0x3b   : > { %2439 = vrot.lane.b32.xlu1 %v2438_v22, %s2724_s28  ;;  %2434 = vrot.lane.b32.xlu0 %v2438_v22, %s2722_s25 }
  0x3f   : > { %2449 = vrot.lane.b32.xlu1 %v2438_v22, %s2723_s26  ;;  %2444 = vrot.lane.b32.xlu0 %v2438_v22, %s2721_s24 }
  0x43   : > { %2459 = vrot.lane.b32.xlu1 %v2458_v27, %s2724_s28  ;;  %2454 = vrot.lane.b32.xlu0 %v2458_v27, %s2722_s25 }
  0x47   : > { %2469 = vrot.lane.b32.xlu1 %v2458_v27, %s2723_s26  ;;  %2464 = vrot.lane.b32.xlu0 %v2458_v27, %s2721_s24  ;;  %s1907_s24 = sadd.s32 (%p2800_p6), %s2703_s14, %s2106_s11 }
  0x48   : > { %s2107_s25 = sshll.u32 (%p2800_p6), %s1907_s24, 2 }
  0x49   : > { %s1909_s28 = scalar_lea.vmem (%p2800_p6), %s3553_s3, %s2107_s25 }
  0x4b   : > { %488 = vrot.lane.b32.xlu1 %v256_v28, %s2725_s6  ;;  %486 = vrot.lane.b32.xlu0 %v255_v29, %s2725_s6 }
  0x9d   : > { %v2405_v33 = vpop.permute.xlu1 %2404  ;;  %v2395_v34 = vpop.permute.xlu0 %2394 }
  0x9e   : > { %v2407_v36 = vunpack.i.h.bf16 %v2405_v33  ;;  %v2406_v37 = vunpack.i.l.bf16 %v2405_v33  ;;  %v2397_v38 = vunpack.i.h.bf16 %v2395_v34  ;;  %v2396_v39 = vunpack.i.l.bf16 %v2395_v34 }
  0xa1   : > { %v2410_v40 = vpop.permute.xlu1 %2409  ;;  %v2400_v41 = vpop.permute.xlu0 %2399 }
  0xa2   : > { %v2412_v42 = vunpack.i.h.bf16 %v2410_v40  ;;  %v2411_v43 = vunpack.i.l.bf16 %v2410_v40  ;;  %v2402_v44 = vunpack.i.h.bf16 %v2400_v41  ;;  %v2401_v45 = vunpack.i.l.bf16 %v2400_v41  ;;  %v266_v41 = vld [vmem:[%s3552_s2 + $0x18] sm:$0xff] }
  0xa4   : > { %v408_v50 = vsel %vm407_vm0, %v2406_v37, %v2411_v43  ;;  %v409_v51 = vsel %vm407_vm0, %v2407_v36, %v2412_v42  ;;  %v351_v52 = vsel %vm350_vm1, %v2396_v39, %v2401_v45  ;;  %v352_v53 = vsel %vm350_vm1, %v2397_v38, %v2402_v44 }
  0xa5   : > { %v427_v54 = vsel %vm2882_vm2, %v352_v53, %v409_v51  ;;  %v426_v55 = vsel %vm2882_vm2, %v351_v52, %v408_v50  ;;  %v2420_v56 = vpop.permute.xlu1 %2419  ;;  %v2415_v57 = vpop.permute.xlu0 %2414  ;;  %v463_v58 = vsel %vm350_vm1, %v2402_v44, %v2397_v38  ;;  %v471_v59 = vsel %vm407_vm0, %v2412_v42, %v2407_v36  ;;  %v265_v42 = vld [vmem:[%s3552_s2 + $0x10] sm:$0xff] }
  0xa6   : > { %v435_v60 = vmul.f32 %v427_v54, %v264_v46  ;;  %v434_v61 = vmul.f32 %v426_v55, %v263_v48  ;;  %v2422_v62 = vunpack.i.h.bf16 %v2420_v56  ;;  %v2421_v63 = vunpack.i.l.bf16 %v2420_v56 }
  0xa7   : > { %v2417_v0 = vunpack.i.h.bf16 %v2415_v57  ;;  %v2416_v1 = vunpack.i.l.bf16 %v2415_v57  ;;  %v519_v2 = vsel %vm2882_vm2, %v463_v58, %v471_v59  ;;  %v462_v3 = vsel %vm350_vm1, %v2401_v45, %v2396_v39  ;;  %v257_v39 = vld [vmem:[%s3551_s1 + $0x10] sm:$0xff] }
  0xa8   : > { %v443_v4 = vadd.f32 %v435_v60, %v417_v47  ;;  %v442_v5 = vadd.f32 %v434_v61, %v416_v49  ;;  %v527_v6 = vmul.f32 %v519_v2, %v264_v46  ;;  %v470_v7 = vsel %vm407_vm0, %v2411_v43, %v2406_v37 }
  0xa9   : > { %v354_v17 = vsel %vm350_vm1, %v2417_v0, %v2422_v62  ;;  %v353_v22 = vsel %vm350_vm1, %v2416_v1, %v2421_v63  ;;  %v518_v27 = vsel %vm2882_vm2, %v462_v3, %v470_v7  ;;  %v2430_v28 = vpop.permute.xlu1 %2429  ;;  %v2425_v29 = vpop.permute.xlu0 %2424  ;;  %v418_v43 = vmul.f32 %v2840_v15, %v257_v39 }
  0xaa   : > { %v451_v31 = vmul.f32 0.25, %v443_v4  ;;  %v450_v32 = vmul.f32 0.25, %v442_v5  ;;  %544 = vrot.lane.b32.xlu1 %v527_v6, %s2725_s6  ;;  %v526_v33 = vmul.f32 %v518_v27, %v263_v48  ;;  %v2432_v34 = vunpack.i.h.bf16 %v2430_v28 }
  0xab   : > { %v2431_v36 = vunpack.i.l.bf16 %v2430_v28  ;;  %v2427_v37 = vunpack.i.h.bf16 %v2425_v29  ;;  %v2426_v38 = vunpack.i.l.bf16 %v2425_v29  ;;  %v465_v44 = vsel %vm350_vm1, %v2422_v62, %v2417_v0  ;;  %v260_v28 = vld [vmem:[%s3551_s1 + $0x28] sm:$0xff]  ;;  %v259_v29 = vld [vmem:[%s3551_s1 + $0x20] sm:$0xff] }
  0xac   : > { %v2920_v40 = vpack.c.bf16 %v451_v31, %v450_v32  ;;  %542 = vrot.lane.b32.xlu0 %v526_v33, %s2725_s6  ;;  %v464_v45 = vsel %vm350_vm1, %v2421_v63, %v2416_v1  ;;  %v421_v31 = vmul.f32 %v2855_v21, %v260_v28  ;;  %v267_v32 = vld [vmem:[%s3552_s2 + $0x20] sm:$0xff]  ;;  %v420_v33 = vmul.f32 %v2852_v20, %v259_v29 }
  0xad   : > { %v411_v46 = vsel %vm407_vm0, %v2427_v37, %v2432_v34  ;;  %v410_v47 = vsel %vm407_vm0, %v2426_v38, %v2431_v36  ;;  %v2440_v48 = vpop.permute.xlu1 %2439  ;;  %v2435_v49 = vpop.permute.xlu0 %2434  ;;  %v473_v50 = vsel %vm407_vm0, %v2432_v34, %v2427_v37  ;;  %v472_v51 = vsel %vm407_vm0, %v2431_v36, %v2426_v38 }
  0xae   : > { %v429_v52 = vsel %vm2882_vm2, %v354_v17, %v411_v46  ;;  %492 = vrot.lane.b32.xlu1 %v258_v14, %s2725_s6  ;;  %v428_v53 = vsel %vm2882_vm2, %v353_v22, %v410_v47  ;;  %v2442_v54 = vunpack.i.h.bf16 %v2440_v48  ;;  %v2441_v55 = vunpack.i.l.bf16 %v2440_v48  ;;  %2190 = vmatprep.mubr.msk.bf16.mxu0 %vm590_vm3, %v2920_v40 }
  0xaf   : > { %v437_v56 = vmul.f32 %v429_v52, %v266_v41  ;;  %v436_v57 = vmul.f32 %v428_v53, %v265_v42  ;;  %v2437_v58 = vunpack.i.h.bf16 %v2435_v49  ;;  %v2436_v59 = vunpack.i.l.bf16 %v2435_v49 }
  0xb0   : > { %490 = vrot.lane.b32.xlu0 %v257_v39, %s2725_s6  ;;  %v521_v60 = vsel %vm2882_vm2, %v465_v44, %v473_v50  ;;  %v520_v61 = vsel %vm2882_vm2, %v464_v45, %v472_v51 }
  0xb1   : > { %v445_v62 = vadd.f32 %v437_v56, %v419_v30  ;;  %v444_v63 = vadd.f32 %v436_v57, %v418_v43  ;;  %v356_v0 = vsel %vm350_vm1, %v2437_v58, %v2442_v54  ;;  %v355_v1 = vsel %vm350_vm1, %v2436_v59, %v2441_v55  ;;  %v2450_v2 = vpop.permute.xlu1 %2449  ;;  %v2445_v3 = vpop.permute.xlu0 %2444  ;;  %v268_v30 = vld [vmem:[%s3552_s2 + $0x28] sm:$0xff] }
  0xb2   : > { %v529_v4 = vmul.f32 %v521_v60, %v266_v41  ;;  %v528_v5 = vmul.f32 %v520_v61, %v265_v42  ;;  %v2452_v6 = vunpack.i.h.bf16 %v2450_v2  ;;  %v2451_v7 = vunpack.i.l.bf16 %v2450_v2 }
  0xb3   : > { %v453_v14 = vmul.f32 0.25, %v445_v62  ;;  %v452_v17 = vmul.f32 0.25, %v444_v63  ;;  %v2447_v22 = vunpack.i.h.bf16 %v2445_v3  ;;  %v2446_v27 = vunpack.i.l.bf16 %v2445_v3 }
  0xb4   : > { %548 = vrot.lane.b32.xlu1 %v529_v4, %s2725_s6  ;;  %546 = vrot.lane.b32.xlu0 %v528_v5, %s2725_s6  ;;  %v467_v34 = vsel %vm350_vm1, %v2442_v54, %v2437_v58  ;;  %v466_v52 = vsel %vm350_vm1, %v2441_v55, %v2436_v59  ;;  %v262_v59 = vld [vmem:[%s3551_s1 + $0x38] sm:$0xff]  ;;  %v261_v5 = vld [vmem:[%s3551_s1 + $0x30] sm:$0xff] }
  0xb5   : > { %v2967_v36 = vpack.c.bf16 %v453_v14, %v452_v17  ;;  %v413_v37 = vsel %vm407_vm0, %v2447_v22, %v2452_v6  ;;  %v412_v38 = vsel %vm407_vm0, %v2446_v27, %v2451_v7  ;;  %v2460_v39 = vpop.permute.xlu1 %2459  ;;  %v2455_v41 = vpop.permute.xlu0 %2454  ;;  %v475_v42 = vsel %vm407_vm0, %v2452_v6, %v2447_v22 }
  0xb6   : > { %v431_v43 = vsel %vm2882_vm2, %v356_v0, %v413_v37  ;;  %v430_v44 = vsel %vm2882_vm2, %v355_v1, %v412_v38  ;;  %v2462_v45 = vunpack.i.h.bf16 %v2460_v39  ;;  %v2461_v46 = vunpack.i.l.bf16 %v2460_v39 }
  0xb7   : > { %v439_v47 = vmul.f32 %v431_v43, %v268_v30  ;;  %v438_v48 = vmul.f32 %v430_v44, %v267_v32  ;;  %v2457_v49 = vunpack.i.h.bf16 %v2455_v41  ;;  %v2456_v50 = vunpack.i.l.bf16 %v2455_v41 }
  0xb8   : > { %496 = vrot.lane.b32.xlu1 %v260_v28, %s2725_s6  ;;  %494 = vrot.lane.b32.xlu0 %v259_v29, %s2725_s6  ;;  %v523_v51 = vsel %vm2882_vm2, %v467_v34, %v475_v42  ;;  %v474_v53 = vsel %vm407_vm0, %v2451_v7, %v2446_v27  ;;  %v270_v7 = vld [vmem:[%s3552_s2 + $0x38] sm:$0xff]  ;;  %v423_v14 = vmul.f32 %v2868_v26, %v262_v59  ;;  %v269_v29 = vld [vmem:[%s3552_s2 + $0x30] sm:$0xff] }
  0xb9   : > { %v447_v54 = vadd.f32 %v439_v47, %v421_v31  ;;  %v446_v56 = vadd.f32 %v438_v48, %v420_v33  ;;  %v358_v57 = vsel %vm350_vm1, %v2457_v49, %v2462_v45  ;;  %v357_v58 = vsel %vm350_vm1, %v2456_v50, %v2461_v46  ;;  %v2470_v60 = vpop.permute.xlu1 %2469  ;;  %v2465_v61 = vpop.permute.xlu0 %2464 }
  0xba   : > { %v531_v62 = vmul.f32 %v523_v51, %v268_v30  ;;  %v522_v63 = vsel %vm2882_vm2, %v466_v52, %v474_v53  ;;  %v2472_v0 = vunpack.i.h.bf16 %v2470_v60  ;;  %v2471_v1 = vunpack.i.l.bf16 %v2470_v60 }
  0xbb   : > { %v455_v2 = vmul.f32 0.25, %v447_v54  ;;  %v454_v3 = vmul.f32 0.25, %v446_v56  ;;  %v530_v4 = vmul.f32 %v522_v63, %v267_v32  ;;  %v2467_v55 = vunpack.i.h.bf16 %v2465_v61 }
  0xbc   : > { %552 = vrot.lane.b32.xlu1 %v531_v62, %s2725_s6  ;;  %v2466_v6 = vunpack.i.l.bf16 %v2465_v61  ;;  %v422_v17 = vmul.f32 %v2865_v25, %v261_v5  ;;  %v469_v22 = vsel %vm350_vm1, %v2462_v45, %v2457_v49  ;;  %v468_v31 = vsel %vm350_vm1, %v2461_v46, %v2456_v50 }
  0xbd   : > { %v2999_v27 = vpack.c.bf16 %v455_v2, %v454_v3  ;;  %550 = vrot.lane.b32.xlu0 %v530_v4, %s2725_s6  ;;  %v415_v28 = vsel %vm407_vm0, %v2467_v55, %v2472_v0  ;;  %v477_v30 = vsel %vm407_vm0, %v2472_v0, %v2467_v55  ;;  %v489_v50 = vpop.permute.xlu1 %488  ;;  %v487_v35 = vpop.permute.xlu0 %486 }
  0xbe   : > { %v414_v32 = vsel %vm407_vm0, %v2466_v6, %v2471_v1  ;;  %v433_v33 = vsel %vm2882_vm2, %v358_v57, %v415_v28  ;;  %v525_v34 = vsel %vm2882_vm2, %v469_v22, %v477_v30  ;;  %v476_v37 = vsel %vm407_vm0, %v2471_v1, %v2466_v6 }
  0xbf   : > { %v441_v38 = vmul.f32 %v433_v33, %v270_v7  ;;  %v432_v39 = vsel %vm2882_vm2, %v357_v58, %v414_v32  ;;  %v524_v41 = vsel %vm2882_vm2, %v468_v31, %v476_v37  ;;  %v533_v43 = vmul.f32 %v525_v34, %v270_v7 }
  0xc0   : > { %500 = vrot.lane.b32.xlu1 %v262_v59, %s2725_s6  ;;  %v440_v42 = vmul.f32 %v432_v39, %v269_v29  ;;  %v532_v45 = vmul.f32 %v524_v41, %v269_v29  ;;  %v511_v51 = vmul.f32 %v489_v50, %v2830_v11  ;;  %v510_v53 = vmul.f32 %v487_v35, %v2827_v10 }
  0xc1   : > { %v449_v44 = vadd.f32 %v441_v38, %v423_v14  ;;  %498 = vrot.lane.b32.xlu0 %v261_v5, %s2725_s6 }
  0xc2   : > { %v448_v46 = vadd.f32 %v440_v42, %v422_v17 }
  0xc3   : > { %v457_v47 = vmul.f32 0.25, %v449_v44 }
  0xc4   : > { %v456_v48 = vmul.f32 0.25, %v448_v46  ;;  %556 = vrot.lane.b32.xlu1 %v533_v43, %s2725_s6 }
  0xc5   : > { %554 = vrot.lane.b32.xlu0 %v532_v45, %s2725_s6 }
  0xc6   : > { %v3022_v49 = vpack.c.bf16 %v457_v47, %v456_v48 }
 0x11c   : > { %v545_v52 = vpop.permute.xlu1 %544 }
 0x11d   : > { %v567_v54 = vadd.f32 %v545_v52, %v511_v51 }
 0x11e   : > { %v543_v56 = vpop.permute.xlu0 %542 }
 0x11f   : > { %v566_v57 = vadd.f32 %v543_v56, %v510_v53 }
 0x120   : > { %v493_v58 = vpop.permute.xlu1 %492 }
 0x121   : > { %v3026_v60 = vpack.c.bf16 %v567_v54, %v566_v57  ;;  %v513_v62 = vmul.f32 %v493_v58, %v2843_v16  ;;  %v3078_v58 = vcombine.high %v2822_v8, %v2824_v9 }
 0x122   : > { %v491_v61 = vpop.permute.xlu0 %490 }
 0x123   : > { %582 = vrot.lane.b32.xlu0 %v3026_v60, %s2725_s6  ;;  %v512_v63 = vmul.f32 %v491_v61, %v2840_v15  ;;  %v3082_v61 = vcombine.high %v2832_v12, %v2834_v13  ;;  %2198 = vmatprep.subr.bf16.mxu1 %v3078_v58 }
 0x124   : > { %2199 = vmatpush3.bf16.msra.mxu1 %v3078_v58 }
 0x125   : > { %2200 = vmatprep.subr.bf16.mxu1 %v3082_v61 }
 0x126   : > { %v549_v0 = vpop.permute.xlu1 %548  ;;  %v547_v1 = vpop.permute.xlu0 %546 }
 0x127   : > { %v569_v11 = vadd.f32 %v549_v0, %v513_v62  ;;  %v568_v2 = vadd.f32 %v547_v1, %v512_v63 }
 0x128   : > { %2201 = vmatpush3.bf16.msra.mxu1 %v3082_v61 }
 0x129   : > { %v3032_v3 = vpack.c.bf16 %v569_v11, %v568_v2 }
 0x12a   : > { %v497_v10 = vpop.permute.xlu1 %496  ;;  %v495_v4 = vpop.permute.xlu0 %494 }
 0x12b   : > { %584 = vrot.lane.b32.xlu1 %v3032_v3, %s2725_s6  ;;  %v515_v55 = vmul.f32 %v497_v10, %v2855_v21  ;;  %v514_v59 = vmul.f32 %v495_v4, %v2852_v20 }
 0x12e   : > { %v553_v5 = vpop.permute.xlu1 %552 }
 0x12f   : > { %v571_v6 = vadd.f32 %v553_v5, %v515_v55  ;;  %v551_v16 = vpop.permute.xlu0 %550 }
 0x130   : > { %v570_v7 = vadd.f32 %v551_v16, %v514_v59 }
 0x132   : > { %v3038_v15 = vpack.c.bf16 %v571_v6, %v570_v7  ;;  %v501_v14 = vpop.permute.xlu1 %500 }
 0x133   : > { %v499_v17 = vpop.permute.xlu0 %498  ;;  %v517_v22 = vmul.f32 %v501_v14, %v2868_v26 }
 0x134   : > { %586 = vrot.lane.b32.xlu0 %v3038_v15, %s2725_s6  ;;  %v516_v28 = vmul.f32 %v499_v17, %v2865_v25 }
 0x136   : > { %v557_v29 = vpop.permute.xlu1 %556 }
 0x137   : > { %v573_v30 = vadd.f32 %v557_v29, %v517_v22  ;;  %v555_v21 = vpop.permute.xlu0 %554 }
 0x138   : > { %v572_v31 = vadd.f32 %v555_v21, %v516_v28 }
 0x13a   : > { %v3044_v20 = vpack.c.bf16 %v573_v30, %v572_v31 }
 0x13c   : > { %588 = vrot.lane.b32.xlu1 %v3044_v20, %s2725_s6  ;;  %s2726_s6 = smov 48  }
 0x195   : > { %v583_v32 = vpop.permute.xlu0 %582 }
 0x196   : > { %2310 = vmatprep.subr.msk.bf16.mxu0 %vm590_vm3, %v583_v32  ;;  %v604_v33 = vsel %vm590_vm3, %v583_v32, 0 }
 0x197   : > { %2183 = vmatpush3.bf16.xpose.msra.mxu0 %v604_v33 }
 0x19d   : > { %v585_v34 = vpop.permute.xlu1 %584 }
 0x19e   : > { %2311 = vmatprep.subr.msk.bf16.mxu0 %vm590_vm3, %v585_v34  ;;  %v607_v25 = vsel %vm590_vm3, %v585_v34, 0 }
 0x19f   : > { %2185 = vmatpush3.bf16.xpose.msra.mxu0 %v607_v25  ;;  %v3106_v25 = vcombine.high %v2847_v18, %v2849_v19 }
 0x1a1   : > { %2202 = vmatprep.subr.bf16.mxu1 %v3106_v25 }
 0x1a2   : > { %2203 = vmatpush3.bf16.msra.mxu1 %v3106_v25 }
 0x1a6   : > { %v587_v26 = vpop.permute.xlu0 %586 }
 0x1a7   : > { %2312 = vmatprep.subr.msk.bf16.mxu0 %vm590_vm3, %v587_v26  ;;  %v610_v37 = vsel %vm590_vm3, %v587_v26, 0 }
 0x1a8   : > { %2187 = vmatpush3.bf16.xpose.msra.mxu0 %v610_v37  ;;  %v3114_v37 = vcombine.high %v2860_v23, %v2862_v24 }
 0x1aa   : > { %2204 = vmatprep.subr.bf16.mxu1 %v3114_v37 }
 0x1ab   : > { %2205 = vmatpush3.bf16.msra.mxu1 %v3114_v37 }
 0x1ae   : > { %v589_v38 = vpop.permute.xlu1 %588 }
 0x1af   : > { %2313 = vmatprep.subr.msk.bf16.mxu0 %vm590_vm3, %v589_v38  ;;  %v613_v39 = vsel %vm590_vm3, %v589_v38, 0 }
 0x1b0   : > { %2189 = vmatpush3.bf16.xpose.msra.mxu0 %v613_v39 }
 0x1b7   : > { %2191 = vmatmul.mubr.msk.bf16.vlgmr.msra.gmra.mrb[0].mxu0 %vm590_vm3, %v2967_v36 }
 0x1b8   : > { %2194 = vmatprep.mubr.msk.bf16.mxu0 %vm590_vm3, %v2999_v27 }
 0x1bf   : > { %2195 = vmatmul.mubr.msk.bf16.gmra.mrb[4].mxu0 %vm590_vm3, %v3022_v49 }
 0x28a   : > { %v2192_v41 = vpop.f32.mrb[0].mxu0 }
 0x28b   : > { %v649_v42 = vpop.f32.mrb[1].mxu0  ;;  %v687_v47 = vsel %vm680_vm4, %v2192_v41, -inf }
 0x28c   : > { %v2193_v43 = vpop.f32.mrb[2].mxu0  ;;  %v681_v44 = vsel %vm680_vm4, %v649_v42, -inf }
 0x28d   : > { %682 = vmax.xlane.f32.xlu0 %v681_v44  ;;  %v652_v45 = vpop.f32.mrb[3].mxu0  ;;  %v690_v51 = vsel %vm680_vm4, %v2193_v43, -inf }
 0x28e   : > { %v684_v46 = vsel %vm680_vm4, %v652_v45, -inf }
 0x28f   : > { %685 = vmax.xlane.f32.xlu1 %v684_v46 }
 0x291   : > { %688 = vmax.xlane.f32.xlu0 %v687_v47 }
 0x292   : > { %v3065_v48 = vpop.f32.mrb[4].mxu0 }
 0x293   : > { %v3067_v50 = vpop.f32.mrb[5].mxu0  ;;  %v699_v54 = vsel %vm680_vm4, %v3065_v48, -inf }
 0x294   : > { %v2197_v35 = vpop.f32.mrb[6].mxu0  ;;  %v693_v52 = vsel %vm680_vm4, %v3067_v50, -inf }
 0x295   : > { %691 = vmax.xlane.f32.xlu0 %v690_v51  ;;  %694 = vmax.xlane.f32.xlu1 %v693_v52  ;;  %v668_v53 = vpop.f32.mrb[7].mxu0  ;;  %v702_v57 = vsel %vm680_vm4, %v2197_v35, -inf }
 0x296   : > { %v696_v56 = vsel %vm680_vm4, %v668_v53, -inf }
 0x299   : > { %700 = vmax.xlane.f32.xlu1 %v699_v54  ;;  %697 = vmax.xlane.f32.xlu0 %v696_v56 }
 0x29d   : > { %703 = vmax.xlane.f32.xlu0 %v702_v57 }
 0x31a   : > { %v683_v62 = vpop.xlane.xlu0 %682 }
 0x31b   : > { %v705_v63 = vsub.f32 %v649_v42, %v683_v62 }
 0x31c   : > { %v686_v0 = vpop.xlane.xlu1 %685 }
 0x31d   : > { %v713_v2 = vmul.f32 1.442695, %v705_v63  ;;  %v706_v8 = vsub.f32 %v652_v45, %v686_v0 }
 0x31e   : > { %v689_v1 = vpop.xlane.xlu0 %688 }
 0x31f   : > { %v707_v11 = vsub.f32 %v2192_v41, %v689_v1  ;;  %v715_v13 = vmul.f32 1.442695, %v706_v8 }
 0x321   : > { %v717_v9 = vmul.f32 1.442695, %v707_v11 }
 0x322   : > { %v692_v10 = vpop.xlane.xlu0 %691  ;;  %v695_v18 = vpop.xlane.xlu1 %694 }
 0x323   : > { %2537 = vpow2.f32 %v717_v9  ;;  %v708_v12 = vsub.f32 %v2193_v43, %v692_v10  ;;  %v709_v39 = vsub.f32 %v3067_v50, %v695_v18 }
 0x324   : > { %2539 = vpow2.f32 %v713_v2 }
 0x325   : > { %v719_v4 = vmul.f32 1.442695, %v708_v12  ;;  %v721_v23 = vmul.f32 1.442695, %v709_v39 }
 0x326   : > { %v698_v55 = vpop.xlane.xlu0 %697  ;;  %v701_v19 = vpop.xlane.xlu1 %700 }
 0x327   : > { %2541 = vpow2.f32 %v719_v4  ;;  %v710_v59 = vsub.f32 %v668_v53, %v698_v55  ;;  %v711_v38 = vsub.f32 %v3065_v48, %v701_v19 }
 0x328   : > { %2543 = vpow2.f32 %v715_v13 }
 0x329   : > { %v723_v7 = vmul.f32 1.442695, %v710_v59  ;;  %v725_v41 = vmul.f32 1.442695, %v711_v38 }
 0x32a   : > { %v704_v5 = vpop.xlane.xlu0 %703 }
 0x32b   : > { %v712_v6 = vsub.f32 %v2197_v35, %v704_v5 }
 0x32d   : > { %v3088_v16 = vpop.eup %2537  ;;  %v727_v14 = vmul.f32 1.442695, %v712_v6 }
 0x32e   : > { %v735_v17 = vsel %vm680_vm4, %v3088_v16, 0.0  ;;  %v3092_v22 = vpop.eup %2539 }
 0x32f   : > { %2545 = vpow2.f32 %v727_v14  ;;  %736 = vadd.xlane.f32.xlu1 %v735_v17  ;;  %v729_v29 = vsel %vm680_vm4, %v3092_v22, 0.0 }
 0x330   : > { %2547 = vpow2.f32 %v723_v7 }
 0x331   : > { %v2542_v28 = vpop.eup %2541  ;;  %2549 = vpow2.f32 %v725_v41 }
 0x332   : > { %v738_v30 = vsel %vm680_vm4, %v2542_v28, 0.0  ;;  %v2544_v21 = vpop.eup %2543  ;;  %2551 = vpow2.f32 %v721_v23 }
 0x333   : > { %730 = vadd.xlane.f32.xlu1 %v729_v29  ;;  %739 = vadd.xlane.f32.xlu0 %v738_v30  ;;  %v732_v31 = vsel %vm680_vm4, %v2544_v21, 0.0 }
 0x337   : > { %733 = vadd.xlane.f32.xlu0 %v732_v31 }
 0x339   : > { %v3098_v32 = vpop.eup %2545 }
 0x33a   : > { %v750_v33 = vsel %vm680_vm4, %v3098_v32, 0.0  ;;  %v3102_v34 = vpop.eup %2547 }
 0x33b   : > { %751 = vadd.xlane.f32.xlu0 %v750_v33  ;;  %v744_v26 = vsel %vm680_vm4, %v3102_v34, 0.0  ;;  %v2550_v24 = vpop.eup %2549 }
 0x33c   : > { %v747_v42 = vsel %vm680_vm4, %v2550_v24, 0.0  ;;  %v2552_v43 = vpop.eup %2551 }
 0x33d   : > { %v741_v44 = vsel %vm680_vm4, %v2552_v43, 0.0 }
 0x33f   : > { %745 = vadd.xlane.f32.xlu0 %v744_v26 }
 0x344   : > { %886 = vrot.lane.b32.xlu1 %v3026_v60, %s2726_s6 }
 0x355   : > { %888 = vrot.lane.b32.xlu0 %v3032_v3, %s2726_s6 }
 0x359   : > { %878 = vrot.lane.b32.xlu0 %v2920_v40, %s2727_s7 }
 0x35d   : > { %882 = vrot.lane.b32.xlu0 %v2999_v27, %s2727_s7 }
 0x368   : > { %748 = vadd.xlane.f32.xlu1 %v747_v42 }
 0x36c   : > { %742 = vadd.xlane.f32.xlu1 %v741_v44 }
 0x37d   : > { %890 = vrot.lane.b32.xlu1 %v3038_v15, %s2726_s6 }
 0x381   : > { %892 = vrot.lane.b32.xlu1 %v3044_v20, %s2726_s6 }
 0x385   : > { %880 = vrot.lane.b32.xlu1 %v2967_v36, %s2727_s7 }
 0x389   : > { %884 = vrot.lane.b32.xlu1 %v3022_v49, %s2727_s7 }
 0x3bc   : > { %v737_v45 = vpop.xlane.xlu1 %736 }
 0x3c0   : > { %v731_v46 = vpop.xlane.xlu1 %730  ;;  %v740_v47 = vpop.xlane.xlu0 %739 }
 0x3c1   : > { %2553 = vrcp.f32 %v740_v47 }
 0x3c2   : > { %2555 = vrcp.f32 %v731_v46 }
 0x3c3   : > { %2557 = vrcp.f32 %v737_v45 }
 0x3c4   : > { %v887_v48 = vpop.permute.xlu1 %886  ;;  %v734_v50 = vpop.xlane.xlu0 %733 }
 0x3c5   : > { %2559 = vrcp.f32 %v734_v50  ;;  %2314 = vmatprep.subr.msk.bf16.mxu1 %vm590_vm3, %v887_v48  ;;  %v907_v2 = vsel %vm590_vm3, %v887_v48, 0 }
 0x3c8   : > { %v752_v35 = vpop.xlane.xlu0 %751 }
 0x3cb   : > { %v2554_v51 = vpop.eup %2553 }
 0x3cc   : > { %v2556_v52 = vpop.eup %2555  ;;  %v764_v56 = vmul.f32 %v2554_v51, %v2542_v28  ;;  %v746_v57 = vpop.xlane.xlu0 %745 }
 0x3cd   : > { %v2558_v53 = vpop.eup %2557  ;;  %v761_v62 = vmul.f32 %v2556_v52, %v3092_v22 }
 0x3ce   : > { %v763_v0 = vmul.f32 %v2558_v53, %v3088_v16 }
 0x3cf   : > { %v2560_v54 = vpop.eup %2559 }
 0x3d0   : > { %v762_v63 = vmul.f32 %v2560_v54, %v2544_v21  ;;  %v770_v11 = vpack.c.bf16 %v764_v56, %v763_v0  ;;  %v889_v8 = vpop.permute.xlu0 %888 }
 0x3d1   : > { %v910_v9 = vsel %vm590_vm3, %v889_v8, 0 }
 0x3d2   : > { %v769_v1 = vpack.c.bf16 %v762_v63, %v761_v62 }
 0x3d4   : > { %2206 = vmatprep.mubr.msk.bf16.mxu1 %vm680_vm4, %v769_v1  ;;  %v879_v21 = vpop.permute.xlu0 %878 }
 0x3d5   : > { %2207 = vmatmul.mubr.msk.bf16.vlgmr.msra.gmra.mrb[0].mxu1 %vm680_vm4, %v770_v11 }
 0x3d6   : > { %2215 = vmatpush3.bf16.xpose.msra.mxu1 %v907_v2 }
 0x3d7   : > { %2315 = vmatprep.subr.msk.bf16.mxu1 %vm590_vm3, %v889_v8 }
 0x3d8   : > { %v883_v33 = vpop.permute.xlu0 %882 }
 0x3de   : > { %2217 = vmatpush3.bf16.xpose.msra.mxu1 %v910_v9 }
 0x3f5   : > { %v749_v10 = vpop.xlane.xlu1 %748 }
 0x3f6   : > { %2561 = vrcp.f32 %v749_v10 }
 0x3f7   : > { %2563 = vrcp.f32 %v746_v57 }
 0x3f8   : > { %2565 = vrcp.f32 %v752_v35 }
 0x3f9   : > { %v743_v12 = vpop.xlane.xlu1 %742 }
 0x3fa   : > { %2567 = vrcp.f32 %v743_v12 }
 0x3fd   : > { %v891_v13 = vpop.permute.xlu1 %890 }
 0x3fe   : > { %v913_v4 = vsel %vm590_vm3, %v891_v13, 0  ;;  %2316 = vmatprep.subr.msk.bf16.mxu1 %vm590_vm3, %v891_v13 }
 0x3ff   : > { %2219 = vmatpush3.bf16.xpose.msra.mxu1 %v913_v4 }
 0x400   : > { %v2562_v55 = vpop.eup %2561 }
 0x401   : > { %v893_v59 = vpop.permute.xlu1 %892  ;;  %v2564_v5 = vpop.eup %2563  ;;  %v767_v7 = vmul.f32 %v2562_v55, %v2550_v24 }
 0x402   : > { %2317 = vmatprep.subr.msk.bf16.mxu1 %vm590_vm3, %v893_v59  ;;  %v2566_v6 = vpop.eup %2565  ;;  %v766_v17 = vmul.f32 %v2564_v5, %v3102_v34  ;;  %v916_v22 = vsel %vm590_vm3, %v893_v59, 0 }
 0x403   : > { %v768_v28 = vmul.f32 %v2566_v6, %v3098_v32 }
 0x404   : > { %v2568_v16 = vpop.eup %2567 }
 0x405   : > { %v765_v14 = vmul.f32 %v2568_v16, %v2552_v43  ;;  %v772_v30 = vpack.c.bf16 %v768_v28, %v767_v7  ;;  %v881_v31 = vpop.permute.xlu1 %880 }
 0x407   : > { %2221 = vmatpush3.bf16.xpose.msra.mxu1 %v916_v22  ;;  %v771_v29 = vpack.c.bf16 %v766_v17, %v765_v14 }
 0x409   : > { %2210 = vmatprep.mubr.msk.bf16.mxu1 %vm680_vm4, %v771_v29  ;;  %v885_v34 = vpop.permute.xlu1 %884 }
 0x40a   : > { %2211 = vmatmul.mubr.msk.bf16.gmra.mrb[4].mxu1 %vm680_vm4, %v772_v30 }
 0x40b   : > { %2222 = vmatprep.mubr.msk.bf16.mxu1 %vm590_vm3, %v879_v21 }
 0x412   : > { %2223 = vmatmul.mubr.msk.bf16.vlgmr.msra.gmra.mrb[8].mxu1 %vm590_vm3, %v881_v31 }
 0x413   : > { %2226 = vmatprep.mubr.msk.bf16.mxu1 %vm590_vm3, %v883_v33 }
 0x41a   : > { %2227 = vmatmul.mubr.msk.bf16.gmra.mrb[12].mxu1 %vm590_vm3, %v885_v34 }
 0x4a8   : > { %v3158_v32 = vpop.f32.mrb[0].mxu1 }
 0x4a9   : > { %v3160_v26 = vpop.f32.mrb[1].mxu1 }
 0x4aa   : > { %v3162_v18 = vpop.f32.mrb[2].mxu1 }
 0x4ab   : > { %v3164_v19 = vpop.f32.mrb[3].mxu1 }
 0x4dd   : > { %v3166_v38 = vpop.f32.mrb[4].mxu1 }
 0x4de   : > { %v3168_v39 = vpop.f32.mrb[5].mxu1 }
 0x4df   : > { %v3170_v41 = vpop.f32.mrb[6].mxu1 }
 0x4e0   : > { %v3172_v23 = vpop.f32.mrb[7].mxu1 }
 0x4e5   : > { %v2224_v24 = vpop.f32.mrb[8].mxu1 }
 0x4e6   : > { %v952_v42 = vpop.f32.mrb[9].mxu1  ;;  %v989_v43 = vsel %vm680_vm4, %v2224_v24, -inf }
 0x4e7   : > { %990 = vmax.xlane.f32.xlu0 %v989_v43  ;;  %v2225_v44 = vpop.f32.mrb[10].mxu1  ;;  %v983_v47 = vsel %vm680_vm4, %v952_v42, -inf }
 0x4e8   : > { %v955_v45 = vpop.f32.mrb[11].mxu1  ;;  %v992_v35 = vsel %vm680_vm4, %v2225_v44, -inf }
 0x4e9   : > { %v986_v46 = vsel %vm680_vm4, %v955_v45, -inf }
 0x4ea   : > { %987 = vmax.xlane.f32.xlu1 %v986_v46 }
 0x4eb   : > { %984 = vmax.xlane.f32.xlu0 %v983_v47 }
 0x4ed   : > { %v2228_v48 = vpop.f32.mrb[12].mxu1 }
 0x4ee   : > { %v968_v50 = vpop.f32.mrb[13].mxu1  ;;  %v1001_v51 = vsel %vm680_vm4, %v2228_v48, -inf }
 0x4ef   : > { %993 = vmax.xlane.f32.xlu0 %v992_v35  ;;  %1002 = vmax.xlane.f32.xlu1 %v1001_v51  ;;  %v2229_v52 = vpop.f32.mrb[14].mxu1  ;;  %v995_v56 = vsel %vm680_vm4, %v968_v50, -inf }
 0x4f0   : > { %v3179_v53 = vpop.f32.mrb[15].mxu1  ;;  %v1004_v57 = vsel %vm680_vm4, %v2229_v52, -inf }
 0x4f1   : > { %v998_v54 = vsel %vm680_vm4, %v3179_v53, -inf }
 0x4f3   : > { %996 = vmax.xlane.f32.xlu1 %v995_v56  ;;  %999 = vmax.xlane.f32.xlu0 %v998_v54 }
 0x4f7   : > { %1005 = vmax.xlane.f32.xlu0 %v1004_v57 }
 0x504   : > { %1075 = vrot.lane.b32.xlu1 %v3078_v58, %s2727_s7 }
 0x508   : > { %1079 = vrot.lane.b32.xlu1 %v3106_v25, %s2727_s7 }
 0x50c   : > { %1081 = vrot.lane.b32.xlu1 %v3114_v37, %s2727_s7 }
 0x50d   : > { %1077 = vrot.lane.b32.xlu0 %v3082_v61, %s2727_s7 }
 0x510   : > { %1172 = vrot.lane.b32.xlu1 %v3026_v60, %s2728_s8 }
 0x574   : > { %v991_v62 = vpop.xlane.xlu0 %990 }
 0x575   : > { %v1009_v63 = vsub.f32 %v2224_v24, %v991_v62 }
 0x577   : > { %v1019_v0 = vmul.f32 1.442695, %v1009_v63  ;;  %v988_v1 = vpop.xlane.xlu1 %987 }
 0x578   : > { %v985_v11 = vpop.xlane.xlu0 %984  ;;  %v1008_v9 = vsub.f32 %v955_v45, %v988_v1 }
 0x579   : > { %2569 = vpow2.f32 %v1019_v0  ;;  %v1007_v2 = vsub.f32 %v952_v42, %v985_v11 }
 0x57a   : > { %v1017_v55 = vmul.f32 1.442695, %v1008_v9 }
 0x57b   : > { %v1015_v8 = vmul.f32 1.442695, %v1007_v2 }
 0x57c   : > { %v1003_v10 = vpop.xlane.xlu1 %1002  ;;  %v994_v12 = vpop.xlane.xlu0 %993 }
 0x57d   : > { %2571 = vpow2.f32 %v1015_v8  ;;  %v1010_v13 = vsub.f32 %v2225_v44, %v994_v12  ;;  %v1013_v59 = vsub.f32 %v2228_v48, %v1003_v10 }
 0x57f   : > { %v1021_v4 = vmul.f32 1.442695, %v1010_v13  ;;  %v1027_v7 = vmul.f32 1.442695, %v1013_v59 }
 0x580   : > { %v997_v5 = vpop.xlane.xlu1 %996  ;;  %v1000_v6 = vpop.xlane.xlu0 %999 }
 0x581   : > { %2573 = vpow2.f32 %v1021_v4  ;;  %v1011_v14 = vsub.f32 %v968_v50, %v997_v5  ;;  %v1012_v56 = vsub.f32 %v3179_v53, %v1000_v6 }
 0x582   : > { %2575 = vpow2.f32 %v1017_v55 }
 0x583   : > { %v3195_v16 = vpop.eup %2569  ;;  %2577 = vpow2.f32 %v1027_v7  ;;  %v1023_v30 = vmul.f32 1.442695, %v1011_v14  ;;  %v1025_v57 = vmul.f32 1.442695, %v1012_v56 }
 0x584   : > { %v1076_v17 = vpop.permute.xlu1 %1075  ;;  %v1006_v22 = vpop.xlane.xlu0 %1005  ;;  %v1037_v28 = vsel %vm680_vm4, %v3195_v16, 0.0 }
 0x585   : > { %2230 = vmatprep.subr.bf16.mxu0 %v1076_v17  ;;  %1038 = vadd.xlane.f32.xlu1 %v1037_v28  ;;  %v1014_v21 = vsub.f32 %v2229_v52, %v1006_v22  ;;  %2579 = vpow2.f32 %v1023_v30 }
 0x586   : > { %2231 = vmatpush3.bf16.msra.mxu0 %v1076_v17 }
 0x587   : > { %v3199_v29 = vpop.eup %2571  ;;  %v1029_v42 = vmul.f32 1.442695, %v1014_v21 }
 0x588   : > { %v1080_v31 = vpop.permute.xlu1 %1079  ;;  %v1078_v33 = vpop.permute.xlu0 %1077  ;;  %v1031_v34 = vsel %vm680_vm4, %v3199_v29, 0.0 }
 0x589   : > { %1032 = vadd.xlane.f32.xlu1 %v1031_v34  ;;  %2232 = vmatprep.subr.bf16.mxu0 %v1078_v33  ;;  %2581 = vpow2.f32 %v1029_v42 }
 0x58a   : > { %2233 = vmatpush3.bf16.msra.mxu0 %v1078_v33  ;;  %2583 = vpow2.f32 %v1025_v57 }
 0x58b   : > { %2234 = vmatprep.subr.bf16.mxu0 %v1080_v31  ;;  %v2574_v24 = vpop.eup %2573 }
 0x58c   : > { %v1082_v43 = vpop.permute.xlu1 %1081  ;;  %v1040_v44 = vsel %vm680_vm4, %v2574_v24, 0.0  ;;  %v2576_v45 = vpop.eup %2575 }
 0x58d   : > { %1041 = vadd.xlane.f32.xlu0 %v1040_v44  ;;  %v1034_v46 = vsel %vm680_vm4, %v2576_v45, 0.0  ;;  %v3205_v47 = vpop.eup %2577 }
 0x58e   : > { %2235 = vmatpush3.bf16.msra.mxu0 %v1080_v31  ;;  %v1049_v50 = vsel %vm680_vm4, %v3205_v47, 0.0 }
 0x58f   : > { %2236 = vmatprep.subr.bf16.mxu0 %v1082_v43  ;;  %v3210_v35 = vpop.eup %2579 }
 0x590   : > { %v1173_v48 = vpop.permute.xlu1 %1172  ;;  %v1043_v51 = vsel %vm680_vm4, %v3210_v35, 0.0 }
 0x591   : > { %1035 = vadd.xlane.f32.xlu0 %v1034_v46  ;;  %v1193_v22 = vsel %vm590_vm3, %v1173_v48, 0 }
 0x592   : > { %2237 = vmatpush3.bf16.msra.mxu0 %v1082_v43 }
 0x593   : > { %2318 = vmatprep.subr.msk.bf16.mxu0 %vm590_vm3, %v1173_v48  ;;  %v3214_v52 = vpop.eup %2581 }
 0x594   : > { %v1052_v54 = vsel %vm680_vm4, %v3214_v52, 0.0  ;;  %v2584_v62 = vpop.eup %2583 }
 0x595   : > { %1050 = vadd.xlane.f32.xlu0 %v1049_v50  ;;  %v1046_v63 = vsel %vm680_vm4, %v2584_v62, 0.0 }
 0x599   : > { %1044 = vadd.xlane.f32.xlu0 %v1043_v51 }
 0x59a   : > { %1176 = vrot.lane.b32.xlu1 %v3038_v15, %s2728_s8 }
 0x59d   : > { %1053 = vadd.xlane.f32.xlu0 %v1052_v54 }
 0x5b3   : > { %1174 = vrot.lane.b32.xlu0 %v3032_v3, %s2728_s8 }
 0x5b7   : > { %1164 = vrot.lane.b32.xlu0 %v2920_v40, %s2729_s9 }
 0x5bb   : > { %1168 = vrot.lane.b32.xlu0 %v2999_v27, %s2729_s9 }
 0x5be   : > { %1047 = vadd.xlane.f32.xlu1 %v1046_v63 }
 0x5cf   : > { %1178 = vrot.lane.b32.xlu1 %v3044_v20, %s2728_s8 }
 0x5d3   : > { %1166 = vrot.lane.b32.xlu1 %v2967_v36, %s2729_s9 }
 0x5d7   : > { %1170 = vrot.lane.b32.xlu1 %v3022_v49, %s2729_s9 }
 0x612   : > { %v1039_v53 = vpop.xlane.xlu1 %1038 }
 0x616   : > { %v1033_v0 = vpop.xlane.xlu1 %1032 }
 0x61a   : > { %v1042_v1 = vpop.xlane.xlu0 %1041  ;;  %v1177_v30 = vpop.permute.xlu1 %1176 }
 0x61b   : > { %2585 = vrcp.f32 %v1042_v1 }
 0x61c   : > { %2587 = vrcp.f32 %v1033_v0 }
 0x61d   : > { %2589 = vrcp.f32 %v1039_v53 }
 0x61e   : > { %v1036_v11 = vpop.xlane.xlu0 %1035 }
 0x61f   : > { %2591 = vrcp.f32 %v1036_v11 }
 0x622   : > { %v1051_v2 = vpop.xlane.xlu0 %1050 }
 0x625   : > { %v2586_v8 = vpop.eup %2585 }
 0x626   : > { %v1045_v9 = vpop.xlane.xlu0 %1044  ;;  %v2588_v10 = vpop.eup %2587  ;;  %v1066_v4 = vmul.f32 %v2586_v8, %v2574_v24 }
 0x627   : > { %v2590_v12 = vpop.eup %2589  ;;  %v1063_v59 = vmul.f32 %v2588_v10, %v3199_v29 }
 0x628   : > { %v1065_v6 = vmul.f32 %v2590_v12, %v3195_v16  ;;  %v1199_v16 = vsel %vm590_vm3, %v1177_v30, 0 }
 0x629   : > { %v2592_v13 = vpop.eup %2591 }
 0x62a   : > { %v1054_v55 = vpop.xlane.xlu0 %1053  ;;  %v1064_v5 = vmul.f32 %v2592_v13, %v2576_v45  ;;  %v1072_v14 = vpack.c.bf16 %v1066_v4, %v1065_v6 }
 0x62b   : > { %2593 = vrcp.f32 %v1054_v55 }
 0x62c   : > { %v1071_v7 = vpack.c.bf16 %v1064_v5, %v1063_v59  ;;  %2595 = vrcp.f32 %v1045_v9 }
 0x62d   : > { %2597 = vrcp.f32 %v1051_v2 }
 0x62e   : > { %2238 = vmatprep.mubr.msk.bf16.mxu0 %vm680_vm4, %v1071_v7  ;;  %v1175_v17 = vpop.permute.xlu0 %1174 }
 0x62f   : > { %2239 = vmatmul.mubr.msk.bf16.vlgmr.msra.gmra.mrb[8].mxu0 %vm680_vm4, %v1072_v14  ;;  %v1196_v28 = vsel %vm590_vm3, %v1175_v17, 0 }
 0x630   : > { %2247 = vmatpush3.bf16.xpose.msra.mxu0 %v1193_v22 }
 0x631   : > { %2319 = vmatprep.subr.msk.bf16.mxu0 %vm590_vm3, %v1175_v17 }
 0x632   : > { %v1165_v51 = vpop.permute.xlu0 %1164 }
 0x635   : > { %v2594_v33 = vpop.eup %2593 }
 0x636   : > { %v2596_v34 = vpop.eup %2595  ;;  %v1070_v43 = vmul.f32 %v2594_v33, %v3214_v52  ;;  %v1169_v56 = vpop.permute.xlu0 %1168 }
 0x637   : > { %v2598_v24 = vpop.eup %2597  ;;  %v1067_v44 = vmul.f32 %v2596_v34, %v3210_v35 }
 0x638   : > { %2249 = vmatpush3.bf16.xpose.msra.mxu0 %v1196_v28  ;;  %v1069_v46 = vmul.f32 %v2598_v24, %v3205_v47 }
 0x639   : > { %2320 = vmatprep.subr.msk.bf16.mxu0 %vm590_vm3, %v1177_v30 }
 0x63a   : > { %v1074_v50 = vpack.c.bf16 %v1070_v43, %v1069_v46 }
 0x640   : > { %2251 = vmatpush3.bf16.xpose.msra.mxu0 %v1199_v16 }
 0x64b   : > { %v1048_v29 = vpop.xlane.xlu1 %1047 }
 0x64c   : > { %2599 = vrcp.f32 %v1048_v29 }
 0x64f   : > { %v1179_v21 = vpop.permute.xlu1 %1178 }
 0x650   : > { %v1202_v31 = vsel %vm590_vm3, %v1179_v21, 0  ;;  %2321 = vmatprep.subr.msk.bf16.mxu0 %vm590_vm3, %v1179_v21 }
 0x651   : > { %2253 = vmatpush3.bf16.xpose.msra.mxu0 %v1202_v31 }
 0x653   : > { %v1167_v54 = vpop.permute.xlu1 %1166 }
 0x656   : > { %v2600_v42 = vpop.eup %2599 }
 0x657   : > { %v1068_v45 = vmul.f32 %v2600_v42, %v2584_v62  ;;  %v1171_v52 = vpop.permute.xlu1 %1170 }
 0x659   : > { %v1073_v48 = vpack.c.bf16 %v1068_v45, %v1067_v44 }
 0x65b   : > { %2242 = vmatprep.mubr.msk.bf16.mxu0 %vm680_vm4, %v1073_v48 }
 0x65c   : > { %2243 = vmatmul.mubr.msk.bf16.gmra.mrb[12].mxu0 %vm680_vm4, %v1074_v50 }
 0x65d   : > { %2254 = vmatprep.mubr.msk.bf16.mxu0 %vm590_vm3, %v1165_v51 }
 0x664   : > { %2255 = vmatmul.mubr.msk.bf16.vlgmr.msra.gmra.mrb[16].mxu0 %vm590_vm3, %v1167_v54 }
 0x665   : > { %2258 = vmatprep.mubr.msk.bf16.mxu0 %vm590_vm3, %v1169_v56 }
 0x66c   : > { %2259 = vmatmul.mubr.msk.bf16.gmra.mrb[20].mxu0 %vm590_vm3, %v1171_v52 }
 0x702   : > { %v3254_v35 = vpop.f32.mrb[8].mxu0 }
 0x703   : > { %v3256_v47 = vpop.f32.mrb[9].mxu0 }
 0x704   : > { %v3258_v57 = vpop.f32.mrb[10].mxu0 }
 0x705   : > { %v2478_v62 = vpack.i.bf16 %v3258_v57, %v3254_v35  ;;  %v3262_v63 = vpop.f32.mrb[11].mxu0 }
 0x706   : > { %v2473_v53 = vpack.i.bf16 %v3262_v63, %v3256_v47 }
 0x72f   : > { %v3266_v0 = vpop.f32.mrb[12].mxu0 }
 0x730   : > { %v3268_v1 = vpop.f32.mrb[13].mxu0 }
 0x731   : > { %v3270_v11 = vpop.f32.mrb[14].mxu0 }
 0x732   : > { %v2488_v2 = vpack.i.bf16 %v3270_v11, %v3266_v0  ;;  %v3274_v8 = vpop.f32.mrb[15].mxu0 }
 0x733   : > { %v2483_v9 = vpack.i.bf16 %v3274_v8, %v3268_v1 }
 0x737   : > { %v2256_v10 = vpop.f32.mrb[16].mxu0 }
 0x738   : > { %v1238_v12 = vpop.f32.mrb[17].mxu0  ;;  %v1275_v13 = vsel %vm680_vm4, %v2256_v10, -inf }
 0x739   : > { %1276 = vmax.xlane.f32.xlu0 %v1275_v13  ;;  %v2257_v4 = vpop.f32.mrb[18].mxu0  ;;  %v1269_v5 = vsel %vm680_vm4, %v1238_v12, -inf }
 0x73a   : > { %v1241_v55 = vpop.f32.mrb[19].mxu0  ;;  %v1278_v14 = vsel %vm680_vm4, %v2257_v4, -inf }
 0x73b   : > { %v1272_v59 = vsel %vm680_vm4, %v1241_v55, -inf }
 0x73c   : > { %1273 = vmax.xlane.f32.xlu1 %v1272_v59 }
 0x73d   : > { %1270 = vmax.xlane.f32.xlu0 %v1269_v5 }
 0x73f   : > { %v2260_v6 = vpop.f32.mrb[20].mxu0 }
 0x740   : > { %v1254_v7 = vpop.f32.mrb[21].mxu0  ;;  %v1287_v17 = vsel %vm680_vm4, %v2260_v6, -inf }
 0x741   : > { %1279 = vmax.xlane.f32.xlu0 %v1278_v14  ;;  %1288 = vmax.xlane.f32.xlu1 %v1287_v17  ;;  %v2261_v22 = vpop.f32.mrb[22].mxu0  ;;  %v1281_v16 = vsel %vm680_vm4, %v1254_v7, -inf }
 0x742   : > { %v3283_v28 = vpop.f32.mrb[23].mxu0  ;;  %v1290_v29 = vsel %vm680_vm4, %v2261_v22, -inf }
 0x743   : > { %v1284_v30 = vsel %vm680_vm4, %v3283_v28, -inf }
 0x745   : > { %1282 = vmax.xlane.f32.xlu1 %v1281_v16  ;;  %1285 = vmax.xlane.f32.xlu0 %v1284_v30 }
 0x749   : > { %1291 = vmax.xlane.f32.xlu0 %v1290_v29 }
 0x756   : > { %1361 = vrot.lane.b32.xlu1 %v3078_v58, %s2729_s9 }
 0x75a   : > { %1365 = vrot.lane.b32.xlu1 %v3106_v25, %s2729_s9 }
 0x75e   : > { %1367 = vrot.lane.b32.xlu1 %v3114_v37, %s2729_s9 }
 0x75f   : > { %1363 = vrot.lane.b32.xlu0 %v3082_v61, %s2729_s9 }
 0x762   : > { %1458 = vrot.lane.b32.xlu1 %v3026_v60, %s2730_s10 }
 0x7c6   : > { %v1277_v21 = vpop.xlane.xlu0 %1276 }
 0x7c7   : > { %v1295_v31 = vsub.f32 %v2256_v10, %v1277_v21 }
 0x7c9   : > { %v1305_v33 = vmul.f32 1.442695, %v1295_v31  ;;  %v1274_v34 = vpop.xlane.xlu1 %1273 }
 0x7ca   : > { %v1271_v24 = vpop.xlane.xlu0 %1270  ;;  %v1294_v44 = vsub.f32 %v1241_v55, %v1274_v34 }
 0x7cb   : > { %2601 = vpow2.f32 %v1305_v33  ;;  %v1293_v42 = vsub.f32 %v1238_v12, %v1271_v24 }
 0x7cc   : > { %v1303_v51 = vmul.f32 1.442695, %v1294_v44 }
 0x7cd   : > { %v1301_v43 = vmul.f32 1.442695, %v1293_v42 }
 0x7ce   : > { %v1289_v45 = vpop.xlane.xlu1 %1288  ;;  %v1280_v46 = vpop.xlane.xlu0 %1279 }
 0x7cf   : > { %2603 = vpow2.f32 %v1301_v43  ;;  %v1296_v48 = vsub.f32 %v2257_v4, %v1280_v46  ;;  %v1299_v54 = vsub.f32 %v2260_v6, %v1289_v45 }
 0x7d1   : > { %v1307_v50 = vmul.f32 1.442695, %v1296_v48  ;;  %v1313_v10 = vmul.f32 1.442695, %v1299_v54 }
 0x7d2   : > { %v1283_v56 = vpop.xlane.xlu1 %1282  ;;  %v1286_v52 = vpop.xlane.xlu0 %1285 }
 0x7d3   : > { %2605 = vpow2.f32 %v1307_v50  ;;  %v1297_v13 = vsub.f32 %v1254_v7, %v1283_v56  ;;  %v1298_v46 = vsub.f32 %v3283_v28, %v1286_v52 }
 0x7d4   : > { %2607 = vpow2.f32 %v1303_v51 }
 0x7d5   : > { %v3299_v60 = vpop.eup %2601  ;;  %2609 = vpow2.f32 %v1313_v10  ;;  %v1309_v55 = vmul.f32 1.442695, %v1297_v13  ;;  %v1311_v48 = vmul.f32 1.442695, %v1298_v46 }
 0x7d6   : > { %v1362_v59 = vpop.permute.xlu1 %1361  ;;  %v1292_v5 = vpop.xlane.xlu0 %1291  ;;  %v1323_v12 = vsel %vm680_vm4, %v3299_v60, 0.0 }
 0x7d7   : > { %2262 = vmatprep.subr.bf16.mxu1 %v1362_v59  ;;  %1324 = vadd.xlane.f32.xlu1 %v1323_v12  ;;  %v1300_v6 = vsub.f32 %v2261_v22, %v1292_v5  ;;  %2611 = vpow2.f32 %v1309_v55 }
 0x7d8   : > { %2263 = vmatpush3.bf16.msra.mxu1 %v1362_v59 }
 0x7d9   : > { %v3303_v4 = vpop.eup %2603  ;;  %v1315_v16 = vmul.f32 1.442695, %v1300_v6 }
 0x7da   : > { %v1366_v14 = vpop.permute.xlu1 %1365  ;;  %v1364_v17 = vpop.permute.xlu0 %1363  ;;  %v1317_v30 = vsel %vm680_vm4, %v3303_v4, 0.0 }
 0x7db   : > { %1318 = vadd.xlane.f32.xlu1 %v1317_v30  ;;  %2264 = vmatprep.subr.bf16.mxu1 %v1364_v17  ;;  %2613 = vpow2.f32 %v1315_v16 }
 0x7dc   : > { %2265 = vmatpush3.bf16.msra.mxu1 %v1364_v17  ;;  %2615 = vpow2.f32 %v1311_v48 }
 0x7dd   : > { %2266 = vmatprep.subr.bf16.mxu1 %v1366_v14  ;;  %v2606_v7 = vpop.eup %2605 }
 0x7de   : > { %v1368_v29 = vpop.permute.xlu1 %1367  ;;  %v1326_v21 = vsel %vm680_vm4, %v2606_v7, 0.0  ;;  %v2608_v31 = vpop.eup %2607 }
 0x7df   : > { %1327 = vadd.xlane.f32.xlu0 %v1326_v21  ;;  %v1320_v22 = vsel %vm680_vm4, %v2608_v31, 0.0  ;;  %v3309_v33 = vpop.eup %2609 }
 0x7e0   : > { %2267 = vmatpush3.bf16.msra.mxu1 %v1366_v14  ;;  %v1335_v24 = vsel %vm680_vm4, %v3309_v33, 0.0 }
 0x7e1   : > { %2268 = vmatprep.subr.bf16.mxu1 %v1368_v29  ;;  %v3314_v42 = vpop.eup %2611 }
 0x7e2   : > { %v1459_v34 = vpop.permute.xlu1 %1458  ;;  %v1329_v43 = vsel %vm680_vm4, %v3314_v42, 0.0 }
 0x7e3   : > { %1321 = vadd.xlane.f32.xlu0 %v1320_v22  ;;  %v1479_v14 = vsel %vm590_vm3, %v1459_v34, 0 }
 0x7e4   : > { %2269 = vmatpush3.bf16.msra.mxu1 %v1368_v29 }
 0x7e5   : > { %2322 = vmatprep.subr.msk.bf16.mxu1 %vm590_vm3, %v1459_v34  ;;  %v3318_v44 = vpop.eup %2613 }
 0x7e6   : > { %v1338_v45 = vsel %vm680_vm4, %v3318_v44, 0.0  ;;  %v2616_v50 = vpop.eup %2615 }
 0x7e7   : > { %1336 = vadd.xlane.f32.xlu0 %v1335_v24 }
 0x7eb   : > { %1330 = vadd.xlane.f32.xlu0 %v1329_v43 }
 0x7ec   : > { %1462 = vrot.lane.b32.xlu1 %v3038_v15, %s2730_s10  ;;  %v1332_v15 = vsel %vm680_vm4, %v2616_v50, 0.0 }
 0x7ef   : > { %1339 = vadd.xlane.f32.xlu0 %v1338_v45 }
 0x805   : > { %1460 = vrot.lane.b32.xlu0 %v3032_v3, %s2730_s10 }
 0x809   : > { %1450 = vrot.lane.b32.xlu0 %v2920_v40, %s2731_s21 }
 0x80d   : > { %1454 = vrot.lane.b32.xlu0 %v2999_v27, %s2731_s21 }
 0x810   : > { %1333 = vadd.xlane.f32.xlu1 %v1332_v15 }
 0x821   : > { %1464 = vrot.lane.b32.xlu1 %v3044_v20, %s2730_s10 }
 0x825   : > { %1452 = vrot.lane.b32.xlu1 %v2967_v36, %s2731_s21 }
 0x829   : > { %1456 = vrot.lane.b32.xlu1 %v3022_v49, %s2731_s21 }
 0x864   : > { %v1325_v3 = vpop.xlane.xlu1 %1324 }
 0x868   : > { %v1319_v28 = vpop.xlane.xlu1 %1318 }
 0x86c   : > { %v1328_v51 = vpop.xlane.xlu0 %1327  ;;  %v1463_v30 = vpop.permute.xlu1 %1462 }
 0x86d   : > { %2617 = vrcp.f32 %v1328_v51 }
 0x86e   : > { %2619 = vrcp.f32 %v1319_v28 }
 0x86f   : > { %2621 = vrcp.f32 %v1325_v3 }
 0x870   : > { %v1322_v40 = vpop.xlane.xlu0 %1321 }
 0x871   : > { %2623 = vrcp.f32 %v1322_v40 }
 0x874   : > { %v1337_v27 = vpop.xlane.xlu0 %1336 }
 0x877   : > { %v2618_v54 = vpop.eup %2617 }
 0x878   : > { %v1331_v56 = vpop.xlane.xlu0 %1330  ;;  %v2620_v52 = vpop.eup %2619  ;;  %v1352_v13 = vmul.f32 %v2618_v54, %v2606_v7 }
 0x879   : > { %v2622_v10 = vpop.eup %2621  ;;  %v1349_v36 = vmul.f32 %v2620_v52, %v3303_v4 }
 0x87a   : > { %v1351_v49 = vmul.f32 %v2622_v10, %v3299_v60  ;;  %v1485_v60 = vsel %vm590_vm3, %v1463_v30, 0 }
 0x87b   : > { %v2624_v20 = vpop.eup %2623 }
 0x87c   : > { %v1340_v59 = vpop.xlane.xlu0 %1339  ;;  %v1350_v5 = vmul.f32 %v2624_v20, %v2608_v31  ;;  %v1358_v55 = vpack.c.bf16 %v1352_v13, %v1351_v49 }
 0x87d   : > { %2625 = vrcp.f32 %v1340_v59 }
 0x87e   : > { %v1357_v12 = vpack.c.bf16 %v1350_v5, %v1349_v36  ;;  %2627 = vrcp.f32 %v1331_v56 }
 0x87f   : > { %2629 = vrcp.f32 %v1337_v27 }
 0x880   : > { %2270 = vmatprep.mubr.msk.bf16.mxu1 %vm680_vm4, %v1357_v12  ;;  %v1461_v6 = vpop.permute.xlu0 %1460 }
 0x881   : > { %2271 = vmatmul.mubr.msk.bf16.vlgmr.msra.gmra.mrb[16].mxu1 %vm680_vm4, %v1358_v55  ;;  %v1482_v17 = vsel %vm590_vm3, %v1461_v6, 0 }
 0x882   : > { %2279 = vmatpush3.bf16.xpose.msra.mxu1 %v1479_v14 }
 0x883   : > { %2323 = vmatprep.subr.msk.bf16.mxu1 %vm590_vm3, %v1461_v6 }
 0x884   : > { %v1451_v15 = vpop.permute.xlu0 %1450 }
 0x887   : > { %v2626_v29 = vpop.eup %2625 }
 0x888   : > { %v2628_v21 = vpop.eup %2627  ;;  %v1356_v34 = vmul.f32 %v2626_v29, %v3318_v44  ;;  %v1455_v28 = vpop.permute.xlu0 %1454 }
 0x889   : > { %v2630_v31 = vpop.eup %2629  ;;  %v1353_v24 = vmul.f32 %v2628_v21, %v3314_v42 }
 0x88a   : > { %2281 = vmatpush3.bf16.xpose.msra.mxu1 %v1482_v17  ;;  %v1355_v45 = vmul.f32 %v2630_v31, %v3309_v33 }
 0x88b   : > { %2324 = vmatprep.subr.msk.bf16.mxu1 %vm590_vm3, %v1463_v30 }
 0x88c   : > { %v1360_v48 = vpack.c.bf16 %v1356_v34, %v1355_v45 }
 0x892   : > { %2283 = vmatpush3.bf16.xpose.msra.mxu1 %v1485_v60 }
 0x89d   : > { %v1334_v4 = vpop.xlane.xlu1 %1333 }
 0x89e   : > { %2631 = vrcp.f32 %v1334_v4 }
 0x8a1   : > { %v1465_v7 = vpop.permute.xlu1 %1464 }
 0x8a2   : > { %v1488_v16 = vsel %vm590_vm3, %v1465_v7, 0  ;;  %2325 = vmatprep.subr.msk.bf16.mxu1 %vm590_vm3, %v1465_v7 }
 0x8a3   : > { %2285 = vmatpush3.bf16.xpose.msra.mxu1 %v1488_v16 }
 0x8a5   : > { %v1453_v3 = vpop.permute.xlu1 %1452 }
 0x8a8   : > { %v2632_v22 = vpop.eup %2631 }
 0x8a9   : > { %v1354_v43 = vmul.f32 %v2632_v22, %v2616_v50  ;;  %v1457_v44 = vpop.permute.xlu1 %1456 }
 0x8ab   : > { %v1359_v46 = vpack.c.bf16 %v1354_v43, %v1353_v24 }
 0x8ad   : > { %2274 = vmatprep.mubr.msk.bf16.mxu1 %vm680_vm4, %v1359_v46 }
 0x8ae   : > { %2275 = vmatmul.mubr.msk.bf16.gmra.mrb[20].mxu1 %vm680_vm4, %v1360_v48 }
 0x8af   : > { %2286 = vmatprep.mubr.msk.bf16.mxu1 %vm590_vm3, %v1451_v15 }
 0x8b6   : > { %2287 = vmatmul.mubr.msk.bf16.vlgmr.msra.gmra.mrb[24].mxu1 %vm590_vm3, %v1453_v3 }
 0x8b7   : > { %2290 = vmatprep.mubr.msk.bf16.mxu1 %vm590_vm3, %v1455_v28 }
 0x8be   : > { %2291 = vmatmul.mubr.msk.bf16.gmra.mrb[28].mxu1 %vm590_vm3, %v1457_v44 }
 0x954   : > { %v3358_v42 = vpop.f32.mrb[16].mxu1 }
 0x955   : > { %v3360_v33 = vpop.f32.mrb[17].mxu1 }
 0x956   : > { %v3362_v50 = vpop.f32.mrb[18].mxu1 }
 0x957   : > { %v2498_v51 = vpack.i.bf16 %v3362_v50, %v3358_v42  ;;  %v3366_v40 = vpop.f32.mrb[19].mxu1 }
 0x958   : > { %v2493_v27 = vpack.i.bf16 %v3366_v40, %v3360_v33 }
 0x981   : > { %v3370_v54 = vpop.f32.mrb[20].mxu1 }
 0x982   : > { %v3372_v56 = vpop.f32.mrb[21].mxu1 }
 0x983   : > { %v3374_v52 = vpop.f32.mrb[22].mxu1 }
 0x984   : > { %v2508_v10 = vpack.i.bf16 %v3374_v52, %v3370_v54  ;;  %v3378_v20 = vpop.f32.mrb[23].mxu1 }
 0x985   : > { %v2503_v13 = vpack.i.bf16 %v3378_v20, %v3372_v56 }
 0x989   : > { %v2288_v59 = vpop.f32.mrb[24].mxu1 }
 0x98a   : > { %v1524_v36 = vpop.f32.mrb[25].mxu1  ;;  %v1561_v6 = vsel %vm680_vm4, %v2288_v59, -inf }
 0x98b   : > { %v2289_v5 = vpop.f32.mrb[26].mxu1  ;;  %v1555_v49 = vsel %vm680_vm4, %v1524_v36, -inf }
 0x98c   : > { %1556 = vmax.xlane.f32.xlu0 %v1555_v49  ;;  %v1527_v12 = vpop.f32.mrb[27].mxu1  ;;  %v1564_v60 = vsel %vm680_vm4, %v2289_v5, -inf }
 0x98d   : > { %v1558_v55 = vsel %vm680_vm4, %v1527_v12, -inf }
 0x98e   : > { %1559 = vmax.xlane.f32.xlu1 %v1558_v55 }
 0x990   : > { %1562 = vmax.xlane.f32.xlu0 %v1561_v6 }
 0x991   : > { %v2292_v14 = vpop.f32.mrb[28].mxu1 }
 0x992   : > { %v1540_v17 = vpop.f32.mrb[29].mxu1  ;;  %v1573_v29 = vsel %vm680_vm4, %v2292_v14, -inf }
 0x993   : > { %v2293_v30 = vpop.f32.mrb[30].mxu1  ;;  %v1567_v4 = vsel %vm680_vm4, %v1540_v17, -inf }
 0x994   : > { %1565 = vmax.xlane.f32.xlu0 %v1564_v60  ;;  %1568 = vmax.xlane.f32.xlu1 %v1567_v4  ;;  %v1543_v7 = vpop.f32.mrb[31].mxu1  ;;  %v1576_v21 = vsel %vm680_vm4, %v2293_v30, -inf }
 0x995   : > { %v1570_v16 = vsel %vm680_vm4, %v1543_v7, -inf }
 0x998   : > { %1574 = vmax.xlane.f32.xlu1 %v1573_v29  ;;  %1571 = vmax.xlane.f32.xlu0 %v1570_v16 }
 0x99c   : > { %1577 = vmax.xlane.f32.xlu0 %v1576_v21 }
 0x9a9   : > { %1647 = vrot.lane.b32.xlu1 %v3078_v58, %s2731_s21 }
 0xa19   : > { %v1557_v31 = vpop.xlane.xlu0 %1556 }
 0xa1a   : > { %v1579_v22 = vsub.f32 %v1524_v36, %v1557_v31 }
 0xa1b   : > { %v1560_v34 = vpop.xlane.xlu1 %1559 }
 0xa1c   : > { %v1587_v45 = vmul.f32 1.442695, %v1579_v22  ;;  %v1580_v48 = vsub.f32 %v1527_v12, %v1560_v34 }
 0xa1d   : > { %v1563_v24 = vpop.xlane.xlu0 %1562 }
 0xa1e   : > { %v1581_v43 = vsub.f32 %v2288_v59, %v1563_v24  ;;  %v1589_v55 = vmul.f32 1.442695, %v1580_v48 }
 0xa20   : > { %v1591_v46 = vmul.f32 1.442695, %v1581_v43 }
 0xa21   : > { %v1569_v15 = vpop.xlane.xlu1 %1568  ;;  %v1566_v3 = vpop.xlane.xlu0 %1565 }
 0xa22   : > { %2633 = vpow2.f32 %v1591_v46  ;;  %v1582_v28 = vsub.f32 %v2289_v5, %v1566_v3  ;;  %v1583_v44 = vsub.f32 %v1540_v17, %v1569_v15 }
 0xa23   : > { %2635 = vpow2.f32 %v1587_v45 }
 0xa24   : > { %v1593_v49 = vmul.f32 1.442695, %v1582_v28  ;;  %v1595_v58 = vmul.f32 1.442695, %v1583_v44 }
 0xa25   : > { %v1575_v6 = vpop.xlane.xlu1 %1574  ;;  %v1572_v60 = vpop.xlane.xlu0 %1571 }
 0xa26   : > { %v1585_v4 = vsub.f32 %v2292_v14, %v1575_v6  ;;  %2637 = vpow2.f32 %v1593_v49  ;;  %v1584_v16 = vsub.f32 %v1543_v7, %v1572_v60 }
 0xa27   : > { %2639 = vpow2.f32 %v1589_v55 }
 0xa28   : > { %v1599_v36 = vmul.f32 1.442695, %v1585_v4  ;;  %v1597_v17 = vmul.f32 1.442695, %v1584_v16 }
 0xa29   : > { %v1578_v59 = vpop.xlane.xlu0 %1577  ;;  %v1648_v29 = vpop.permute.xlu1 %1647 }
 0xa2a   : > { %2641 = vpow2.f32 %v1599_v36  ;;  %v1586_v12 = vsub.f32 %v2293_v30, %v1578_v59  ;;  %2294 = vmatprep.subr.bf16.mxu0 %v1648_v29 }
 0xa2b   : > { %2295 = vmatpush3.bf16.msra.mxu0 %v1648_v29  ;;  %2643 = vpow2.f32 %v1595_v58 }
 0xa2c   : > { %v3392_v21 = vpop.eup %2633  ;;  %v1601_v5 = vmul.f32 1.442695, %v1586_v12 }
 0xa2d   : > { %v1609_v31 = vsel %vm680_vm4, %v3392_v21, 0.0  ;;  %v2636_v14 = vpop.eup %2635 }
 0xa2e   : > { %2645 = vpow2.f32 %v1601_v5  ;;  %1610 = vadd.xlane.f32.xlu1 %v1609_v31  ;;  %v1603_v7 = vsel %vm680_vm4, %v2636_v14, 0.0 }
 0xa2f   : > { %2647 = vpow2.f32 %v1597_v17 }
 0xa30   : > { %v3396_v22 = vpop.eup %2637 }
 0xa31   : > { %v1612_v30 = vsel %vm680_vm4, %v3396_v22, 0.0  ;;  %v2640_v34 = vpop.eup %2639 }
 0xa32   : > { %1604 = vadd.xlane.f32.xlu1 %v1603_v7  ;;  %1613 = vadd.xlane.f32.xlu0 %v1612_v30  ;;  %v1606_v46 = vsel %vm680_vm4, %v2640_v34, 0.0 }
 0xa34   : > { %v3401_v24 = vpop.eup %2641 }
 0xa35   : > { %v1621_v43 = vsel %vm680_vm4, %v3401_v24, 0.0  ;;  %v2644_v45 = vpop.eup %2643 }
 0xa36   : > { %1622 = vadd.xlane.f32.xlu1 %v1621_v43  ;;  %1607 = vadd.xlane.f32.xlu0 %v1606_v46  ;;  %v1615_v15 = vsel %vm680_vm4, %v2644_v45, 0.0 }
 0xa38   : > { %v3406_v48 = vpop.eup %2645 }
 0xa39   : > { %v1624_v3 = vsel %vm680_vm4, %v3406_v48, 0.0  ;;  %v2648_v28 = vpop.eup %2647 }
 0xa3a   : > { %1616 = vadd.xlane.f32.xlu1 %v1615_v15  ;;  %1625 = vadd.xlane.f32.xlu0 %v1624_v3  ;;  %v1618_v44 = vsel %vm680_vm4, %v2648_v28, 0.0 }
 0xa3e   : > { %1619 = vadd.xlane.f32.xlu0 %v1618_v44 }
 0xa4b   : > { %1651 = vrot.lane.b32.xlu1 %v3106_v25, %s2731_s21 }
 0xa4f   : > { %1653 = vrot.lane.b32.xlu1 %v3114_v37, %s2731_s21 }
 0xa53   : > { %2479 = vrot.lane.b32.xlu1 %v2478_v62, %s2730_s10 }
 0xa54   : > { %1649 = vrot.lane.b32.xlu0 %v3082_v61, %s2731_s21 }
 0xa57   : > { %2489 = vrot.lane.b32.xlu1 %v2488_v2, %s2730_s10 }
 0xa58   : > { %2474 = vrot.lane.b32.xlu0 %v2473_v53, %s2730_s10 }
 0xa5b   : > { %2499 = vrot.lane.b32.xlu1 %v2498_v51, %s2728_s8 }
 0xa5c   : > { %2484 = vrot.lane.b32.xlu0 %v2483_v9, %s2730_s10 }
 0xa5f   : > { %2509 = vrot.lane.b32.xlu1 %v2508_v10, %s2728_s8 }
 0xa60   : > { %2494 = vrot.lane.b32.xlu0 %v2493_v27, %s2728_s8 }
 0xa64   : > { %2504 = vrot.lane.b32.xlu0 %v2503_v13, %s2728_s8 }
 0xabb   : > { %v1611_v61 = vpop.xlane.xlu1 %1610 }
 0xabf   : > { %v1605_v25 = vpop.xlane.xlu1 %1604  ;;  %v1614_v37 = vpop.xlane.xlu0 %1613 }
 0xac0   : > { %2649 = vrcp.f32 %v1605_v25 }
 0xac3   : > { %v1623_v35 = vpop.xlane.xlu1 %1622  ;;  %v1608_v47 = vpop.xlane.xlu0 %1607 }
 0xac4   : > { %2651 = vrcp.f32 %v1608_v47 }
 0xac5   : > { %2653 = vrcp.f32 %v1614_v37 }
 0xac6   : > { %2655 = vrcp.f32 %v1611_v61 }
 0xac7   : > { %v1626_v57 = vpop.xlane.xlu0 %1625  ;;  %v1617_v62 = vpop.xlane.xlu1 %1616 }
 0xac8   : > { %2657 = vrcp.f32 %v1617_v62 }
 0xaca   : > { %v2650_v53 = vpop.eup %2649 }
 0xacb   : > { %v1620_v63 = vpop.xlane.xlu0 %1619  ;;  %v1652_v1 = vpop.permute.xlu1 %1651  ;;  %v1635_v2 = vmul.f32 %v2650_v53, %v2636_v14 }
 0xacc   : > { %2659 = vrcp.f32 %v1620_v63 }
 0xacd   : > { %2661 = vrcp.f32 %v1626_v57 }
 0xace   : > { %v2652_v0 = vpop.eup %2651  ;;  %2663 = vrcp.f32 %v1623_v35 }
 0xacf   : > { %v1650_v11 = vpop.permute.xlu0 %1649  ;;  %v1636_v8 = vmul.f32 %v2652_v0, %v2640_v34  ;;  %v2654_v42 = vpop.eup %2653 }
 0xad0   : > { %2296 = vmatprep.subr.bf16.mxu0 %v1650_v11  ;;  %v2656_v33 = vpop.eup %2655  ;;  %v1654_v51 = vpop.permute.xlu1 %1653  ;;  %v1638_v27 = vmul.f32 %v2654_v42, %v3396_v22 }
 0xad1   : > { %2297 = vmatpush3.bf16.msra.mxu0 %v1650_v11  ;;  %v1643_v9 = vpack.c.bf16 %v1636_v8, %v1635_v2  ;;  %v1637_v56 = vmul.f32 %v2656_v33, %v3392_v21 }
 0xad2   : > { %2298 = vmatprep.subr.bf16.mxu0 %v1652_v1  ;;  %v2658_v50 = vpop.eup %2657 }
 0xad3   : > { %2302 = vmatprep.mubr.msk.bf16.mxu0 %vm680_vm4, %v1643_v9  ;;  %v1639_v52 = vmul.f32 %v2658_v50, %v2644_v45  ;;  %v1644_v10 = vpack.c.bf16 %v1638_v27, %v1637_v56  ;;  %v2475_v7 = vpop.permute.xlu0 %2474 }
 0xad4   : > { %v2480_v22 = vpop.permute.xlu1 %2479  ;;  %v2476_v15 = vunpack.i.l.bf16 %v2475_v7 }
 0xad5   : > { %2299 = vmatpush3.bf16.msra.mxu0 %v1652_v1  ;;  %v2482_v45 = vunpack.i.h.bf16 %v2480_v22  ;;  %v2481_v46 = vunpack.i.l.bf16 %v2480_v22 }
 0xad6   : > { %v2660_v40 = vpop.eup %2659  ;;  %2300 = vmatprep.subr.bf16.mxu0 %v1654_v51  ;;  %v1832_v62 = vsel %vm590_vm3, %v3160_v26, %v2476_v15 }
 0xad7   : > { %v1640_v54 = vmul.f32 %v2660_v40, %v2648_v28  ;;  %v2662_v20 = vpop.eup %2661  ;;  %v2485_v34 = vpop.permute.xlu0 %2484  ;;  %v1835_v37 = vsel %vm590_vm3, %v3162_v18, %v2482_v45  ;;  %v1834_v35 = vsel %vm590_vm3, %v3158_v32, %v2481_v46 }
 0xad8   : > { %v2664_v49 = vpop.eup %2663  ;;  %v1642_v55 = vmul.f32 %v2662_v20, %v3406_v48  ;;  %v2490_v30 = vpop.permute.xlu1 %2489  ;;  %v2477_v48 = vunpack.i.h.bf16 %v2475_v7  ;;  %v2486_v56 = vunpack.i.l.bf16 %v2485_v34 }
 0xad9   : > { %2301 = vmatpush3.bf16.msra.mxu0 %v1654_v51  ;;  %v1645_v13 = vpack.c.bf16 %v1640_v54, %v1639_v52  ;;  %v1641_v6 = vmul.f32 %v2664_v49, %v3401_v24  ;;  %v2492_v63 = vunpack.i.h.bf16 %v2490_v30  ;;  %v2491_v0 = vunpack.i.l.bf16 %v2490_v30 }
 0xada   : > { %v1833_v57 = vsel %vm590_vm3, %v3164_v19, %v2477_v48  ;;  %v2487_v54 = vunpack.i.h.bf16 %v2485_v34 }
 0xadb   : > { %v1646_v60 = vpack.c.bf16 %v1642_v55, %v1641_v6  ;;  %v2495_v43 = vpop.permute.xlu0 %2494  ;;  %v1839_v6 = vsel %vm590_vm3, %v3170_v41, %v2492_v63 }
 0xadc   : > { %2303 = vmatmul.mubr.msk.bf16.vlgmr.msra.gmra.mrb[24].mxu0 %vm680_vm4, %v1644_v10  ;;  %v2500_v24 = vpop.permute.xlu1 %2499  ;;  %v2496_v25 = vunpack.i.l.bf16 %v2495_v43  ;;  %v2497_v47 = vunpack.i.h.bf16 %v2495_v43 }
 0xadd   : > { %2306 = vmatprep.mubr.msk.bf16.mxu0 %vm680_vm4, %v1645_v13  ;;  %v2501_v28 = vunpack.i.l.bf16 %v2500_v24  ;;  %v2502_v61 = vunpack.i.h.bf16 %v2500_v24 }
 0xade   : > { %v1841_v8 = vsel %vm1840_vm5, %v1832_v62, %v2496_v25  ;;  %v1842_v42 = vsel %vm1840_vm5, %v1833_v57, %v2497_v47 }
 0xadf   : > { %v2505_v44 = vpop.permute.xlu0 %2504  ;;  %v1843_v1 = vsel %vm1840_vm5, %v1834_v35, %v2501_v28  ;;  %v1844_v32 = vsel %vm1840_vm5, %v1835_v37, %v2502_v61 }
 0xae0   : > { %v2510_v3 = vpop.permute.xlu1 %2509  ;;  %v2507_v49 = vunpack.i.h.bf16 %v2505_v44  ;;  %v2506_v55 = vunpack.i.l.bf16 %v2505_v44 }
 0xae1   : > { %v2512_v20 = vunpack.i.h.bf16 %v2510_v3  ;;  %v2511_v13 = vunpack.i.l.bf16 %v2510_v3 }
 0xae3   : > { %v1848_v41 = vsel %vm1840_vm5, %v1839_v6, %v2512_v20 }
 0xae4   : > { %2307 = vmatmul.mubr.msk.bf16.gmra.mrb[28].mxu0 %vm680_vm4, %v1646_v60  ;;  %v1838_v60 = vsel %vm590_vm3, %v3166_v38, %v2491_v0 }
 0xbaf   : > { %v2304_v4 = vpop.f32.mrb[24].mxu0 }
 0xbb0   : > { %v1705_v58 = vpop.f32.mrb[25].mxu0 }
 0xbb1   : > { %v2305_v36 = vpop.f32.mrb[26].mxu0 }
 0xbb2   : > { %v2513_v16 = vpack.i.bf16 %v2305_v36, %v2304_v4  ;;  %v1708_v59 = vpop.f32.mrb[27].mxu0  ;;  %v1836_v36 = vsel %vm590_vm3, %v3168_v39, %v2486_v56 }
 0xbb3   : > { %v2518_v29 = vpack.i.bf16 %v1708_v59, %v1705_v58  ;;  %v1837_v58 = vsel %vm590_vm3, %v3172_v23, %v2487_v54 }
 0xbb4   : > { %2514 = vrot.lane.b32.xlu1 %v2513_v16, %s2726_s6  ;;  %v1846_v23 = vsel %vm1840_vm5, %v1837_v58, %v2507_v49 }
 0xbb5   : > { %2519 = vrot.lane.b32.xlu0 %v2518_v29, %s2726_s6 }
 0xbb7   : > { %v2308_v12 = vpop.f32.mrb[28].mxu0 }
 0xbb8   : > { %v1721_v21 = vpop.f32.mrb[29].mxu0 }
 0xbb9   : > { %v2309_v5 = vpop.f32.mrb[30].mxu0 }
 0xbba   : > { %v2528_v17 = vpack.i.bf16 %v2309_v5, %v2308_v12  ;;  %v1724_v31 = vpop.f32.mrb[31].mxu0  ;;  %v1847_v12 = vsel %vm1840_vm5, %v1838_v60, %v2511_v13  ;;  %v1845_v5 = vsel %vm1840_vm5, %v1836_v36, %v2506_v55 }
 0xbbb   : > { %v2523_v14 = vpack.i.bf16 %v1724_v31, %v1721_v21 }
 0xbbc   : > { %2529 = vrot.lane.b32.xlu1 %v2528_v17, %s2726_s6 }
 0xbbd   : > { %2524 = vrot.lane.b32.xlu0 %v2523_v14, %s2726_s6 }
 0xc26   : > { %v2515_v53 = vpop.permute.xlu1 %2514 }
 0xc27   : > { %v2517_v11 = vunpack.i.h.bf16 %v2515_v53  ;;  %v2516_v18 = vunpack.i.l.bf16 %v2515_v53  ;;  %v2520_v2 = vpop.permute.xlu0 %2519 }
 0xc28   : > { %v2522_v9 = vunpack.i.h.bf16 %v2520_v2  ;;  %v2521_v19 = vunpack.i.l.bf16 %v2520_v2 }
 0xc29   : > { %v1853_v26 = vsel %vm1849_vm6, %v1844_v32, %v2517_v11  ;;  %v1852_v33 = vsel %vm1849_vm6, %v1843_v1, %v2516_v18 }
 0xc2a   : > { %v2113_v50 = vpack.c.bf16 %v1853_v26, %v1853_v26  ;;  %v2112_v51 = vpack.c.bf16 %v1852_v33, %v1852_v33  ;;  %v1850_v40 = vsel %vm1849_vm6, %v1841_v8, %v2521_v19  ;;  %v1851_v27 = vsel %vm1849_vm6, %v1842_v42, %v2522_v9 }
 0xc2b   : > { %v2110_v52 = vpack.c.bf16 %v1850_v40, %v1850_v40  ;;  %v2111_v10 = vpack.c.bf16 %v1851_v27, %v1851_v27 }
 0xc2c   : > { %1894 = vst.msk [vmem:[%s3480_s12 + $0xc] sm:$0xf] %vm1890_vm7, %v2113_v50  ;;  %1893 = vst.msk [vmem:[%s3480_s12 + $0x8] sm:$0xf] %vm1890_vm7, %v2112_v51 }
 0xc2d   : > { %1891 = vst.msk [vmem:[%s3480_s12] sm:$0xf] %vm1890_vm7, %v2110_v52  ;;  %1892 = vst.msk [vmem:[%s3480_s12 + $0x4] sm:$0xf] %vm1890_vm7, %v2111_v10 }
 0xc2e   : > { %v2530_v4 = vpop.permute.xlu1 %2529 }
 0xc2f   : > { %v2532_v16 = vunpack.i.h.bf16 %v2530_v4  ;;  %v2531_v59 = vunpack.i.l.bf16 %v2530_v4  ;;  %v2525_v29 = vpop.permute.xlu0 %2524  ;;  %1905 = sbr.rel (!%p2800_p6) target bundleno = 3135 (0xc3f), region = 74 }
 0xc30   : > { %v2527_v21 = vunpack.i.h.bf16 %v2525_v29  ;;  %v2526_v38 = vunpack.i.l.bf16 %v2525_v29 }
 0xc31   : > { %v1857_v17 = vsel %vm1849_vm6, %v1848_v41, %v2532_v16  ;;  %v1856_v39 = vsel %vm1849_vm6, %v1847_v12, %v2531_v59 }
 0xc32   : > { %v2117_v31 = vpack.c.bf16 %v1857_v17, %v1857_v17  ;;  %v2116_v14 = vpack.c.bf16 %v1856_v39, %v1856_v39  ;;  %v1854_v22 = vsel %vm1849_vm6, %v1845_v5, %v2526_v38  ;;  %v1855_v7 = vsel %vm1849_vm6, %v1846_v23, %v2527_v21 }
 0xc33   : > { %v2114_v30 = vpack.c.bf16 %v1854_v22, %v1854_v22  ;;  %v2115_v34 = vpack.c.bf16 %v1855_v7, %v1855_v7  ;;  %v1929_v45 = vld [vmem:[%s3480_s12 + $0x8] sm:$0xf] (%p2800_p6)  ;;  %v1931_v46 = vld [vmem:[%s3480_s12 + $0xc] sm:$0xf] (%p2800_p6) }
 0xc34   : > { %1898 = vst.msk [vmem:[%s3480_s12 + $0x1c] sm:$0xf] %vm1890_vm7, %v2117_v31  ;;  %1897 = vst.msk [vmem:[%s3480_s12 + $0x18] sm:$0xf] %vm1890_vm7, %v2116_v14  ;;  %v1925_v24 = vld [vmem:[%s3480_s12] sm:$0xf] (%p2800_p6) }
 0xc35   : > { %1895 = vst.msk [vmem:[%s3480_s12 + $0x10] sm:$0xf] %vm1890_vm7, %v2114_v30  ;;  %1896 = vst.msk [vmem:[%s3480_s12 + $0x14] sm:$0xf] %vm1890_vm7, %v2115_v34  ;;  %v1927_v43 = vld [vmem:[%s3480_s12 + $0x4] sm:$0xf] (%p2800_p6) }
 0xc36   : > { %1926 = vst [vmem:[%s1909_s28] sm:$0xf] %v1925_v24  ;;  %1928 = vst [vmem:[%s1909_s28 + $0x8] sm:$0xf] %v1927_v43 }
 0xc37   : > { %1930 = vst [vmem:[%s1909_s28 + $0x10] sm:$0xf] %v1929_v45  ;;  %1932 = vst [vmem:[%s1909_s28 + $0x18] sm:$0xf] %v1931_v46 }
 0xc3b   : > { %v1937_v3 = vld [vmem:[%s3480_s12 + $0x18] sm:$0xf]  ;;  %v1939_v28 = vld [vmem:[%s3480_s12 + $0x1c] sm:$0xf] }
 0xc3c   : > { %v1933_v48 = vld [vmem:[%s3480_s12 + $0x10] sm:$0xf]  ;;  %v1935_v15 = vld [vmem:[%s3480_s12 + $0x14] sm:$0xf]  ;;  %1938 = vst [vmem:[%s1909_s28 + $0x30] sm:$0xf] %v1937_v3 }
 0xc3d   : > { %1934 = vst [vmem:[%s1909_s28 + $0x20] sm:$0xf] %v1933_v48  ;;  %1936 = vst [vmem:[%s1909_s28 + $0x28] sm:$0xf] %v1935_v15 }
 0xc3e   : > { %1940 = vst [vmem:[%s1909_s28 + $0x38] sm:$0xf] %v1939_v28 }
 0xc3f PF: > { %s13_s18 = sadd.s32 1, %s2719_s18   ;;  %s3557_s12 = smov %s2699_s13 }
 0xc40   : > { %p10_p12 = scmp.ge.s32.totalorder %s13_s18, 10   ;;  %s3558_s13 = smov %s2808_s27 }
 0xc41   : > { %s3559_s14 = smov %s2711_s16  ;;  %s3560_s15 = smov %s2715_s17 }
 0xc42   : > { %s3561_s16 = smov %s3564_s19  ;;  %s3562_s17 = smov %s3568_s20 }
 0xc43   :  { %12 = sbr.rel (!%p10_p12) target bundleno = 4 (0x4), region = 146 }

// kernel: block_forward.5
= control target key start
LH: loop header
LB: loop body
LE: loop exit
PB: predicated region body
PF: predicated region fallthrough
CT: control target
= control target key end

     0   :  { %s2141_s13 = smov 0   ;;  %s2934_s0 = inlined_call_operand.vmem [shape: f32[512,64], index: 0, kind: input, shape index: {}]   ;;  %s2935_s1 = inlined_call_operand.vmem [shape: bf16[512,64], index: 1, kind: input, shape index: {}]   ;;  %s2936_s2 = inlined_call_operand.vmem [shape: bf16[64,64], index: 2, kind: input, shape index: {}]   ;;  %s2937_s3 = inlined_call_operand.vmem [shape: f32[1,64], index: 3, kind: input, shape index: {}]   ;;  %s2938_s4 = inlined_call_operand.vmem [shape: f32[1,64], index: 4, kind: input, shape index: {}]   ;;  %s2939_s5 = inlined_call_operand.vmem [shape: f32[1,64], index: 5, kind: input, shape index: {}]   ;;  %s2940_s6 = inlined_call_operand.vmem [shape: bf16[64,256], index: 6, kind: input, shape index: {}]   ;;  %s2941_s7 = inlined_call_operand.vmem [shape: f32[1,256], index: 7, kind: input, shape index: {}]   ;;  %s2942_s8 = inlined_call_operand.vmem [shape: bf16[256,64], index: 8, kind: input, shape index: {}]   ;;  %s2943_s9 = inlined_call_operand.vmem [shape: f32[1,64], index: 9, kind: input, shape index: {}]   ;;  %s2944_s10 = inlined_call_operand.vmem [shape: f32[512,64], index: 10, kind: output, shape index: {}]  }
   0x1 LB: > { %s1747_s14 = sadd.s32 4294967295, %s2083_s13   ;;  %p1751_p0 = scmp.ge.s32.totalorder %s2083_s13, 1  ;;  %s2083_s13 = sphi %s2141_s13, %s20_s13  }
   0x2   : > { %p324_p1 = scmp.lt.s32.totalorder %s2083_s13, 5 }
   0x4   : > { %p325_p2 = pnand %p1751_p0, %p324_p1 }
   0x6   : > { %328 = sbr.rel (%p325_p2) target bundleno = 1101 (0x44d), region = 60 }
   0xd   : > { %v1941_v0 = vld [vmem:[%s2936_s2] sm:$0xff]   ;;  %s1752_s17 = sshll.u32 %s1747_s14, 4  ;;  %v1942_v1 = vld [vmem:[%s2936_s2 + $0x8] sm:$0xff]   ;;  %v1943_v2 = vld [vmem:[%s2936_s2 + $0x10] sm:$0xff]   ;;  %vm490_vm0 = vcmask 523264  }
   0xe   : > { %p368_p3 = scmp.lt.s32.totalorder %s1752_s17, 63  ;;  %1892 = vmatprep.subr.bf16.mxu0 %v1941_v0  ;;  %v1944_v4 = vld [vmem:[%s2936_s2 + $0x18] sm:$0xff]   ;;  %v2188_v15 = vld [vmem:[%s2937_s3] ss:$0 sm:$0xff] }
   0xf   : > { %1893 = vmatpush3.bf16.msra.mxu0 %v1941_v0 }
  0x10   : > { %s2968_s17 = smov (!%p368_p3, %s1752_s17), 63  ;;  %1894 = vmatprep.subr.bf16.mxu0 %v1942_v1 }
  0x11   : > { %s1755_s22 = sshll.u32 %s2968_s17, 2  ;;  %s1753_s28 = sshll.u32 %s2968_s17, 3 }
  0x12   : > { %s377_s25 = scalar_lea.vmem %s2935_s1, %s1755_s22  ;;  %s2181_s11 = scalar_lea.vmem %s2934_s0, %s1753_s28 }
  0x13   : > { %1895 = vmatpush3.bf16.msra.mxu0 %v1942_v1  ;;  %v1945_v3 = vld [vmem:[%s377_s25] sm:$0xff]   ;;  %v1946_v5 = vld [vmem:[%s377_s25 + $0x8] sm:$0xff]   ;;  %v1947_v6 = vld [vmem:[%s377_s25 + $0x10] sm:$0xff]   ;;  %s2866_s23 = scalar_lea.vmem %s2944_s10, %s1753_s28 }
  0x14   : > { %1896 = vmatprep.subr.bf16.mxu0 %v1943_v2  ;;  %1900 = vmatprep.mubr.msk.bf16.mxu0 %vm490_vm0, %v1945_v3  ;;  %v1948_v7 = vld [vmem:[%s377_s25 + $0x18] sm:$0xff]   ;;  %v1949_v8 = vld [vmem:[%s377_s25 + $0x20] sm:$0xff]   ;;  %v1950_v9 = vld [vmem:[%s377_s25 + $0x28] sm:$0xff]  }
  0x15   : > { %v1951_v10 = vld [vmem:[%s377_s25 + $0x30] sm:$0xff]   ;;  %v1952_v11 = vld [vmem:[%s377_s25 + $0x38] sm:$0xff]   ;;  %v386_v13 = vld [vmem:[%s2181_s11] sm:$0xff] }
  0x16   : > { %v388_v12 = vld [vmem:[%s2181_s11 + $0x10] sm:$0xff]  ;;  %v389_v16 = vld [vmem:[%s2181_s11 + $0x18] sm:$0xff]  ;;  %v387_v19 = vld [vmem:[%s2181_s11 + $0x8] sm:$0xff] }
  0x17   : > { %1897 = vmatpush3.bf16.msra.mxu0 %v1943_v2  ;;  %v392_v31 = vld [vmem:[%s2181_s11 + $0x30] sm:$0xff]  ;;  %v390_v32 = vld [vmem:[%s2181_s11 + $0x20] sm:$0xff]  ;;  %v393_v34 = vld [vmem:[%s2181_s11 + $0x38] sm:$0xff] }
  0x18   : > { %1898 = vmatprep.subr.bf16.mxu0 %v1944_v4  ;;  %v391_v38 = vld [vmem:[%s2181_s11 + $0x28] sm:$0xff]  ;;  %v396_v50 = vld [vmem:[%s2181_s11 + $0x50] sm:$0xff]  ;;  %v394_v51 = vld [vmem:[%s2181_s11 + $0x40] sm:$0xff] }
  0x19   : > { %v397_v54 = vld [vmem:[%s2181_s11 + $0x58] sm:$0xff]  ;;  %v395_v58 = vld [vmem:[%s2181_s11 + $0x48] sm:$0xff] }
  0x1b   : > { %1899 = vmatpush3.bf16.msra.mxu0 %v1944_v4 }
  0x1e   : > { %1901 = vmatmul.mubr.msk.bf16.vlgmr.msra.gmra.mrb[0].mxu0 %vm490_vm0, %v1946_v5 }
  0x1f   : > { %1904 = vmatprep.mubr.msk.bf16.mxu0 %vm490_vm0, %v1947_v6  ;;  %v400_v6 = vld [vmem:[%s2181_s11 + $0x70] sm:$0xff] }
  0x26   : > { %1905 = vmatmul.mubr.msk.bf16.gmra.mrb[4].mxu0 %vm490_vm0, %v1948_v7  ;;  %v398_v7 = vld [vmem:[%s2181_s11 + $0x60] sm:$0xff] }
  0x27   : > { %1908 = vmatprep.mubr.msk.bf16.mxu0 %vm490_vm0, %v1949_v8 }
  0x2e   : > { %1909 = vmatmul.mubr.msk.bf16.gmra.mrb[8].mxu0 %vm490_vm0, %v1950_v9 }
  0x2f   : > { %1912 = vmatprep.mubr.msk.bf16.mxu0 %vm490_vm0, %v1951_v10  ;;  %v401_v10 = vld [vmem:[%s2181_s11 + $0x78] sm:$0xff] }
  0x36   : > { %1913 = vmatmul.mubr.msk.bf16.gmra.mrb[12].mxu0 %vm490_vm0, %v1952_v11 }
  0xf1   : > { %v1902_v14 = vpop.f32.mrb[0].mxu0 }
  0xf2   : > { %v614_v17 = vadd.f32 %v1902_v14, %v388_v12  ;;  %v549_v18 = vpop.f32.mrb[1].mxu0  ;;  %v399_v14 = vld [vmem:[%s2181_s11 + $0x68] sm:$0xff] }
  0xf3   : > { %v612_v20 = vadd.f32 %v549_v18, %v386_v13  ;;  %v1903_v21 = vpop.f32.mrb[2].mxu0 }
  0xf4   : > { %v2193_v22 = vadd.f32 %v2188_v15, %v614_v17  ;;  %v615_v23 = vadd.f32 %v1903_v21, %v389_v16  ;;  %v552_v24 = vpop.f32.mrb[3].mxu0 }
  0xf5   : > { %v2196_v25 = vadd.f32 %v2188_v15, %v612_v20  ;;  %v613_v26 = vadd.f32 %v552_v24, %v387_v19 }
  0xf6   : > { %v2199_v27 = vadd.f32 %v2188_v15, %v615_v23  ;;  %v659_v28 = vsel %vm490_vm0, %v2193_v22, 0.0 }
  0xf7   : > { %v2204_v29 = vadd.f32 %v2188_v15, %v613_v26  ;;  %660 = vadd.xlane.f32.xlu1 %v659_v28  ;;  %v653_v30 = vsel %vm490_vm0, %v2196_v25, 0.0 }
  0xf8   : > { %654 = vadd.xlane.f32.xlu0 %v653_v30  ;;  %v662_v37 = vsel %vm490_vm0, %v2199_v27, 0.0 }
  0xf9   : > { %v1906_v33 = vpop.f32.mrb[4].mxu0  ;;  %v656_v41 = vsel %vm490_vm0, %v2204_v29, 0.0 }
  0xfa   : > { %v618_v35 = vadd.f32 %v1906_v33, %v392_v31  ;;  %v565_v36 = vpop.f32.mrb[5].mxu0 }
  0xfb   : > { %v616_v39 = vadd.f32 %v565_v36, %v390_v32  ;;  %v1907_v40 = vpop.f32.mrb[6].mxu0  ;;  %663 = vadd.xlane.f32.xlu1 %v662_v37 }
  0xfc   : > { %v619_v42 = vadd.f32 %v1907_v40, %v393_v34  ;;  %v568_v43 = vpop.f32.mrb[7].mxu0  ;;  %657 = vadd.xlane.f32.xlu0 %v656_v41  ;;  %v2217_v44 = vadd.f32 %v2188_v15, %v618_v35 }
  0xfd   : > { %v2220_v45 = vadd.f32 %v2188_v15, %v616_v39  ;;  %v617_v46 = vadd.f32 %v568_v43, %v391_v38 }
  0xfe   : > { %v2223_v47 = vadd.f32 %v2188_v15, %v619_v42  ;;  %v671_v55 = vsel %vm490_vm0, %v2217_v44, 0.0 }
  0xff   : > { %v2226_v48 = vadd.f32 %v2188_v15, %v617_v46  ;;  %v665_v49 = vsel %vm490_vm0, %v2220_v45, 0.0 }
 0x100   : > { %666 = vadd.xlane.f32.xlu0 %v665_v49  ;;  %v674_v61 = vsel %vm490_vm0, %v2223_v47, 0.0 }
 0x101   : > { %v1910_v52 = vpop.f32.mrb[8].mxu0  ;;  %v668_v53 = vsel %vm490_vm0, %v2226_v48, 0.0 }
 0x102   : > { %v622_v56 = vadd.f32 %v1910_v52, %v396_v50  ;;  %v581_v57 = vpop.f32.mrb[9].mxu0  ;;  %669 = vadd.xlane.f32.xlu1 %v668_v53 }
 0x103   : > { %v620_v59 = vadd.f32 %v581_v57, %v394_v51  ;;  %v1911_v60 = vpop.f32.mrb[10].mxu0 }
 0x104   : > { %v623_v62 = vadd.f32 %v1911_v60, %v397_v54  ;;  %v584_v63 = vpop.f32.mrb[11].mxu0  ;;  %672 = vadd.xlane.f32.xlu0 %v671_v55  ;;  %v2241_v0 = vadd.f32 %v2188_v15, %v622_v56 }
 0x105   : > { %v2244_v1 = vadd.f32 %v2188_v15, %v620_v59  ;;  %v621_v2 = vadd.f32 %v584_v63, %v395_v58 }
 0x106   : > { %2952 = vst [vmem:[#allocation2_spill] sm:$0xff] %v2241_v0  ;;  %675 = vadd.xlane.f32.xlu1 %v674_v61  ;;  %v2247_v3 = vadd.f32 %v2188_v15, %v623_v62  ;;  %v683_v11 = vsel %vm490_vm0, %v2241_v0, 0.0 }
 0x107   : > { %v2250_v4 = vadd.f32 %v2188_v15, %v621_v2  ;;  %v677_v5 = vsel %vm490_vm0, %v2244_v1, 0.0 }
 0x108   : > { %2953 = vst [vmem:[#allocation3_spill] sm:$0xff] %v2247_v3  ;;  %678 = vadd.xlane.f32.xlu0 %v677_v5  ;;  %v686_v18 = vsel %vm490_vm0, %v2247_v3, 0.0 }
 0x109   : > { %2954 = vst [vmem:[#allocation4_spill] sm:$0xff] %v2250_v4  ;;  %v1914_v8 = vpop.f32.mrb[12].mxu0  ;;  %v680_v9 = vsel %vm490_vm0, %v2250_v4, 0.0 }
 0x10a   : > { %v626_v12 = vadd.f32 %v1914_v8, %v400_v6  ;;  %v597_v13 = vpop.f32.mrb[13].mxu0  ;;  %681 = vadd.xlane.f32.xlu1 %v680_v9 }
 0x10b   : > { %v624_v16 = vadd.f32 %v597_v13, %v398_v7  ;;  %v1915_v17 = vpop.f32.mrb[14].mxu0 }
 0x10c   : > { %v627_v19 = vadd.f32 %v1915_v17, %v401_v10  ;;  %v600_v20 = vpop.f32.mrb[15].mxu0  ;;  %684 = vadd.xlane.f32.xlu0 %v683_v11  ;;  %v2265_v21 = vadd.f32 %v2188_v15, %v626_v12 }
 0x10d   : > { %v2268_v23 = vadd.f32 %v2188_v15, %v624_v16  ;;  %v625_v24 = vadd.f32 %v600_v20, %v399_v14 }
 0x10e   : > { %2955 = vst [vmem:[#allocation5_spill] sm:$0xff] %v2265_v21  ;;  %687 = vadd.xlane.f32.xlu1 %v686_v18  ;;  %v2271_v26 = vadd.f32 %v2188_v15, %v627_v19  ;;  %v695_v32 = vsel %vm490_vm0, %v2265_v21, 0.0 }
 0x10f   : > { %2956 = vst [vmem:[#allocation6_spill] sm:$0xff] %v2268_v23  ;;  %v2274_v28 = vadd.f32 %v2188_v15, %v625_v24  ;;  %v689_v30 = vsel %vm490_vm0, %v2268_v23, 0.0 }
 0x110   : > { %2957 = vst [vmem:[#allocation7_spill] sm:$0xff] %v2271_v26  ;;  %690 = vadd.xlane.f32.xlu0 %v689_v30  ;;  %v698_v33 = vsel %vm490_vm0, %v2271_v26, 0.0 }
 0x111   : > { %2958 = vst [vmem:[#allocation8_spill] sm:$0xff] %v2274_v28  ;;  %v692_v31 = vsel %vm490_vm0, %v2274_v28, 0.0 }
 0x112   : > { %693 = vadd.xlane.f32.xlu1 %v692_v31 }
 0x114   : > { %696 = vadd.xlane.f32.xlu0 %v695_v32 }
 0x116   : > { %699 = vadd.xlane.f32.xlu1 %v698_v33 }
 0x184   : > { %v661_v34 = vpop.xlane.xlu1 %660 }
 0x185   : > { %v704_v35 = vmul.f32 0.015625, %v661_v34  ;;  %v655_v15 = vpop.xlane.xlu0 %654 }
 0x186   : > { %v702_v36 = vmul.f32 0.015625, %v655_v15 }
 0x187   : > { %v2285_v37 = vsub.f32 %v2193_v22, %v704_v35 }
 0x188   : > { %v2288_v38 = vsub.f32 %v2196_v25, %v702_v36  ;;  %v664_v39 = vpop.xlane.xlu1 %663 }
 0x189   : > { %v705_v40 = vmul.f32 0.015625, %v664_v39  ;;  %v658_v41 = vpop.xlane.xlu0 %657  ;;  %v736_v51 = vmul.f32 %v2285_v37, %v2285_v37 }
 0x18a   : > { %v703_v42 = vmul.f32 0.015625, %v658_v41  ;;  %v734_v43 = vmul.f32 %v2288_v38, %v2288_v38 }
 0x18b   : > { %v2293_v46 = vsub.f32 %v2199_v27, %v705_v40  ;;  %v756_v59 = vsel %vm490_vm0, %v736_v51, 0.0 }
 0x18c   : > { %v2296_v49 = vsub.f32 %v2204_v29, %v703_v42  ;;  %v750_v50 = vsel %vm490_vm0, %v734_v43, 0.0 }
 0x18d   : > { %751 = vadd.xlane.f32.xlu0 %v750_v50  ;;  %v667_v52 = vpop.xlane.xlu0 %666  ;;  %v737_v56 = vmul.f32 %v2293_v46, %v2293_v46 }
 0x18e   : > { %v706_v53 = vmul.f32 0.015625, %v667_v52  ;;  %v735_v54 = vmul.f32 %v2296_v49, %v2296_v49 }
 0x18f   : > { %v670_v55 = vpop.xlane.xlu1 %669  ;;  %v759_v6 = vsel %vm490_vm0, %v737_v56, 0.0 }
 0x190   : > { %v2306_v57 = vsub.f32 %v2220_v45, %v706_v53  ;;  %v707_v58 = vmul.f32 0.015625, %v670_v55  ;;  %v753_v60 = vsel %vm490_vm0, %v735_v54, 0.0 }
 0x191   : > { %757 = vadd.xlane.f32.xlu0 %v756_v59  ;;  %754 = vadd.xlane.f32.xlu1 %v753_v60  ;;  %v673_v61 = vpop.xlane.xlu0 %672 }
 0x192   : > { %v2311_v62 = vsub.f32 %v2226_v48, %v707_v58  ;;  %v708_v63 = vmul.f32 0.015625, %v673_v61  ;;  %v738_v2 = vmul.f32 %v2306_v57, %v2306_v57 }
 0x193   : > { %v676_v5 = vpop.xlane.xlu1 %675 }
 0x194   : > { %v2317_v7 = vsub.f32 %v2217_v44, %v708_v63  ;;  %v709_v8 = vmul.f32 0.015625, %v676_v5  ;;  %v762_v9 = vsel %vm490_vm0, %v738_v2, 0.0  ;;  %v739_v10 = vmul.f32 %v2311_v62, %v2311_v62 }
 0x195   : > { %760 = vadd.xlane.f32.xlu1 %v759_v6  ;;  %763 = vadd.xlane.f32.xlu0 %v762_v9  ;;  %v679_v11 = vpop.xlane.xlu0 %678 }
 0x196   : > { %v2323_v12 = vsub.f32 %v2223_v47, %v709_v8  ;;  %v710_v13 = vmul.f32 0.015625, %v679_v11  ;;  %v740_v14 = vmul.f32 %v2317_v7, %v2317_v7  ;;  %v765_v17 = vsel %vm490_vm0, %v739_v10, 0.0  ;;  %v1953_v10 = vld [vmem:[%s2940_s6 + $0x4] ss:$8 sps:$4 sm:$0xff]  }
 0x197   : > { %v682_v16 = vpop.xlane.xlu1 %681  ;;  %998 = vmatprep.subr.bf16.mxu1 %v1953_v10 }
 0x198   : > { %v2329_v18 = vsub.f32 %v2244_v1, %v710_v13  ;;  %v711_v19 = vmul.f32 0.015625, %v682_v16  ;;  %v768_v20 = vsel %vm490_vm0, %v740_v14, 0.0  ;;  %v741_v24 = vmul.f32 %v2323_v12, %v2323_v12  ;;  %v1955_v14 = vld [vmem:[%s2940_s6] ss:$8 sps:$4 sm:$0xff]  }
 0x199   : > { %766 = vadd.xlane.f32.xlu1 %v765_v17  ;;  %769 = vadd.xlane.f32.xlu0 %v768_v20  ;;  %v685_v30 = vpop.xlane.xlu0 %684  ;;  %v1956_v20 = vld [vmem:[%s2940_s6 + $0x14] ss:$8 sps:$4 sm:$0xff]  }
 0x19a   : > { %v2335_v31 = vsub.f32 %v2250_v4, %v711_v19  ;;  %v712_v32 = vmul.f32 0.015625, %v685_v30  ;;  %v742_v33 = vmul.f32 %v2329_v18, %v2329_v18  ;;  %v771_v35 = vsel %vm490_vm0, %v741_v24, 0.0  ;;  %999 = vmatpush1.bf16.msra.mxu1 %v1955_v14  ;;  %v1958_v24 = vld [vmem:[%s2940_s6 + $0x10] ss:$8 sps:$4 sm:$0xff]  }
 0x19b   : > { %v688_v34 = vpop.xlane.xlu1 %687  ;;  %1000 = vmatprep.subr.bf16.mxu1 %v1956_v20 }
 0x19c   : > { %v2341_v15 = vsub.f32 %v2241_v0, %v712_v32  ;;  %v713_v36 = vmul.f32 0.015625, %v688_v34  ;;  %v774_v39 = vsel %vm490_vm0, %v742_v33, 0.0  ;;  %v743_v40 = vmul.f32 %v2335_v31, %v2335_v31  ;;  %v1959_v32 = vld [vmem:[%s2940_s6 + $0x24] ss:$8 sps:$4 sm:$0xff]   ;;  %v1961_v33 = vld [vmem:[%s2940_s6 + $0x20] ss:$8 sps:$4 sm:$0xff]  }
 0x19d   : > { %772 = vadd.xlane.f32.xlu1 %v771_v35  ;;  %775 = vadd.xlane.f32.xlu0 %v774_v39  ;;  %v691_v41 = vpop.xlane.xlu0 %690  ;;  %v1962_v34 = vld [vmem:[%s2940_s6 + $0x34] ss:$8 sps:$4 sm:$0xff]   ;;  %v1964_v35 = vld [vmem:[%s2940_s6 + $0x30] ss:$8 sps:$4 sm:$0xff]  }
 0x19e   : > { %v2347_v42 = vsub.f32 %v2247_v3, %v713_v36  ;;  %v714_v43 = vmul.f32 0.015625, %v691_v41  ;;  %v744_v50 = vmul.f32 %v2341_v15, %v2341_v15  ;;  %v777_v52 = vsel %vm490_vm0, %v743_v40, 0.0  ;;  %1001 = vmatpush1.bf16.msra.mxu1 %v1958_v24 }
 0x19f   : > { %v694_v51 = vpop.xlane.xlu1 %693  ;;  %1002 = vmatprep.subr.bf16.mxu1 %v1959_v32  ;;  %v2085_v36 = vmov 0  }
 0x1a0   : > { %v2353_v53 = vsub.f32 %v2268_v23, %v714_v43  ;;  %v715_v54 = vmul.f32 0.015625, %v694_v51  ;;  %v780_v55 = vsel %vm490_vm0, %v744_v50, 0.0  ;;  %v745_v56 = vmul.f32 %v2347_v42, %v2347_v42  ;;  %1030 = vmatprep.mubr.bf16.mxu1 %v2085_v36 }
 0x1a1   : > { %778 = vadd.xlane.f32.xlu1 %v777_v52  ;;  %781 = vadd.xlane.f32.xlu0 %v780_v55  ;;  %v697_v58 = vpop.xlane.xlu0 %696 }
 0x1a2   : > { %v2359_v59 = vsub.f32 %v2274_v28, %v715_v54  ;;  %v716_v60 = vmul.f32 0.015625, %v697_v58  ;;  %v746_v61 = vmul.f32 %v2353_v53, %v2353_v53  ;;  %v783_v2 = vsel %vm490_vm0, %v745_v56, 0.0  ;;  %1003 = vmatpush1.bf16.msra.mxu1 %v1961_v33 }
 0x1a3   : > { %v700_v63 = vpop.xlane.xlu1 %699  ;;  %1004 = vmatprep.subr.bf16.mxu1 %v1962_v34 }
 0x1a4   : > { %v2365_v5 = vsub.f32 %v2265_v21, %v716_v60  ;;  %v717_v6 = vmul.f32 0.015625, %v700_v63  ;;  %v786_v8 = vsel %vm490_vm0, %v746_v61, 0.0  ;;  %v747_v9 = vmul.f32 %v2359_v59, %v2359_v59 }
 0x1a5   : > { %784 = vadd.xlane.f32.xlu1 %v783_v2  ;;  %787 = vadd.xlane.f32.xlu0 %v786_v8 }
 0x1a6   : > { %v2374_v11 = vsub.f32 %v2271_v26, %v717_v6  ;;  %v748_v13 = vmul.f32 %v2365_v5, %v2365_v5  ;;  %v789_v16 = vsel %vm490_vm0, %v747_v9, 0.0  ;;  %1005 = vmatpush1.bf16.msra.mxu1 %v1964_v35 }
 0x1a8   : > { %v792_v17 = vsel %vm490_vm0, %v748_v13, 0.0  ;;  %v749_v19 = vmul.f32 %v2374_v11, %v2374_v11 }
 0x1a9   : > { %790 = vadd.xlane.f32.xlu1 %v789_v16  ;;  %793 = vadd.xlane.f32.xlu0 %v792_v17 }
 0x1aa   : > { %v795_v30 = vsel %vm490_vm0, %v749_v19, 0.0  ;;  %v2409_v19 = vld [vmem:[%s2938_s4] ss:$0 sm:$0xff] }
 0x1ad   : > { %796 = vadd.xlane.f32.xlu1 %v795_v30 }
 0x21a   : > { %v752_v39 = vpop.xlane.xlu0 %751 }
 0x21b   : > { %v798_v40 = vmul.f32 0.015625, %v752_v39 }
 0x21d   : > { %v814_v41 = vadd.f32 1e-05, %v798_v40 }
 0x21e   : > { %v755_v43 = vpop.xlane.xlu1 %754  ;;  %v758_v50 = vpop.xlane.xlu0 %757 }
 0x21f   : > { %1981 = vrsqrt.f32 %v814_v41  ;;  %v799_v51 = vmul.f32 0.015625, %v755_v43  ;;  %v800_v52 = vmul.f32 0.015625, %v758_v50 }
 0x221   : > { %v815_v54 = vadd.f32 1e-05, %v799_v51  ;;  %v816_v55 = vadd.f32 1e-05, %v800_v52 }
 0x222   : > { %v761_v56 = vpop.xlane.xlu1 %760  ;;  %v764_v58 = vpop.xlane.xlu0 %763 }
 0x223   : > { %1983 = vrsqrt.f32 %v815_v54  ;;  %v801_v60 = vmul.f32 0.015625, %v761_v56  ;;  %v802_v63 = vmul.f32 0.015625, %v764_v58 }
 0x224   : > { %1985 = vrsqrt.f32 %v816_v55 }
 0x225   : > { %v817_v61 = vadd.f32 1e-05, %v801_v60  ;;  %v818_v9 = vadd.f32 1e-05, %v802_v63 }
 0x226   : > { %v767_v2 = vpop.xlane.xlu1 %766  ;;  %v770_v14 = vpop.xlane.xlu0 %769 }
 0x227   : > { %1987 = vrsqrt.f32 %v817_v61  ;;  %v803_v6 = vmul.f32 0.015625, %v767_v2  ;;  %v804_v24 = vmul.f32 0.015625, %v770_v14 }
 0x229   : > { %v1982_v8 = vpop.eup %1981  ;;  %v819_v10 = vadd.f32 1e-05, %v803_v6  ;;  %v820_v41 = vadd.f32 1e-05, %v804_v24 }
 0x22a   : > { %v846_v13 = vmul.f32 %v1982_v8, %v2288_v38  ;;  %v773_v16 = vpop.xlane.xlu1 %772  ;;  %v2416_v38 = vld [vmem:[%s2939_s5] ss:$0 sm:$0xff]  ;;  %v776_v51 = vpop.xlane.xlu0 %775 }
 0x22b   : > { %1989 = vrsqrt.f32 %v819_v10  ;;  %v805_v17 = vmul.f32 0.015625, %v773_v16  ;;  %v806_v60 = vmul.f32 0.015625, %v776_v51 }
 0x22c   : > { %1991 = vrsqrt.f32 %v818_v9  ;;  %v868_v32 = vmul.f32 %v2409_v19, %v846_v13 }
 0x22d   : > { %v1984_v20 = vpop.eup %1983  ;;  %v821_v34 = vadd.f32 1e-05, %v805_v17  ;;  %v822_v8 = vadd.f32 1e-05, %v806_v60 }
 0x22e   : > { %v847_v30 = vmul.f32 %v1984_v20, %v2296_v49  ;;  %v1986_v33 = vpop.eup %1985  ;;  %v779_v35 = vpop.xlane.xlu1 %778  ;;  %v890_v49 = vadd.f32 %v2416_v38, %v868_v32 }
 0x22f   : > { %v848_v43 = vmul.f32 %v1986_v33, %v2285_v37  ;;  %1993 = vrsqrt.f32 %v821_v34  ;;  %v807_v54 = vmul.f32 0.015625, %v779_v35  ;;  %v782_v10 = vpop.xlane.xlu0 %781 }
 0x230   : > { %v869_v39 = vmul.f32 %v2409_v19, %v847_v30  ;;  %1995 = vrsqrt.f32 %v820_v41  ;;  %v808_v24 = vmul.f32 0.015625, %v782_v10 }
 0x231   : > { %v1988_v40 = vpop.eup %1987  ;;  %v870_v61 = vmul.f32 %v2409_v19, %v848_v43  ;;  %v823_v63 = vadd.f32 1e-05, %v807_v54 }
 0x232   : > { %v849_v50 = vmul.f32 %v1988_v40, %v2293_v46  ;;  %v891_v52 = vadd.f32 %v2416_v38, %v869_v39  ;;  %v785_v2 = vpop.xlane.xlu1 %784  ;;  %v824_v35 = vadd.f32 1e-05, %v808_v24 }
 0x233   : > { %v892_v13 = vadd.f32 %v2416_v38, %v870_v61  ;;  %1997 = vrsqrt.f32 %v823_v63  ;;  %v809_v14 = vmul.f32 0.015625, %v785_v2  ;;  %v788_v40 = vpop.xlane.xlu0 %787 }
 0x234   : > { %v906_v55 = vpack.c.bf16 %v891_v52, %v890_v49  ;;  %v871_v56 = vmul.f32 %v2409_v19, %v849_v50  ;;  %1999 = vrsqrt.f32 %v822_v8  ;;  %v810_v52 = vmul.f32 0.015625, %v788_v40 }
 0x235   : > { %v1990_v58 = vpop.eup %1989  ;;  %v825_v32 = vadd.f32 1e-05, %v809_v14 }
 0x236   : > { %1789 = vmatmul.mubr.msk.bf16.vlgmr.msra.gmra.mrb[0].mxu1 %vm490_vm0, %v906_v55  ;;  %v1992_v37 = vpop.eup %1991  ;;  %v851_v46 = vmul.f32 %v1990_v58, %v2311_v62  ;;  %v893_v6 = vadd.f32 %v2416_v38, %v871_v56  ;;  %v791_v33 = vpop.xlane.xlu1 %790  ;;  %v826_v60 = vadd.f32 1e-05, %v810_v52 }
 0x237   : > { %1040 = vmatprep.mubr.bf16.mxu1 %v2085_v36  ;;  %v850_v9 = vmul.f32 %v1992_v37, %v2306_v57  ;;  %2001 = vrsqrt.f32 %v825_v32  ;;  %v811_v43 = vmul.f32 0.015625, %v791_v33  ;;  %v794_v37 = vpop.xlane.xlu0 %793 }
 0x238   : > { %v907_v16 = vpack.c.bf16 %v893_v6, %v892_v13  ;;  %v873_v17 = vmul.f32 %v2409_v19, %v851_v46  ;;  %2003 = vrsqrt.f32 %v824_v35 }
 0x239   : > { %v1994_v20 = vpop.eup %1993  ;;  %v872_v62 = vmul.f32 %v2409_v19, %v850_v9  ;;  %v827_v55 = vadd.f32 1e-05, %v811_v43  ;;  %v812_v9 = vmul.f32 0.015625, %v794_v37  ;;  %v1974_v37 = vld [vmem:[%s2942_s8 + $0x20] sm:$0xff]  }
 0x23a   : > { %v1996_v30 = vpop.eup %1995  ;;  %v853_v57 = vmul.f32 %v1994_v20, %v2323_v12  ;;  %v895_v34 = vadd.f32 %v2416_v38, %v873_v17  ;;  %v797_v56 = vpop.xlane.xlu1 %796 }
 0x23b   : > { %v852_v39 = vmul.f32 %v1996_v30, %v2317_v7  ;;  %v894_v41 = vadd.f32 %v2416_v38, %v872_v62  ;;  %2005 = vrsqrt.f32 %v827_v55  ;;  %v813_v46 = vmul.f32 0.015625, %v797_v56  ;;  %v1970_v56 = vld [vmem:[%s2942_s8 + $0x10] sm:$0xff]  }
 0x23c   : > { %v875_v51 = vmul.f32 %v2409_v19, %v853_v57  ;;  %2007 = vrsqrt.f32 %v826_v60  ;;  %v1972_v60 = vld [vmem:[%s2942_s8 + $0x18] sm:$0xff]  }
 0x23d   : > { %v908_v50 = vpack.c.bf16 %v895_v34, %v894_v41  ;;  %v1998_v49 = vpop.eup %1997  ;;  %v874_v12 = vmul.f32 %v2409_v19, %v852_v39  ;;  %v829_v13 = vadd.f32 1e-05, %v813_v46  ;;  %v1976_v46 = vld [vmem:[%s2942_s8 + $0x28] sm:$0xff]  }
 0x23e   : > { %1790 = vmatmul.mubr.msk.bf16.gmra.mrb[4].mxu1 %vm490_vm0, %v907_v16  ;;  %v2000_v54 = vpop.eup %1999  ;;  %v855_v7 = vmul.f32 %v1998_v49, %v2335_v31  ;;  %v897_v58 = vadd.f32 %v2416_v38, %v875_v51  ;;  %v828_v16 = vadd.f32 1e-05, %v812_v9  ;;  %v1980_v9 = vld [vmem:[%s2942_s8 + $0x38] sm:$0xff]  }
 0x23f   : > { %1050 = vmatprep.mubr.bf16.mxu1 %v2085_v36  ;;  %v854_v61 = vmul.f32 %v2000_v54, %v2329_v18  ;;  %v896_v63 = vadd.f32 %v2416_v38, %v874_v12  ;;  %2009 = vrsqrt.f32 %v829_v13 }
 0x240   : > { %v877_v6 = vmul.f32 %v2409_v19, %v855_v7  ;;  %2011 = vrsqrt.f32 %v828_v16  ;;  %v1966_v7 = vld [vmem:[%s2942_s8] sm:$0xff]  }
 0x241   : > { %v909_v2 = vpack.c.bf16 %v897_v58, %v896_v63  ;;  %v2002_v8 = vpop.eup %2001  ;;  %v876_v31 = vmul.f32 %v2409_v19, %v854_v61  ;;  %v1971_v58 = vld [vmem:[%s2942_s8 + $0x58] sm:$0xff]   ;;  %v1973_v61 = vld [vmem:[%s2942_s8 + $0x60] sm:$0xff]   ;;  %v1975_v63 = vld [vmem:[%s2942_s8 + $0x68] sm:$0xff]  }
 0x242   : > { %v2004_v10 = vpop.eup %2003  ;;  %v857_v18 = vmul.f32 %v2002_v8, %v2347_v42  ;;  %v899_v14 = vadd.f32 %v2416_v38, %v877_v6  ;;  %v1978_v6 = vld [vmem:[%s2942_s8 + $0x30] sm:$0xff]   ;;  %v1979_v8 = vld [vmem:[%s2942_s8 + $0x78] sm:$0xff]  }
 0x243   : > { %v856_v17 = vmul.f32 %v2004_v10, %v2341_v15  ;;  %v898_v20 = vadd.f32 %v2416_v38, %v876_v31  ;;  %v924_v31 = vlaneseq }
 0x244   : > { %v879_v62 = vmul.f32 %v2409_v19, %v857_v18  ;;  %v922_v18 = vld [vmem:[%s2941_s7] sm:$0x3] }
 0x245   : > { %v910_v24 = vpack.c.bf16 %v899_v14, %v898_v20  ;;  %v2006_v30 = vpop.eup %2005  ;;  %v878_v32 = vmul.f32 %v2409_v19, %v856_v17  ;;  %v925_v10 = vshrl.u32 %v924_v31, 7 }
 0x246   : > { %1791 = vmatmul.mubr.msk.bf16.gmra.mrb[8].mxu1 %vm490_vm0, %v908_v50  ;;  %v2008_v57 = vpop.eup %2007  ;;  %v859_v42 = vmul.f32 %v2006_v30, %v2359_v59  ;;  %v901_v33 = vadd.f32 %v2416_v38, %v879_v62 }
 0x247   : > { %1060 = vmatprep.mubr.bf16.mxu1 %v2085_v36  ;;  %v858_v15 = vmul.f32 %v2008_v57, %v2353_v53  ;;  %v900_v34 = vadd.f32 %v2416_v38, %v878_v32  ;;  %v926_v13 = vsub.s32 0, %v925_v10  ;;  %v930_v14 = vsub.s32 1, %v925_v10 }
 0x248   : > { %v881_v39 = vmul.f32 %v2409_v19, %v859_v42 }
 0x249   : > { %v911_v35 = vpack.c.bf16 %v901_v33, %v900_v34  ;;  %v2010_v40 = vpop.eup %2009  ;;  %v880_v41 = vmul.f32 %v2409_v19, %v858_v15  ;;  %v2529_v16 = vrot.slane %v922_v18, %v926_v13  ;;  %v2531_v17 = vrot.slane %v922_v18, %v930_v14 }
 0x24a   : > { %v2012_v43 = vpop.eup %2011  ;;  %v861_v50 = vmul.f32 %v2010_v40, %v2374_v11  ;;  %v903_v59 = vadd.f32 %v2416_v38, %v881_v39 }
 0x24b   : > { %v860_v51 = vmul.f32 %v2012_v43, %v2365_v5  ;;  %v902_v53 = vadd.f32 %v2416_v38, %v880_v41  ;;  %v1965_v5 = vld [vmem:[%s2942_s8 + $0x40] sm:$0xff]  }
 0x24c   : > { %v883_v52 = vmul.f32 %v2409_v19, %v861_v50  ;;  %1828 = vmatprep.subr.bf16.mxu0 %v1965_v5  ;;  %1916 = vmatprep.subr.bf16.mxu1 %v1965_v5 }
 0x24d   : > { %v912_v49 = vpack.c.bf16 %v903_v59, %v902_v53  ;;  %v882_v12 = vmul.f32 %v2409_v19, %v860_v51  ;;  %1829 = vmatpush3.bf16.msra.mxu0 %v1966_v7  ;;  %1924 = vmatpush3.bf16.msra.mxu1 %v1966_v7  ;;  %v1968_v19 = vld [vmem:[%s2942_s8 + $0x8] sm:$0xff]  }
 0x24e   : > { %1792 = vmatmul.mubr.msk.bf16.gmra.mrb[12].mxu1 %vm490_vm0, %v909_v2  ;;  %v905_v54 = vadd.f32 %v2416_v38, %v883_v52  ;;  %v1977_v2 = vld [vmem:[%s2942_s8 + $0x70] sm:$0xff]  }
 0x24f   : > { %1070 = vmatprep.mubr.bf16.mxu1 %v2085_v36  ;;  %v904_v55 = vadd.f32 %v2416_v38, %v882_v12  ;;  %v1969_v38 = vld [vmem:[%s2942_s8 + $0x50] sm:$0xff]  }
 0x251   : > { %v913_v11 = vpack.c.bf16 %v905_v54, %v904_v55 }
 0x256   : > { %1793 = vmatmul.mubr.msk.bf16.gmra.mrb[16].mxu1 %vm490_vm0, %v910_v24 }
 0x257   : > { %1080 = vmatprep.mubr.bf16.mxu1 %v2085_v36 }
 0x25e   : > { %1794 = vmatmul.mubr.msk.bf16.gmra.mrb[20].mxu1 %vm490_vm0, %v911_v35 }
 0x25f   : > { %1090 = vmatprep.mubr.bf16.mxu1 %v2085_v36 }
 0x266   : > { %1795 = vmatmul.mubr.msk.bf16.gmra.mrb[24].mxu1 %vm490_vm0, %v912_v49 }
 0x267   : > { %1100 = vmatprep.mubr.bf16.mxu1 %v2085_v36  ;;  %v1967_v36 = vld [vmem:[%s2942_s8 + $0x48] sm:$0xff]  }
 0x268   : > { %1830 = vmatprep.subr.bf16.mxu0 %v1967_v36  ;;  %1917 = vmatprep.subr.bf16.mxu1 %v1967_v36 }
 0x269   : > { %1831 = vmatpush3.bf16.msra.mxu0 %v1968_v19  ;;  %1925 = vmatpush3.bf16.msra.mxu1 %v1968_v19 }
 0x26a   : > { %1832 = vmatprep.subr.bf16.mxu0 %v1969_v38  ;;  %1918 = vmatprep.subr.bf16.mxu1 %v1969_v38 }
 0x26d   : > { %1833 = vmatpush3.bf16.msra.mxu0 %v1970_v56  ;;  %1926 = vmatpush3.bf16.msra.mxu1 %v1970_v56 }
 0x26e   : > { %1796 = vmatmul.mubr.msk.bf16.gmra.mrb[28].mxu1 %vm490_vm0, %v913_v11  ;;  %1834 = vmatprep.subr.bf16.mxu0 %v1971_v58 }
 0x26f   : > { %1919 = vmatprep.subr.bf16.mxu1 %v1971_v58 }
 0x271   : > { %1835 = vmatpush3.bf16.msra.mxu0 %v1972_v60  ;;  %1927 = vmatpush3.bf16.msra.mxu1 %v1972_v60 }
 0x272   : > { %1836 = vmatprep.subr.bf16.mxu0 %v1973_v61  ;;  %1920 = vmatprep.subr.bf16.mxu1 %v1973_v61 }
 0x275   : > { %1837 = vmatpush3.bf16.msra.mxu0 %v1974_v37  ;;  %1928 = vmatpush3.bf16.msra.mxu1 %v1974_v37 }
 0x276   : > { %1838 = vmatprep.subr.bf16.mxu0 %v1975_v63  ;;  %1921 = vmatprep.subr.bf16.mxu1 %v1975_v63 }
 0x279   : > { %1839 = vmatpush3.bf16.msra.mxu0 %v1976_v46  ;;  %1929 = vmatpush3.bf16.msra.mxu1 %v1976_v46 }
 0x27a   : > { %1840 = vmatprep.subr.bf16.mxu0 %v1977_v2  ;;  %1922 = vmatprep.subr.bf16.mxu1 %v1977_v2 }
 0x27d   : > { %1841 = vmatpush3.bf16.msra.mxu0 %v1978_v6  ;;  %1930 = vmatpush3.bf16.msra.mxu1 %v1978_v6 }
 0x27e   : > { %1842 = vmatprep.subr.bf16.mxu0 %v1979_v8  ;;  %1923 = vmatprep.subr.bf16.mxu1 %v1979_v8 }
 0x281   : > { %1843 = vmatpush3.bf16.msra.mxu0 %v1980_v9  ;;  %1931 = vmatpush3.bf16.msra.mxu1 %v1980_v9 }
 0x309   : > { %v1032_v20 = vpop.f32.mrb[0].mxu1 }
 0x30a   : > { %v2534_v24 = vadd.f32 %v1032_v20, %v2529_v16  ;;  %v1034_v62 = vpop.f32.mrb[1].mxu1 }
 0x30b   : > { %v2537_v30 = vadd.f32 %v1034_v62, %v2531_v17  ;;  %v1036_v32 = vpop.f32.mrb[2].mxu1 }
 0x30c   : > { %v1111_v57 = vmul.f32 %v2534_v24, %v2534_v24  ;;  %v2542_v42 = vadd.f32 %v1036_v32, %v2529_v16  ;;  %v1038_v33 = vpop.f32.mrb[3].mxu1 }
 0x30d   : > { %v1112_v15 = vmul.f32 %v2537_v30, %v2537_v30  ;;  %v2547_v34 = vadd.f32 %v1038_v33, %v2531_v17 }
 0x30e   : > { %v1143_v35 = vmul.f32 %v1111_v57, %v2534_v24  ;;  %v1113_v39 = vmul.f32 %v2542_v42, %v2542_v42 }
 0x30f   : > { %v1144_v40 = vmul.f32 %v1112_v15, %v2537_v30  ;;  %v1114_v41 = vmul.f32 %v2547_v34, %v2547_v34 }
 0x310   : > { %v1175_v43 = vmul.f32 0.044715, %v1143_v35  ;;  %v1145_v50 = vmul.f32 %v1113_v39, %v2542_v42 }
 0x311   : > { %v1176_v59 = vmul.f32 0.044715, %v1144_v40  ;;  %v1146_v51 = vmul.f32 %v1114_v41, %v2547_v34  ;;  %v1042_v53 = vpop.f32.mrb[4].mxu1 }
 0x312   : > { %v1207_v49 = vadd.f32 %v1175_v43, %v2534_v24  ;;  %v1177_v52 = vmul.f32 0.044715, %v1145_v50  ;;  %v2559_v12 = vadd.f32 %v1042_v53, %v2529_v16  ;;  %v1044_v54 = vpop.f32.mrb[5].mxu1 }
 0x313   : > { %v1208_v55 = vadd.f32 %v1176_v59, %v2537_v30  ;;  %v1178_v11 = vmul.f32 0.044715, %v1146_v51  ;;  %v2563_v5 = vadd.f32 %v1044_v54, %v2531_v17  ;;  %v1046_v7 = vpop.f32.mrb[6].mxu1 }
 0x314   : > { %v1239_v36 = vmul.f32 0.7978846, %v1207_v49  ;;  %v1209_v19 = vadd.f32 %v1177_v52, %v2542_v42  ;;  %v1115_v38 = vmul.f32 %v2559_v12, %v2559_v12  ;;  %v2569_v56 = vadd.f32 %v1046_v7, %v2529_v16  ;;  %v1048_v58 = vpop.f32.mrb[7].mxu1 }
 0x315   : > { %v1240_v60 = vmul.f32 0.7978846, %v1208_v55  ;;  %v1210_v61 = vadd.f32 %v1178_v11, %v2547_v34  ;;  %v1116_v37 = vmul.f32 %v2563_v5, %v2563_v5  ;;  %v2575_v63 = vadd.f32 %v1048_v58, %v2531_v17 }
 0x316   : > { %2013 = vtanh.f32 %v1239_v36  ;;  %v1241_v46 = vmul.f32 0.7978846, %v1209_v19  ;;  %v1147_v2 = vmul.f32 %v1115_v38, %v2559_v12  ;;  %v1117_v6 = vmul.f32 %v2569_v56, %v2569_v56 }
 0x317   : > { %2015 = vtanh.f32 %v1240_v60  ;;  %v1242_v8 = vmul.f32 0.7978846, %v1210_v61  ;;  %v1148_v9 = vmul.f32 %v1116_v37, %v2563_v5  ;;  %v1118_v31 = vmul.f32 %v2575_v63, %v2575_v63 }
 0x318   : > { %2017 = vtanh.f32 %v1241_v46  ;;  %v1179_v10 = vmul.f32 0.044715, %v1147_v2  ;;  %v1149_v13 = vmul.f32 %v1117_v6, %v2569_v56 }
 0x319   : > { %v1180_v18 = vmul.f32 0.044715, %v1148_v9  ;;  %v1150_v14 = vmul.f32 %v1118_v31, %v2575_v63  ;;  %v1052_v20 = vpop.f32.mrb[8].mxu1  ;;  %2019 = vtanh.f32 %v1242_v8 }
 0x31a   : > { %v1211_v62 = vadd.f32 %v1179_v10, %v2559_v12  ;;  %v1181_v32 = vmul.f32 0.044715, %v1149_v13  ;;  %v2587_v57 = vadd.f32 %v1052_v20, %v2529_v16  ;;  %v1054_v33 = vpop.f32.mrb[9].mxu1 }
 0x31b   : > { %v1212_v15 = vadd.f32 %v1180_v18, %v2563_v5  ;;  %v1182_v35 = vmul.f32 0.044715, %v1150_v14  ;;  %v2591_v39 = vadd.f32 %v1054_v33, %v2531_v17  ;;  %v1056_v40 = vpop.f32.mrb[10].mxu1 }
 0x31c   : > { %v1243_v41 = vmul.f32 0.7978846, %v1211_v62  ;;  %v1213_v43 = vadd.f32 %v1181_v32, %v2569_v56  ;;  %v1119_v50 = vmul.f32 %v2587_v57, %v2587_v57  ;;  %v2597_v59 = vadd.f32 %v1056_v40, %v2529_v16  ;;  %v1058_v51 = vpop.f32.mrb[11].mxu1 }
 0x31d   : > { %v1244_v53 = vmul.f32 0.7978846, %v1212_v15  ;;  %v1214_v49 = vadd.f32 %v1182_v35, %v2575_v63  ;;  %v1120_v52 = vmul.f32 %v2591_v39, %v2591_v39  ;;  %v2603_v54 = vadd.f32 %v1058_v51, %v2531_v17 }
 0x31e   : > { %2021 = vtanh.f32 %v1243_v41  ;;  %v1245_v55 = vmul.f32 0.7978846, %v1213_v43  ;;  %v1151_v11 = vmul.f32 %v1119_v50, %v2587_v57  ;;  %v1121_v7 = vmul.f32 %v2597_v59, %v2597_v59 }
 0x31f   : > { %2023 = vtanh.f32 %v1244_v53  ;;  %v1246_v36 = vmul.f32 0.7978846, %v1214_v49  ;;  %v1152_v19 = vmul.f32 %v1120_v52, %v2591_v39  ;;  %v1122_v38 = vmul.f32 %v2603_v54, %v2603_v54 }
 0x320   : > { %v2014_v58 = vpop.eup %2013  ;;  %2025 = vtanh.f32 %v1245_v55  ;;  %v1183_v60 = vmul.f32 0.044715, %v1151_v11  ;;  %v1153_v61 = vmul.f32 %v1121_v7, %v2597_v59 }
 0x321   : > { %v2016_v37 = vpop.eup %2015  ;;  %v1303_v46 = vadd.f32 1.0, %v2014_v58  ;;  %2027 = vtanh.f32 %v1246_v36  ;;  %v1184_v2 = vmul.f32 0.044715, %v1152_v19  ;;  %v1154_v6 = vmul.f32 %v1122_v38, %v2603_v54  ;;  %v1062_v8 = vpop.f32.mrb[12].mxu1 }
 0x322   : > { %v2018_v9 = vpop.eup %2017  ;;  %v1215_v31 = vadd.f32 %v1183_v60, %v2587_v57  ;;  %v1185_v10 = vmul.f32 0.044715, %v1153_v61  ;;  %v2615_v13 = vadd.f32 %v1062_v8, %v2529_v16  ;;  %v1064_v18 = vpop.f32.mrb[13].mxu1  ;;  %v1304_v14 = vadd.f32 1.0, %v2016_v37 }
 0x323   : > { %v1335_v20 = vmul.f32 0.5, %v1303_v46  ;;  %v1305_v62 = vadd.f32 1.0, %v2018_v9  ;;  %v1216_v32 = vadd.f32 %v1184_v2, %v2591_v39  ;;  %v1186_v33 = vmul.f32 0.044715, %v1154_v6  ;;  %v1066_v15 = vpop.f32.mrb[14].mxu1  ;;  %v2020_v51 = vpop.eup %2019 }
 0x324   : > { %v1247_v35 = vmul.f32 0.7978846, %v1215_v31  ;;  %v1217_v40 = vadd.f32 %v1185_v10, %v2597_v59  ;;  %v1123_v41 = vmul.f32 %v2615_v13, %v2615_v13  ;;  %v2622_v43 = vadd.f32 %v1064_v18, %v2531_v17  ;;  %v1068_v50 = vpop.f32.mrb[15].mxu1 }
 0x325   : > { %v2625_v53 = vmul.f32 %v1335_v20, %v2534_v24  ;;  %v1337_v49 = vmul.f32 0.5, %v1305_v62  ;;  %v1248_v52 = vmul.f32 0.7978846, %v1216_v32  ;;  %v1218_v55 = vadd.f32 %v1186_v33, %v2603_v54 }
 0x326   : > { %2029 = vtanh.f32 %v1247_v35  ;;  %v1249_v11 = vmul.f32 0.7978846, %v1217_v40  ;;  %v1155_v7 = vmul.f32 %v1123_v41, %v2615_v13  ;;  %v1124_v36 = vmul.f32 %v2622_v43, %v2622_v43 }
 0x327   : > { %v2632_v19 = vmul.f32 %v1337_v49, %v2542_v42  ;;  %2031 = vtanh.f32 %v1248_v52  ;;  %v1250_v38 = vmul.f32 0.7978846, %v1218_v55  ;;  %v2635_v58 = vadd.f32 %v1066_v15, %v2529_v16 }
 0x328   : > { %v2637_v24 = vpop.eup %2021  ;;  %2033 = vtanh.f32 %v1249_v11  ;;  %v1187_v60 = vmul.f32 0.044715, %v1155_v7  ;;  %v1156_v61 = vmul.f32 %v1124_v36, %v2622_v43  ;;  %v2641_v37 = vadd.f32 %v1068_v50, %v2531_v17 }
 0x329   : > { %v2643_v46 = vpop.eup %2023  ;;  %2035 = vtanh.f32 %v1250_v38  ;;  %v1125_v2 = vmul.f32 %v2635_v58, %v2635_v58  ;;  %v1072_v6 = vpop.f32.mrb[16].mxu1  ;;  %v1306_v8 = vadd.f32 1.0, %v2020_v51  ;;  %v1336_v40 = vmul.f32 0.5, %v1304_v14 }
 0x32a   : > { %v2649_v9 = vpop.eup %2025  ;;  %v1219_v31 = vadd.f32 %v1187_v60, %v2615_v13  ;;  %v1188_v10 = vmul.f32 0.044715, %v1156_v61  ;;  %v1126_v18 = vmul.f32 %v2641_v37, %v2641_v37  ;;  %v2655_v20 = vadd.f32 %v1072_v6, %v2529_v16  ;;  %v1074_v62 = vpop.f32.mrb[17].mxu1 }
 0x32b   : > { %v2657_v32 = vpop.eup %2027  ;;  %v1157_v33 = vmul.f32 %v1125_v2, %v2635_v58  ;;  %v2661_v15 = vadd.f32 %v1074_v62, %v2531_v17  ;;  %v1076_v35 = vpop.f32.mrb[18].mxu1  ;;  %v1338_v41 = vmul.f32 0.5, %v1306_v8 }
 0x32c   : > { %v1251_v50 = vmul.f32 0.7978846, %v1219_v31  ;;  %v1220_v51 = vadd.f32 %v1188_v10, %v2622_v43  ;;  %v1158_v49 = vmul.f32 %v1126_v18, %v2641_v37  ;;  %v1127_v52 = vmul.f32 %v2655_v20, %v2655_v20  ;;  %v1078_v55 = vpop.f32.mrb[19].mxu1 }
 0x32d   : > { %v1189_v11 = vmul.f32 0.044715, %v1157_v33  ;;  %v1128_v7 = vmul.f32 %v2661_v15, %v2661_v15  ;;  %v2670_v36 = vadd.f32 %v1076_v35, %v2529_v16  ;;  %v2673_v38 = vadd.f32 %v1078_v55, %v2531_v17 }
 0x32e   : > { %2037 = vtanh.f32 %v1251_v50  ;;  %v1252_v14 = vmul.f32 0.7978846, %v1220_v51  ;;  %v1190_v60 = vmul.f32 0.044715, %v1158_v49  ;;  %v1159_v61 = vmul.f32 %v1127_v52, %v2655_v20 }
 0x32f   : > { %v1221_v2 = vadd.f32 %v1189_v11, %v2635_v58  ;;  %v1160_v6 = vmul.f32 %v1128_v7, %v2661_v15  ;;  %v1129_v8 = vmul.f32 %v2670_v36, %v2670_v36  ;;  %v1130_v31 = vmul.f32 %v2673_v38, %v2673_v38 }
 0x330   : > { %v2682_v10 = vpop.eup %2029  ;;  %2039 = vtanh.f32 %v1252_v14  ;;  %v1222_v18 = vadd.f32 %v1190_v60, %v2641_v37  ;;  %v1191_v62 = vmul.f32 0.044715, %v1159_v61  ;;  %v1368_v33 = vmul.f32 %v1336_v40, %v2537_v30 }
 0x331   : > { %v2686_v35 = vpop.eup %2031  ;;  %v1253_v50 = vmul.f32 0.7978846, %v1221_v2  ;;  %v1192_v51 = vmul.f32 0.044715, %v1160_v6  ;;  %v1161_v49 = vmul.f32 %v1129_v8, %v2670_v36  ;;  %v1162_v52 = vmul.f32 %v1130_v31, %v2673_v38  ;;  %v1082_v55 = vpop.f32.mrb[20].mxu1 }
 0x332   : > { %v2690_v11 = vpop.eup %2033  ;;  %v1254_v7 = vmul.f32 0.7978846, %v1222_v18  ;;  %v1223_v42 = vadd.f32 %v1191_v62, %v2655_v20  ;;  %v1370_v14 = vmul.f32 %v1338_v41, %v2547_v34  ;;  %v2695_v60 = vadd.f32 %v1082_v55, %v2529_v16  ;;  %v1084_v30 = vpop.f32.mrb[21].mxu1 }
 0x333   : > { %v2697_v40 = vpop.eup %2035  ;;  %2041 = vtanh.f32 %v1253_v50  ;;  %v1224_v61 = vadd.f32 %v1192_v51, %v2661_v15  ;;  %v1193_v2 = vmul.f32 0.044715, %v1161_v49  ;;  %v1194_v6 = vmul.f32 0.044715, %v1162_v52  ;;  %v1086_v8 = vpop.f32.mrb[22].mxu1 }
 0x334   : > { %2043 = vtanh.f32 %v1254_v7  ;;  %v1255_v31 = vmul.f32 0.7978846, %v1223_v42  ;;  %v1400_v26 = vpack.c.bf16 %v1370_v14, %v1368_v33  ;;  %v1131_v18 = vmul.f32 %v2695_v60, %v2695_v60  ;;  %v1088_v62 = vpop.f32.mrb[23].mxu1 }
 0x335   : > { %v1256_v34 = vmul.f32 0.7978846, %v1224_v61  ;;  %v1225_v41 = vadd.f32 %v1193_v2, %v2670_v36  ;;  %v1226_v55 = vadd.f32 %v1194_v6, %v2673_v38  ;;  %v2705_v21 = vadd.f32 %v1084_v30, %v2531_v17 }
 0x336   : > { %2045 = vtanh.f32 %v1255_v31  ;;  %1582 = vmatprep.mubr.bf16.mxu0 %v1400_v26  ;;  %v1163_v50 = vmul.f32 %v1131_v18, %v2695_v60  ;;  %v2709_v51 = vadd.f32 %v1086_v8, %v2529_v16  ;;  %v2712_v42 = vadd.f32 %v1088_v62, %v2531_v17 }
 0x337   : > { %2047 = vtanh.f32 %v1256_v34  ;;  %v1257_v33 = vmul.f32 0.7978846, %v1225_v41  ;;  %v1258_v49 = vmul.f32 0.7978846, %v1226_v55  ;;  %v2959_v52 = vpack.c.bf16 %v2632_v19, %v2625_v53 }
 0x338   : > { %v1132_v7 = vmul.f32 %v2705_v21, %v2705_v21  ;;  %v2719_v14 = vpop.eup %2037  ;;  %v1195_v26 = vmul.f32 0.044715, %v1163_v50  ;;  %v1133_v30 = vmul.f32 %v2709_v51, %v2709_v51  ;;  %v1134_v61 = vmul.f32 %v2712_v42, %v2712_v42 }
 0x339   : > { %1583 = vmatmul.mubr.bf16.vlgmr.msra.gmra.mrb[16].mxu0 %v2959_v52  ;;  %v1308_v2 = vadd.f32 1.0, %v2643_v46  ;;  %2049 = vtanh.f32 %v1257_v33  ;;  %v1310_v53 = vadd.f32 1.0, %v2657_v32  ;;  %v1307_v19 = vadd.f32 1.0, %v2637_v24  ;;  %v1092_v8 = vpop.f32.mrb[24].mxu1 }
 0x33a   : > { %v1164_v6 = vmul.f32 %v1132_v7, %v2705_v21  ;;  %v2729_v31 = vpop.eup %2039  ;;  %2051 = vtanh.f32 %v1258_v49  ;;  %v1227_v18 = vadd.f32 %v1195_v26, %v2695_v60  ;;  %v1165_v62 = vmul.f32 %v1133_v30, %v2709_v51  ;;  %v1094_v41 = vpop.f32.mrb[25].mxu1 }
 0x33b   : > { %v1166_v34 = vmul.f32 %v1134_v61, %v2712_v42  ;;  %v1340_v46 = vmul.f32 0.5, %v1308_v2  ;;  %v1342_v50 = vmul.f32 0.5, %v1310_v53  ;;  %v1309_v33 = vadd.f32 1.0, %v2649_v9  ;;  %v1096_v52 = vpop.f32.mrb[26].mxu1 }
 0x33c   : > { %v1196_v55 = vmul.f32 0.044715, %v1164_v6  ;;  %v1259_v32 = vmul.f32 0.7978846, %v1227_v18  ;;  %v1197_v7 = vmul.f32 0.044715, %v1165_v62  ;;  %v2736_v3 = vadd.f32 %v1092_v8, %v2529_v16 }
 0x33d   : > { %v1198_v24 = vmul.f32 0.044715, %v1166_v34  ;;  %v2738_v49 = vpop.eup %2041  ;;  %v1372_v30 = vmul.f32 %v1340_v46, %v2563_v5  ;;  %v1374_v61 = vmul.f32 %v1342_v50, %v2575_v63  ;;  %v1339_v6 = vmul.f32 0.5, %v1307_v19  ;;  %v1098_v2 = vpop.f32.mrb[27].mxu1 }
 0x33e   : > { %v1228_v26 = vadd.f32 %v1196_v55, %v2705_v21  ;;  %v2743_v53 = vpop.eup %2043  ;;  %2053 = vtanh.f32 %v1259_v32  ;;  %v1229_v9 = vadd.f32 %v1197_v7, %v2709_v51  ;;  %v1341_v62 = vmul.f32 0.5, %v1309_v33 }
 0x33f   : > { %v1230_v18 = vadd.f32 %v1198_v24, %v2712_v42  ;;  %v1402_v34 = vpack.c.bf16 %v1374_v61, %v1372_v30  ;;  %v1371_v0 = vmul.f32 %v1339_v6, %v2559_v12  ;;  %v1135_v55 = vmul.f32 %v2736_v3, %v2736_v3 }
 0x340   : > { %v1260_v8 = vmul.f32 0.7978846, %v1228_v26  ;;  %v2750_v5 = vpop.eup %2045  ;;  %v1261_v63 = vmul.f32 0.7978846, %v1229_v9  ;;  %v1373_v46 = vmul.f32 %v1341_v62, %v2569_v56  ;;  %v2754_v50 = vadd.f32 %v1094_v41, %v2531_v17 }
 0x341   : > { %v1262_v19 = vmul.f32 0.7978846, %v1230_v18  ;;  %v2756_v32 = vpop.eup %2047  ;;  %1590 = vmatprep.mubr.bf16.mxu0 %v1402_v34  ;;  %v1167_v33 = vmul.f32 %v1135_v55, %v2736_v3  ;;  %v2760_v12 = vadd.f32 %v1096_v52, %v2529_v16  ;;  %v2763_v7 = vadd.f32 %v1098_v2, %v2531_v17  ;;  %v1102_v24 = vpop.f32.mrb[28].mxu1 }
 0x342   : > { %2055 = vtanh.f32 %v1260_v8  ;;  %v1401_v26 = vpack.c.bf16 %v1373_v46, %v1371_v0  ;;  %v1136_v56 = vmul.f32 %v2754_v50, %v2754_v50  ;;  %v1312_v41 = vadd.f32 1.0, %v2686_v35  ;;  %v1104_v30 = vpop.f32.mrb[29].mxu1 }
 0x343   : > { %2057 = vtanh.f32 %v1261_v63  ;;  %v2768_v61 = vpop.eup %2049  ;;  %v1199_v6 = vmul.f32 0.044715, %v1167_v33  ;;  %v1137_v52 = vmul.f32 %v2760_v12, %v2760_v12  ;;  %v1138_v2 = vmul.f32 %v2763_v7, %v2763_v7  ;;  %v1106_v9 = vpop.f32.mrb[30].mxu1 }
 0x344   : > { %2059 = vtanh.f32 %v1262_v19  ;;  %v2774_v18 = vpop.eup %2051  ;;  %1591 = vmatmul.mubr.bf16.gmra.mrb[20].mxu0 %v1401_v26  ;;  %v1168_v0 = vmul.f32 %v1136_v56, %v2754_v50  ;;  %v1314_v62 = vadd.f32 1.0, %v2697_v40  ;;  %v1344_v35 = vmul.f32 0.5, %v1312_v41  ;;  %v1108_v34 = vpop.f32.mrb[31].mxu1 }
 0x345   : > { %v1311_v8 = vadd.f32 1.0, %v2682_v10  ;;  %v1231_v55 = vadd.f32 %v1199_v6, %v2736_v3  ;;  %v1169_v63 = vmul.f32 %v1137_v52, %v2760_v12  ;;  %v1170_v19 = vmul.f32 %v1138_v2, %v2763_v7 }
 0x346   : > { %v1313_v46 = vadd.f32 1.0, %v2690_v11  ;;  %v1200_v33 = vmul.f32 0.044715, %v1168_v0  ;;  %v1346_v28 = vmul.f32 0.5, %v1314_v62  ;;  %v1376_v26 = vmul.f32 %v1344_v35, %v2591_v39 }
 0x347   : > { %v1343_v23 = vmul.f32 0.5, %v1311_v8  ;;  %v1263_v56 = vmul.f32 0.7978846, %v1231_v55  ;;  %v1201_v4 = vmul.f32 0.044715, %v1169_v63  ;;  %v2785_v41 = vadd.f32 %v1102_v24, %v2529_v16 }
 0x348   : > { %v1202_v40 = vmul.f32 0.044715, %v1170_v19  ;;  %v2787_v10 = vpop.eup %2053  ;;  %v1232_v6 = vadd.f32 %v1200_v33, %v2754_v50  ;;  %v1378_v52 = vmul.f32 %v1346_v28, %v2603_v54  ;;  %v1345_v2 = vmul.f32 0.5, %v1313_v46 }
 0x349   : > { %v1375_v11 = vmul.f32 %v1343_v23, %v2587_v57  ;;  %2061 = vtanh.f32 %v1263_v56  ;;  %v1233_v0 = vadd.f32 %v1201_v4, %v2760_v12  ;;  %v1139_v62 = vmul.f32 %v2785_v41, %v2785_v41 }
 0x34a   : > { %v1234_v39 = vadd.f32 %v1202_v40, %v2763_v7  ;;  %v1264_v35 = vmul.f32 0.7978846, %v1232_v6  ;;  %v1404_v24 = vpack.c.bf16 %v1378_v52, %v1376_v26  ;;  %v1377_v8 = vmul.f32 %v1345_v2, %v2597_v59 }
 0x34b   : > { %v2798_v55 = vadd.f32 %v1104_v30, %v2531_v17  ;;  %v1265_v28 = vmul.f32 0.7978846, %v1233_v0  ;;  %v1171_v23 = vmul.f32 %v1139_v62, %v2785_v41  ;;  %v2804_v4 = vadd.f32 %v1106_v9, %v2529_v16 }
 0x34c   : > { %v2800_v63 = vpop.eup %2055  ;;  %v1266_v54 = vmul.f32 0.7978846, %v1234_v39  ;;  %2063 = vtanh.f32 %v1264_v35  ;;  %1598 = vmatprep.mubr.bf16.mxu0 %v1404_v24  ;;  %v1403_v19 = vpack.c.bf16 %v1377_v8, %v1375_v11  ;;  %v2811_v30 = vadd.f32 %v1108_v34, %v2531_v17 }
 0x34d   : > { %v2806_v57 = vpop.eup %2057  ;;  %v1140_v59 = vmul.f32 %v2798_v55, %v2798_v55  ;;  %2065 = vtanh.f32 %v1265_v28  ;;  %v1203_v33 = vmul.f32 0.044715, %v1171_v23  ;;  %v1141_v26 = vmul.f32 %v2804_v4, %v2804_v4 }
 0x34e   : > { %v2060_v46 = vpop.eup %2059  ;;  %v1316_v16 = vadd.f32 1.0, %v2729_v31  ;;  %2067 = vtanh.f32 %v1266_v54  ;;  %1599 = vmatmul.mubr.bf16.gmra.mrb[24].mxu0 %v1403_v19  ;;  %v1142_v56 = vmul.f32 %v2811_v30, %v2811_v30  ;;  %v1318_v40 = vadd.f32 1.0, %v2743_v53 }
 0x34f   : > { %v1172_v9 = vmul.f32 %v1140_v59, %v2798_v55  ;;  %v1235_v17 = vadd.f32 %v1203_v33, %v2785_v41  ;;  %v1173_v34 = vmul.f32 %v1141_v26, %v2804_v4  ;;  %v1315_v52 = vadd.f32 1.0, %v2719_v14 }
 0x350   : > { %v1348_v6 = vmul.f32 0.5, %v1316_v16  ;;  %v1174_v11 = vmul.f32 %v1142_v56, %v2811_v30  ;;  %v1350_v31 = vmul.f32 0.5, %v1318_v40  ;;  %v1317_v0 = vadd.f32 1.0, %v2738_v49 }
 0x351   : > { %v1204_v2 = vmul.f32 0.044715, %v1172_v9  ;;  %v1267_v39 = vmul.f32 0.7978846, %v1235_v17  ;;  %v1205_v62 = vmul.f32 0.044715, %v1173_v34 }
 0x352   : > { %v1380_v35 = vmul.f32 %v1348_v6, %v2622_v43  ;;  %v1347_v24 = vmul.f32 0.5, %v1315_v52  ;;  %v1206_v8 = vmul.f32 0.044715, %v1174_v11  ;;  %v1382_v28 = vmul.f32 %v1350_v31, %v2641_v37 }
 0x353   : > { %v1236_v53 = vadd.f32 %v1204_v2, %v2798_v55  ;;  %v1349_v54 = vmul.f32 0.5, %v1317_v0  ;;  %v2062_v23 = vpop.eup %2061  ;;  %2069 = vtanh.f32 %v1267_v39  ;;  %v1237_v14 = vadd.f32 %v1205_v62, %v2804_v4 }
 0x354   : > { %v1379_v19 = vmul.f32 %v1347_v24, %v2615_v13  ;;  %v1320_v59 = vadd.f32 1.0, %v2756_v32  ;;  %v1327_v49 = vadd.f32 1.0, %v2062_v23  ;;  %v1238_v26 = vadd.f32 %v1206_v8, %v2811_v30 }
 0x355   : > { %v1268_v33 = vmul.f32 0.7978846, %v1236_v53  ;;  %v1406_v43 = vpack.c.bf16 %v1382_v28, %v1380_v35  ;;  %v1269_v16 = vmul.f32 0.7978846, %v1237_v14  ;;  %v1381_v9 = vmul.f32 %v1349_v54, %v2635_v58 }
 0x356   : > { %v1322_v56 = vadd.f32 1.0, %v2774_v18  ;;  %v1352_v37 = vmul.f32 0.5, %v1320_v59  ;;  %v2064_v40 = vpop.eup %2063  ;;  %v1359_v17 = vmul.f32 0.5, %v1327_v49  ;;  %v1270_v34 = vmul.f32 0.7978846, %v1238_v26 }
 0x357   : > { %2071 = vtanh.f32 %v1268_v33  ;;  %1606 = vmatprep.mubr.bf16.mxu0 %v1406_v43  ;;  %v1319_v13 = vadd.f32 1.0, %v2750_v5  ;;  %v2066_v6 = vpop.eup %2065  ;;  %v1405_v32 = vpack.c.bf16 %v1381_v9, %v1379_v19  ;;  %v1321_v18 = vadd.f32 1.0, %v2768_v61 }
 0x358   : > { %2073 = vtanh.f32 %v1269_v16  ;;  %v1354_v52 = vmul.f32 0.5, %v1322_v56  ;;  %v1384_v2 = vmul.f32 %v1352_v37, %v2661_v15  ;;  %v2068_v11 = vpop.eup %2067  ;;  %v1391_v31 = vmul.f32 %v1359_v17, %v2736_v3 }
 0x359   : > { %v1329_v58 = vadd.f32 1.0, %v2066_v6  ;;  %2075 = vtanh.f32 %v1270_v34  ;;  %1607 = vmatmul.mubr.bf16.gmra.mrb[28].mxu0 %v1405_v32  ;;  %v1351_v39 = vmul.f32 0.5, %v1319_v13  ;;  %v1324_v62 = vadd.f32 1.0, %v2800_v63 }
 0x35a   : > { %v1386_v0 = vmul.f32 %v1354_v52, %v2673_v38  ;;  %v1326_v5 = vadd.f32 1.0, %v2060_v46  ;;  %v1353_v24 = vmul.f32 0.5, %v1321_v18  ;;  %v1323_v53 = vadd.f32 1.0, %v2787_v10  ;;  %v2858_v18 = vld [vmem:[%s2943_s9] ss:$0 sm:$0xff] }
 0x35b   : > { %v1361_v35 = vmul.f32 0.5, %v1329_v58  ;;  %v1325_v15 = vadd.f32 1.0, %v2806_v57  ;;  %v1383_v3 = vmul.f32 %v1351_v39, %v2655_v20  ;;  %v1356_v28 = vmul.f32 0.5, %v1324_v62 }
 0x35c   : > { %v1408_v8 = vpack.c.bf16 %v1386_v0, %v1384_v2  ;;  %v1358_v54 = vmul.f32 0.5, %v1326_v5  ;;  %v1385_v23 = vmul.f32 %v1353_v24, %v2670_v36  ;;  %v1355_v38 = vmul.f32 0.5, %v1323_v53 }
 0x35d   : > { %v1393_v61 = vmul.f32 %v1361_v35, %v2760_v12  ;;  %v1357_v14 = vmul.f32 0.5, %v1325_v15  ;;  %v2070_v19 = vpop.eup %2069  ;;  %v1388_v63 = vmul.f32 %v1356_v28, %v2705_v21  ;;  %v1328_v10 = vadd.f32 1.0, %v2064_v40 }
 0x35e   : > { %1614 = vmatprep.mubr.bf16.mxu0 %v1408_v8  ;;  %v1390_v46 = vmul.f32 %v1358_v54, %v2712_v42  ;;  %v1330_v59 = vadd.f32 1.0, %v2068_v11  ;;  %v1407_v49 = vpack.c.bf16 %v1385_v23, %v1383_v3  ;;  %v1387_v20 = vmul.f32 %v1355_v38, %v2695_v60 }
 0x35f   : > { %v1411_v57 = vpack.c.bf16 %v1393_v61, %v1391_v31  ;;  %v1389_v33 = vmul.f32 %v1357_v14, %v2709_v51  ;;  %v1360_v12 = vmul.f32 0.5, %v1328_v10  ;;  %v1331_v36 = vadd.f32 1.0, %v2070_v19 }
 0x360   : > { %v1410_v26 = vpack.c.bf16 %v1390_v46, %v1388_v63  ;;  %v1362_v43 = vmul.f32 0.5, %v1330_v59 }
 0x361   : > { %v2072_v16 = vpop.eup %2071  ;;  %v1409_v9 = vpack.c.bf16 %v1389_v33, %v1387_v20  ;;  %1615 = vmatmul.mubr.bf16.gmra.mrb[32].mxu0 %v1407_v49  ;;  %v1392_v21 = vmul.f32 %v1360_v12, %v2754_v50  ;;  %v1363_v34 = vmul.f32 0.5, %v1331_v36 }
 0x362   : > { %v2074_v56 = vpop.eup %2073  ;;  %v1394_v42 = vmul.f32 %v1362_v43, %v2763_v7  ;;  %v1332_v37 = vadd.f32 1.0, %v2072_v16  ;;  %1622 = vmatprep.mubr.bf16.mxu0 %v1410_v26 }
 0x363   : > { %v2076_v40 = vpop.eup %2075  ;;  %v1333_v17 = vadd.f32 1.0, %v2074_v56  ;;  %v1395_v52 = vmul.f32 %v1363_v34, %v2785_v41 }
 0x364   : > { %v1412_v60 = vpack.c.bf16 %v1394_v42, %v1392_v21  ;;  %v1334_v13 = vadd.f32 1.0, %v2076_v40  ;;  %v1364_v51 = vmul.f32 0.5, %v1332_v37 }
 0x365   : > { %v1365_v6 = vmul.f32 0.5, %v1333_v17 }
 0x366   : > { %1630 = vmatprep.mubr.bf16.mxu1 %v1412_v60  ;;  %v1366_v32 = vmul.f32 0.5, %v1334_v13  ;;  %v1396_v50 = vmul.f32 %v1364_v51, %v2798_v55 }
 0x367   : > { %1631 = vmatmul.mubr.bf16.vlgmr.msra.gmra.mrb[32].mxu1 %v1411_v57  ;;  %v1397_v2 = vmul.f32 %v1365_v6, %v2804_v4 }
 0x368   : > { %v1398_v7 = vmul.f32 %v1366_v32, %v2811_v30 }
 0x369   : > { %v1413_v11 = vpack.c.bf16 %v1397_v2, %v1395_v52  ;;  %1623 = vmatmul.mubr.bf16.gmra.mrb[36].mxu0 %v1409_v9 }
 0x36a   : > { %v1414_v31 = vpack.c.bf16 %v1398_v7, %v1396_v50 }
 0x36c   : > { %1638 = vmatprep.mubr.bf16.mxu1 %v1414_v31 }
 0x36f   : > { %1639 = vmatmul.mubr.bf16.gmra.mrb[36].mxu1 %v1413_v11 }
 0x40c   : > { %v1844_v58 = vpop.f32.mrb[16].mxu0 }
 0x40d   : > { %v1845_v0 = vpop.f32.mrb[17].mxu0 }
 0x40e   : > { %v1846_v41 = vadd.f32 %v1845_v0, %v1844_v58  ;;  %v1847_v39 = vpop.f32.mrb[18].mxu0  ;;  %v2961_v58 = vld [vmem:[#allocation6_spill] sm:$0xff] }
 0x40f   : > { %v1848_v4 = vpop.f32.mrb[19].mxu0 }
 0x410   : > { %v1585_v62 = vadd.f32 %v1846_v41, %v2858_v18  ;;  %v1849_v55 = vadd.f32 %v1848_v4, %v1847_v39 }
 0x412   : > { %v1647_v30 = vadd.f32 %v1585_v62, %v2196_v25  ;;  %v1588_v5 = vadd.f32 %v1849_v55, %v2858_v18  ;;  %v2962_v62 = vld [vmem:[#allocation8_spill] sm:$0xff] }
 0x414   : > { %1663 = vst.msk [vmem:[%s2866_s23] sm:$0xff] %vm490_vm0, %v1647_v30  ;;  %v1648_v35 = vadd.f32 %v1588_v5, %v2204_v29  ;;  %v2963_v5 = vld [vmem:[#allocation2_spill] sm:$0xff] }
 0x416   : > { %1664 = vst.msk [vmem:[%s2866_s23 + $0x8] sm:$0xff] %vm490_vm0, %v1648_v35 }
 0x417   : > { %v1850_v24 = vpop.f32.mrb[20].mxu0 }
 0x418   : > { %v1851_v53 = vpop.f32.mrb[21].mxu0 }
 0x419   : > { %v1852_v15 = vadd.f32 %v1851_v53, %v1850_v24  ;;  %v1853_v8 = vpop.f32.mrb[22].mxu0 }
 0x41a   : > { %v1854_v3 = vpop.f32.mrb[23].mxu0 }
 0x41b   : > { %v1593_v28 = vadd.f32 %v1852_v15, %v2858_v18  ;;  %v1855_v54 = vadd.f32 %v1854_v3, %v1853_v8  ;;  %v2964_v3 = vld [vmem:[#allocation3_spill] sm:$0xff] }
 0x41d   : > { %v1649_v25 = vadd.f32 %v1593_v28, %v2193_v22  ;;  %v1596_v61 = vadd.f32 %v1855_v54, %v2858_v18 }
 0x41f   : > { %1665 = vst.msk [vmem:[%s2866_s23 + $0x10] sm:$0xff] %vm490_vm0, %v1649_v25  ;;  %v1650_v29 = vadd.f32 %v1596_v61, %v2199_v27 }
 0x421   : > { %1666 = vst.msk [vmem:[%s2866_s23 + $0x18] sm:$0xff] %vm490_vm0, %v1650_v29  ;;  %v1856_v23 = vpop.f32.mrb[24].mxu0  ;;  %v2965_v29 = vld [vmem:[#allocation5_spill] sm:$0xff] }
 0x422   : > { %v1857_v38 = vpop.f32.mrb[25].mxu0 }
 0x423   : > { %v1858_v14 = vadd.f32 %v1857_v38, %v1856_v23  ;;  %v1859_v19 = vpop.f32.mrb[26].mxu0 }
 0x424   : > { %v1860_v63 = vpop.f32.mrb[27].mxu0 }
 0x425   : > { %v1601_v46 = vadd.f32 %v1858_v14, %v2858_v18  ;;  %v1861_v10 = vadd.f32 %v1860_v63, %v1859_v19  ;;  %v2966_v14 = vld [vmem:[#allocation7_spill] sm:$0xff] }
 0x427   : > { %v1651_v22 = vadd.f32 %v1601_v46, %v2220_v45  ;;  %v1604_v59 = vadd.f32 %v1861_v10, %v2858_v18 }
 0x429   : > { %1667 = vst.msk [vmem:[%s2866_s23 + $0x20] sm:$0xff] %vm490_vm0, %v1651_v22  ;;  %v1652_v27 = vadd.f32 %v1604_v59, %v2226_v48 }
 0x42b   : > { %1668 = vst.msk [vmem:[%s2866_s23 + $0x28] sm:$0xff] %vm490_vm0, %v1652_v27 }
 0x42c   : > { %v1862_v57 = vpop.f32.mrb[28].mxu0 }
 0x42d   : > { %v1863_v49 = vpop.f32.mrb[29].mxu0 }
 0x42e   : > { %v1864_v20 = vadd.f32 %v1863_v49, %v1862_v57  ;;  %v1865_v33 = vpop.f32.mrb[30].mxu0 }
 0x42f   : > { %v1866_v26 = vpop.f32.mrb[31].mxu0 }
 0x430   : > { %v1609_v12 = vadd.f32 %v1864_v20, %v2858_v18  ;;  %v1867_v43 = vadd.f32 %v1866_v26, %v1865_v33 }
 0x432   : > { %v1653_v36 = vadd.f32 %v1609_v12, %v2217_v44  ;;  %v1612_v45 = vadd.f32 %v1867_v43, %v2858_v18 }
 0x434   : > { %1669 = vst.msk [vmem:[%s2866_s23 + $0x30] sm:$0xff] %vm490_vm0, %v1653_v36  ;;  %v1654_v16 = vadd.f32 %v1612_v45, %v2223_v47  ;;  %v1868_v48 = vpop.f32.mrb[32].mxu0  ;;  %v2960_v47 = vld [vmem:[#allocation4_spill] sm:$0xff] }
 0x435   : > { %v1869_v9 = vpop.f32.mrb[33].mxu0 }
 0x436   : > { %1670 = vst.msk [vmem:[%s2866_s23 + $0x38] sm:$0xff] %vm490_vm0, %v1654_v16  ;;  %v1870_v56 = vadd.f32 %v1869_v9, %v1868_v48  ;;  %v1871_v21 = vpop.f32.mrb[34].mxu0 }
 0x437   : > { %v1872_v42 = vpop.f32.mrb[35].mxu0 }
 0x438   : > { %v1617_v37 = vadd.f32 %v1870_v56, %v2858_v18  ;;  %v1873_v40 = vadd.f32 %v1872_v42, %v1871_v21 }
 0x43a   : > { %v1880_v17 = vpop.f32.mrb[32].mxu1  ;;  %v1655_v44 = vadd.f32 %v1617_v37, %v2244_v1  ;;  %v1620_v34 = vadd.f32 %v1873_v40, %v2858_v18 }
 0x43b   : > { %v1881_v60 = vpop.f32.mrb[33].mxu1 }
 0x43c   : > { %v1882_v13 = vadd.f32 %v1881_v60, %v1880_v17  ;;  %v1883_v51 = vpop.f32.mrb[34].mxu1  ;;  %1671 = vst.msk [vmem:[%s2866_s23 + $0x40] sm:$0xff] %vm490_vm0, %v1655_v44  ;;  %v1656_v6 = vadd.f32 %v1620_v34, %v2960_v47  ;;  %v1874_v32 = vpop.f32.mrb[36].mxu0 }
 0x43d   : > { %v1884_v52 = vpop.f32.mrb[35].mxu1  ;;  %v1875_v2 = vpop.f32.mrb[37].mxu0 }
 0x43e   : > { %v1633_v50 = vadd.f32 %v1882_v13, %v2858_v18  ;;  %v1885_v7 = vadd.f32 %v1884_v52, %v1883_v51  ;;  %1672 = vst.msk [vmem:[%s2866_s23 + $0x48] sm:$0xff] %vm490_vm0, %v1656_v6  ;;  %v1876_v1 = vadd.f32 %v1875_v2, %v1874_v32  ;;  %v1877_v11 = vpop.f32.mrb[38].mxu0 }
 0x43f   : > { %v1878_v31 = vpop.f32.mrb[39].mxu0 }
 0x440   : > { %v1659_v0 = vadd.f32 %v1633_v50, %v2961_v58  ;;  %v1636_v41 = vadd.f32 %v1885_v7, %v2858_v18  ;;  %v1625_v39 = vadd.f32 %v1876_v1, %v2858_v18  ;;  %v1879_v4 = vadd.f32 %v1878_v31, %v1877_v11 }
 0x442   : > { %1675 = vst.msk [vmem:[%s2866_s23 + $0x60] sm:$0xff] %vm490_vm0, %v1659_v0  ;;  %v1660_v55 = vadd.f32 %v1636_v41, %v2962_v62  ;;  %v1886_v30 = vpop.f32.mrb[36].mxu1  ;;  %v1657_v35 = vadd.f32 %v1625_v39, %v2963_v5  ;;  %v1628_v24 = vadd.f32 %v1879_v4, %v2858_v18 }
 0x443   : > { %v1887_v53 = vpop.f32.mrb[37].mxu1 }
 0x444   : > { %1676 = vst.msk [vmem:[%s2866_s23 + $0x68] sm:$0xff] %vm490_vm0, %v1660_v55  ;;  %v1888_v15 = vadd.f32 %v1887_v53, %v1886_v30  ;;  %v1889_v8 = vpop.f32.mrb[38].mxu1  ;;  %1673 = vst.msk [vmem:[%s2866_s23 + $0x50] sm:$0xff] %vm490_vm0, %v1657_v35  ;;  %v1658_v28 = vadd.f32 %v1628_v24, %v2964_v3 }
 0x445   : > { %v1890_v54 = vpop.f32.mrb[39].mxu1 }
 0x446   : > { %v1641_v25 = vadd.f32 %v1888_v15, %v2858_v18  ;;  %v1891_v61 = vadd.f32 %v1890_v54, %v1889_v8  ;;  %1674 = vst.msk [vmem:[%s2866_s23 + $0x58] sm:$0xff] %vm490_vm0, %v1658_v28 }
 0x448   : > { %v1661_v23 = vadd.f32 %v1641_v25, %v2965_v29  ;;  %v1644_v38 = vadd.f32 %v1891_v61, %v2858_v18 }
 0x44a   : > { %1677 = vst.msk [vmem:[%s2866_s23 + $0x70] sm:$0xff] %vm490_vm0, %v1661_v23  ;;  %v1662_v19 = vadd.f32 %v1644_v38, %v2966_v14 }
 0x44c   : > { %1678 = vst.msk [vmem:[%s2866_s23 + $0x78] sm:$0xff] %vm490_vm0, %v1662_v19 }
 0x44d PF: > { %s20_s13 = sadd.s32 1, %s2083_s13  }
 0x44e   : > { %p17_p4 = scmp.ge.s32.totalorder %s20_s13, 6  }
 0x450   :  { %19 = sbr.rel (!%p17_p4) target bundleno = 1 (0x1), region = 93 }

</bundles_post_ra>
